<compile_context>
chip_gen: v7x
topology: tpu7x:2x2x1
jax: 0.10.0
libtpu: 0.0.40
codegen_flags: <defaults>
</compile_context>

<pallas_src>
import math

import jax
import jax.numpy as jnp
from jax.experimental import pallas as pl
from jax.experimental.pallas import tpu as pltpu


def _embed_kernel(x_ref, w_ref, b_ref, o_ref):
    # x_ref: (tm_p, G*F)    packed input rows (lane-dense, G*F == 128 for F=4)
    # w_ref: (G*F, G*Hp)    block-diagonal weight (resident, fetched once)
    # b_ref: (1,   G*Hp)    bias tiled G times
    # o_ref: (tm_p, G*Hp)   lane-dense packed output
    acc = jnp.dot(x_ref[...], w_ref[...],
                  preferred_element_type=jnp.float32,
                  precision=jax.lax.Precision.HIGHEST)
    o_ref[...] = jnp.maximum(acc + b_ref[...], 0.0).astype(o_ref.dtype)


def jaad_feature_extractor(x, weight, bias, *, tm_rows=16384, out_dtype=None):
    """relu(x @ weight.T + bias) over the last dim — nn.Linear(4, hidden)+ReLU.

    x:      (..., 4)       box input
    weight: (hidden, 4)    PyTorch nn.Linear layout
    bias:   (hidden,)
    returns (..., hidden)  in out_dtype (default: x.dtype)
    """
    in_feat = x.shape[-1]
    hidden = weight.shape[0]
    assert weight.shape == (hidden, in_feat)
    assert bias.shape == (hidden,)
    out_dtype = x.dtype if out_dtype is None else jnp.dtype(out_dtype)

    lead_shape = x.shape[:-1]
    n_rows = 1
    for d in lead_shape:
        n_rows *= d

    # ---- packing factors -------------------------------------------------
    # Pack G logical rows per packed row so the contraction width is 128
    # (lane-dense x); pad hidden per block so the packed output width is a
    # multiple of 128 (unmasked full-width stores).
    g = 128 // in_feat if 128 % in_feat == 0 else 1
    q = 128 // math.gcd(g, 128)                # per-block hidden granularity
    h_pad = ((hidden + q - 1) // q) * q
    packed_w = g * h_pad                       # packed output lane width

    # ---- wrapper-side data prep (all tiny / free row-major reshapes) ------
    x2 = x.reshape(n_rows, in_feat)
    n_rows_p = ((n_rows + g - 1) // g) * g     # rows padded to a multiple of g
    if n_rows_p != n_rows:
        x2 = jnp.pad(x2, ((0, n_rows_p - n_rows), (0, 0)))
    n_packed = n_rows_p // g
    xp = x2.reshape(n_packed, g * in_feat)     # free row-major reshape

    w = weight.T                               # (F, hidden)
    if h_pad != hidden:
        w = jnp.pad(w, ((0, 0), (0, h_pad - hidden)))
    # Block-diagonal weight: block i occupies rows [i*F:(i+1)*F],
    # cols [i*h_pad:(i+1)*h_pad].  Built once; negligible size (<= ~MiB).
    w_bd = (jnp.eye(g, dtype=w.dtype)[:, None, :, None]
            * w[None, :, None, :]).reshape(g * in_feat, packed_w)

    b = bias
    if h_pad != hidden:
        b = jnp.pad(b, (0, h_pad - hidden))
    b_tiled = jnp.tile(b, (g,)).reshape(1, packed_w)

    # ---- tile sizing -------------------------------------------------------
    out_bytes = out_dtype.itemsize
    x_bytes = jnp.dtype(x.dtype).itemsize
    sub = 16 if out_bytes < 4 else 8           # min sublane tile for out dtype

    tm_p = max(sub, tm_rows // g)              # target packed rows per step

    # VMEM budget: double-buffered x + out tiles plus the resident weight/bias.
    budget = 24 * 1024 * 1024
    fixed = g * in_feat * packed_w * 4 + packed_w * 4
    per_row = 2 * (g * in_feat * x_bytes + packed_w * out_bytes)
    cap = max(sub, (budget - fixed) // per_row) if budget > fixed else sub
    tm_p = min(tm_p, cap)
    tm_p = ((tm_p + sub - 1) // sub) * sub

    if tm_p >= n_packed:
        tm_p = n_packed                        # single full block
        # v7x has 2 TensorCores: give a big single-block input 2 grid steps so
        # both cores get work (no-op on v5e/v6e).
        if n_packed >= 4 * sub:
            half = (((n_packed + 1) // 2 + sub - 1) // sub) * sub
            if half < n_packed:
                tm_p = half

    grid = (pl.cdiv(n_packed, tm_p),)

    cost = pl.CostEstimate(
        flops=2 * n_rows * in_feat * hidden,
        transcendentals=0,
        bytes_accessed=(n_rows * in_feat * x_bytes
                        + g * in_feat * packed_w * 4 + packed_w * 4
                        + n_rows * hidden * out_bytes),
    )

    out = pl.pallas_call(
        _embed_kernel,
        out_shape=jax.ShapeDtypeStruct((n_packed, packed_w), out_dtype),
        grid_spec=pltpu.PrefetchScalarGridSpec(
            num_scalar_prefetch=0,
            grid=grid,
            in_specs=[
                pl.BlockSpec((tm_p, g * in_feat), lambda i: (i, 0)),   # x rows
                pl.BlockSpec((g * in_feat, packed_w), lambda i: (0, 0)),  # W_bd
                pl.BlockSpec((1, packed_w), lambda i: (0, 0)),            # bias
            ],
            out_specs=pl.BlockSpec((tm_p, packed_w), lambda i: (i, 0)),
        ),
        compiler_params=pltpu.CompilerParams(
            dimension_semantics=("parallel",),
            vmem_limit_bytes=32 * 1024 * 1024,
        ),
        cost_estimate=cost,
    )(xp, w_bd, b_tiled)

    # Free row-major unpack: (n_packed, G*h_pad) -> (n_rows_p, h_pad).
    out = out.reshape(n_rows_p, h_pad)
    if n_rows_p != n_rows or h_pad != hidden:
        out = out[:n_rows, :hidden]
    return out.reshape(*lead_shape, hidden)


if __name__ == "__main__":
    key = jax.random.PRNGKey(0)
    k_x, k_w, k_b = jax.random.split(key, 3)

    batch, seq, in_feat, hidden = 2, 8, 4, 32

    # Deterministic synthetic inputs / parameters (no checkpoint load).
    x = jax.random.normal(k_x, (batch, seq, in_feat), dtype=jnp.float32)
    weight = jax.random.normal(k_w, (hidden, in_feat), dtype=jnp.float32) * 0.1
    bias = jax.random.normal(k_b, (hidden,), dtype=jnp.float32) * 0.1

    out = jax.block_until_ready(jaad_feature_extractor(x, weight, bias))
    ref = jnp.maximum(
        jnp.einsum("...f,hf->...h", x, weight,
                   precision=jax.lax.Precision.HIGHEST) + bias, 0.0)
    assert out.shape == (batch, seq, hidden)
    assert jnp.allclose(out, ref, atol=1e-5, rtol=1e-5)

    # Ragged row count (not a multiple of the packing factor G=32) to exercise
    # the pad-and-slice path.
    x_ragged = jax.random.normal(k_w, (3, 5, in_feat), dtype=jnp.float32)
    out_r = jax.block_until_ready(jaad_feature_extractor(x_ragged, weight, bias))
    ref_r = jnp.maximum(
        jnp.einsum("...f,hf->...h", x_ragged, weight,
                   precision=jax.lax.Precision.HIGHEST) + bias, 0.0)
    assert out_r.shape == (3, 5, hidden)
    assert jnp.allclose(out_r, ref_r, atol=1e-5, rtol=1e-5)

    print("KERNEL_OK")
</pallas_src>

<mosaic_0001>
module attributes {stable_mosaic.version = 11 : i64} {
  func.func @_embed_kernel(%arg0: i32, %arg1: memref<1x128xf32, #tpu.memory_space<vmem>>, %arg2: memref<128x1024xf32, #tpu.memory_space<vmem>>, %arg3: memref<1x1024xf32, #tpu.memory_space<vmem>>, %arg4: memref<1x1024xf32, #tpu.memory_space<vmem>>) attributes {dimension_semantics = [#tpu.dimension_semantics<parallel>], iteration_bounds = array<i64: 1>, scalar_prefetch = 0 : i64, scratch_operands = 0 : i64, tpu.core_type = #tpu.core_type<tc>, window_params = [{transform_indices = @transform_0, window_bounds = array<i64: 1, 128>}, {pipeline_mode = #tpu.pipeline_mode<synchronous>, transform_indices = @transform_1, window_bounds = array<i64: 128, 1024>}, {pipeline_mode = #tpu.pipeline_mode<synchronous>, transform_indices = @transform_2, window_bounds = array<i64: 1, 1024>}, {transform_indices = @transform_3, window_bounds = array<i64: 1, 1024>}]} {
    %c0 = arith.constant 0 : index
    %c0_0 = arith.constant 0 : index
    %0 = vector.load %arg1[%c0, %c0_0] : memref<1x128xf32, #tpu.memory_space<vmem>>, vector<1x128xf32>
    %c0_1 = arith.constant 0 : index
    %c0_2 = arith.constant 0 : index
    %1 = vector.load %arg2[%c0_1, %c0_2] : memref<128x1024xf32, #tpu.memory_space<vmem>>, vector<128x1024xf32>
    %cst = arith.constant dense<0.000000e+00> : vector<1x1024xf32>
    %2 = tpu.matmul %0, %1, %cst {dimension_numbers = #tpu.dot_dimension_numbers<[1], [0], [0], [1], [0, 0, 1, 1], [], []>, precision = #tpu.contract_precision<fp32>} : vector<1x128xf32>, vector<128x1024xf32>, vector<1x1024xf32> -> vector<1x1024xf32>
    %c0_3 = arith.constant 0 : index
    %c0_4 = arith.constant 0 : index
    %3 = vector.load %arg3[%c0_3, %c0_4] : memref<1x1024xf32, #tpu.memory_space<vmem>>, vector<1x1024xf32>
    %4 = arith.addf %2, %3 : vector<1x1024xf32>
    %cst_5 = arith.constant 0.000000e+00 : f32
    %5 = vector.broadcast %cst_5 : f32 to vector<1x1024xf32>
    %6 = arith.maximumf %4, %5 : vector<1x1024xf32>
    %c0_6 = arith.constant 0 : index
    %c0_7 = arith.constant 0 : index
    %7 = vector.load %arg4[%c0_6, %c0_7] : memref<1x1024xf32, #tpu.memory_space<vmem>>, vector<1x1024xf32>
    tpu.vector_store %arg4[%c0_6, %c0_7], %6 {strides = array<i32>} : memref<1x1024xf32, #tpu.memory_space<vmem>>, vector<1x1024xf32>,
    return
  }
  func.func @transform_0(%arg0: i32) -> (i32, i32) {
    %c0_i32 = arith.constant 0 : i32
    %c0_i32_0 = arith.constant 0 : i32
    return %arg0, %c0_i32 : i32, i32
  }
  func.func @transform_1(%arg0: i32) -> (i32, i32) {
    %c0_i32 = arith.constant 0 : i32
    %c0_i32_0 = arith.constant 0 : i32
    %c0_i32_1 = arith.constant 0 : i32
    return %c0_i32, %c0_i32_0 : i32, i32
  }
  func.func @transform_2(%arg0: i32) -> (i32, i32) {
    %c0_i32 = arith.constant 0 : i32
    %c0_i32_0 = arith.constant 0 : i32
    %c0_i32_1 = arith.constant 0 : i32
    return %c0_i32, %c0_i32_0 : i32, i32
  }
  func.func @transform_3(%arg0: i32) -> (i32, i32) {
    %c0_i32 = arith.constant 0 : i32
    %c0_i32_0 = arith.constant 0 : i32
    return %arg0, %c0_i32 : i32, i32
  }
}

</mosaic_0001>

<bundles_post_ra>
// kernel: tpu_custom_call.1
= control target key start
LH: loop header
LB: loop body
LE: loop exit
PB: predicated region body
PF: predicated region fallthrough
CT: control target
= control target key end

     0   :  { %8 = vsyncpa [#allocation3], 0  ;;  %s6485_s0 = inlined_call_operand.hbm [shape: f32[1,128], index: 0, kind: input, shape index: {}]   ;;  %s6486_s1 = inlined_call_operand.hbm [shape: f32[128,1024], index: 1, kind: input, shape index: {}]   ;;  %s6487_s2 = inlined_call_operand.hbm [shape: f32[1,1024], index: 2, kind: input, shape index: {}]   ;;  %s6488_s3 = inlined_call_operand.hbm [shape: f32[1,1024], index: 3, kind: output, shape index: {}]  }
   0x1   :  { %9 = vsyncpa [#allocation6], 0 }
   0x2   :  { %10 = vsyncpa [#allocation4], 0  ;;  %s4644_s12 = smov [#allocation5]   ;;  %s4550_s16 = scalar_lea.hbm %s6486_s1, 16384 }
   0x3   :  { %s26_s13 = sshll.u32 %s4644_s12, 4  ;;  %p4551_p0 = scmp.ne.s32.totalorder %s6486_s1, %s4550_s16  ;;  %s27_s13 = int_to_ptr.vmem [resolvable:$true] %s26_s13 }
   0x4   :  { %p4554_p1 = scmp.lt.u32.totalorder %s4550_s16, %s6486_s1 }
   0x6   :  { %p4556_p2 = pnand %p4554_p1, %p4551_p0 }
   0x8   :  { %4559 = shalt.err (!%p4556_p2)
}
   0x9   :  { %s4560_s21 = scalar_lea.vmem %s27_s13, 16384  ;;  %p4565_p4 = scmp.lt.s32.totalorder %s27_s13, %s27_s13 }
   0xa   :  { %p4561_p3 = scmp.ne.s32.totalorder %s27_s13, %s4560_s21  ;;  %p4566_p5 = scmp.lt.s32.totalorder %s4560_s21, %s4560_s21 }
   0xc   :  { %p4567_p6 = por %p4566_p5, %p4565_p4 }
   0xe   :  { %p4568_p7 = pnand %p4567_p6, %p4561_p3 }
  0x10   :  { %4571 = shalt.err (!%p4568_p7)
}
  0x11   :  { %s4645_s22 = smov 1024   ;;  %s4646_s23 = smov 64  }
  0x12   :  { %32 = dma.hbm_to_vmem [thread:$0]  %s6486_s1, 16384, %s27_s13, [#allocation6], %s4645_s22, %s4645_s22, %s4646_s23  }
  0x13   :  { %s4647_s26 = smov [#allocation2]   ;;  %s4648_s28 = smov [#allocation7]  }
  0x14   :  { %s17_s27 = sshll.u32 %s4647_s26, 4  ;;  %s39_s29 = sshll.u32 %s4648_s28, 4  ;;  %s18_s27 = int_to_ptr.vmem [resolvable:$true] %s17_s27  ;;  %s40_s29 = int_to_ptr.vmem [resolvable:$true] %s39_s29 }
  0x15   :  { %s4572_s5 = scalar_lea.hbm %s6485_s0, 16 }
  0x16   :  { %p4573_p8 = scmp.ne.s32.totalorder %s6485_s0, %s4572_s5  ;;  %p4576_p9 = scmp.lt.u32.totalorder %s4572_s5, %s6485_s0 }
  0x18   :  { %p4578_p10 = pnand %p4576_p9, %p4573_p8 }
  0x1a   :  { %4581 = shalt.err (!%p4578_p10)
}
  0x1b   :  { %s4582_s1 = scalar_lea.vmem %s18_s27, 16  ;;  %s4586_s10 = scalar_lea.vmem %s18_s27, 32 }
  0x1c   :  { %p4583_p11 = scmp.ne.s32.totalorder %s18_s27, %s4582_s1  ;;  %p4587_p12 = scmp.lt.s32.totalorder %s18_s27, %s18_s27 }
  0x1d   :  { %p4588_p13 = scmp.lt.s32.totalorder %s4586_s10, %s4582_s1 }
  0x1f   :  { %p4589_p0 = por %p4588_p13, %p4587_p12 }
  0x21   :  { %p4590_p1 = pnand %p4589_p0, %p4583_p11 }
  0x23   :  { %4593 = shalt.err (!%p4590_p1)
}
  0x24   :  { %20 = dma.hbm_to_vmem [thread:$0]  %s6485_s0, 16, %s18_s27, [#allocation3]  }
  0x25   :  { %s4594_s15 = scalar_lea.hbm %s6487_s2, 128 }
  0x26   :  { %p4595_p2 = scmp.ne.s32.totalorder %s6487_s2, %s4594_s15  ;;  %p4598_p3 = scmp.lt.u32.totalorder %s4594_s15, %s6487_s2 }
  0x28   :  { %p4600_p4 = pnand %p4598_p3, %p4595_p2 }
  0x2a   :  { %4603 = shalt.err (!%p4600_p4)
}
  0x2b   :  { %s4604_s20 = scalar_lea.vmem %s40_s29, 128  ;;  %p4609_p6 = scmp.lt.s32.totalorder %s40_s29, %s40_s29 }
  0x2c   :  { %p4605_p5 = scmp.ne.s32.totalorder %s40_s29, %s4604_s20  ;;  %p4610_p7 = scmp.lt.s32.totalorder %s4604_s20, %s4604_s20 }
  0x2e   :  { %p4611_p8 = por %p4610_p7, %p4609_p6 }
  0x30   :  { %p4612_p9 = pnand %p4611_p8, %p4605_p5 }
  0x32   :  { %4615 = shalt.err (!%p4612_p9)
}
  0x33   :  { %42 = dma.hbm_to_vmem [thread:$0]  %s6487_s2, 128, %s40_s29, [#allocation6]  }
  0x34   :  { %4638 = dma.done.wait [#allocation3], 16  }
  0x35   :  { %4639 = vsyncadd [#allocation3], 4294967280 }
  0x36   :  { %4640 = dma.done.wait [#allocation6], 16512  }
  0x37   :  { %4641 = vsyncadd [#allocation6], 4294950784  ;;  %v6489_v0 = vmov 0.0   ;;  %v54_v1 = vld [vmem:[#allocation5 + $0x8] sm:$0xff]  ;;  %v56_v3 = vld [vmem:[#allocation5 + $0x18] sm:$0xff]  ;;  %s4651_s2 = smov [#allocation8]  }
  0x38   :  { %319 = vmatprep.mubr.f32.mxu0 %v6489_v0  ;;  %1174 = vmatprep.mubr.f32.mxu1 %v6489_v0  ;;  %v62_v2 = vld [vmem:[#allocation5 + $0x48] sm:$0xff]  ;;  %v223_v4 = vand.u32 4294901760, %v54_v1  ;;  %v64_v6 = vld [vmem:[#allocation5 + $0x58] sm:$0xff]  ;;  %v1078_v7 = vand.u32 4294901760, %v56_v3  ;;  %v53_v8 = vld [vmem:[#allocation5] sm:$0xff]  ;;  %s3716_s22 = sshll.u32 %s4651_s2, 4  ;;  %s3717_s22 = int_to_ptr.vmem [resolvable:$true] %s3716_s22 }
  0x39   :  { %v227_v5 = vand.u32 4294901760, %v62_v2  ;;  %v61_v9 = vld [vmem:[#allocation5 + $0x40] sm:$0xff]  ;;  %v1082_v10 = vand.u32 4294901760, %v64_v6  ;;  %v225_v11 = vand.u32 4294901760, %v53_v8  ;;  %v55_v13 = vld [vmem:[#allocation5 + $0x10] sm:$0xff]  ;;  %v70_v15 = vld [vmem:[#allocation5 + $0x88] sm:$0xff]  ;;  %p4621_p11 = scmp.lt.s32.totalorder %s3717_s22, %s3717_s22 }
  0x3a   :  { %v229_v12 = vand.u32 4294901760, %v61_v9  ;;  %v63_v14 = vld [vmem:[#allocation5 + $0x50] sm:$0xff]  ;;  %v4712_v17 = vsub.f32 %v54_v1, %v223_v4  ;;  %v4716_v19 = vsub.f32 %v56_v3, %v1078_v7  ;;  %v78_v20 = vld [vmem:[#allocation5 + $0xc8] sm:$0xff]  ;;  %v72_v21 = vld [vmem:[#allocation5 + $0x98] sm:$0xff]  ;;  %v1080_v29 = vand.u32 4294901760, %v55_v13  ;;  %s4616_s23 = scalar_lea.vmem %s3717_s22, 128 }
  0x3b   :  { %v4710_v16 = vpack.c.bf16 %v227_v5, %v223_v4  ;;  %v4714_v18 = vsub.f32 %v62_v2, %v227_v5  ;;  %v80_v22 = vld [vmem:[#allocation5 + $0xd8] sm:$0xff]  ;;  %v4718_v23 = vpack.c.bf16 %v1082_v10, %v1078_v7  ;;  %v4720_v24 = vsub.f32 %v64_v6, %v1082_v10  ;;  %v69_v27 = vld [vmem:[#allocation5 + $0x80] sm:$0xff]  ;;  %v71_v37 = vld [vmem:[#allocation5 + $0x90] sm:$0xff]  ;;  %p4617_p10 = scmp.ne.s32.totalorder %s3717_s22, %s4616_s23  ;;  %p4622_p12 = scmp.lt.s32.totalorder %s4616_s23, %s4616_s23 }
  0x3c   :  { %6825 = vst [vmem:[#allocation13_spill] sm:$0xff] %v4712_v17  ;;  %6827 = vst [vmem:[#allocation15_spill] sm:$0xff] %v4716_v19  ;;  %v4722_v25 = vpack.c.bf16 %v229_v12, %v225_v11  ;;  %v4724_v26 = vsub.f32 %v53_v8, %v225_v11  ;;  %v4727_v28 = vsub.f32 %v61_v9, %v229_v12  ;;  %v1084_v30 = vand.u32 4294901760, %v63_v14  ;;  %v77_v32 = vld [vmem:[#allocation5 + $0xc0] sm:$0xff]  ;;  %v79_v38 = vld [vmem:[#allocation5 + $0xd0] sm:$0xff] }
  0x3d   :  { %6824 = vst [vmem:[#allocation12_spill] sm:$0xff] %v4710_v16  ;;  %6826 = vst [vmem:[#allocation14_spill] sm:$0xff] %v4714_v18  ;;  %3727 = vmatprep.subr.bf16.mxu0 %v4710_v16  ;;  %v231_v31 = vand.u32 4294901760, %v70_v15  ;;  %3919 = vmatprep.subr.bf16.mxu1 %v4718_v23  ;;  %v235_v33 = vand.u32 4294901760, %v78_v20  ;;  %v1086_v34 = vand.u32 4294901760, %v72_v21  ;;  %v1090_v35 = vand.u32 4294901760, %v80_v22  ;;  %p4623_p13 = por %p4622_p12, %p4621_p11 }
  0x3e   :  { %6828 = vst [vmem:[#allocation16_spill] sm:$0xff] %v4718_v23  ;;  %6829 = vst [vmem:[#allocation17_spill] sm:$0xff] %v4720_v24  ;;  %3729 = vmatpush1.bf16.msra.mxu0 %v4722_v25  ;;  %v233_v36 = vand.u32 4294901760, %v69_v27  ;;  %v4731_v39 = vpack.c.bf16 %v1084_v30, %v1080_v29  ;;  %v4733_v40 = vsub.f32 %v55_v13, %v1080_v29  ;;  %v86_v43 = vld [vmem:[#allocation5 + $0x108] sm:$0xff]  ;;  %v88_v45 = vld [vmem:[#allocation5 + $0x118] sm:$0xff]  ;;  %v237_v52 = vand.u32 4294901760, %v77_v32 }
  0x3f   :  { %6830 = vst [vmem:[#allocation18_spill] sm:$0xff] %v4722_v25  ;;  %6831 = vst [vmem:[#allocation19_spill] sm:$0xff] %v4727_v28  ;;  %v4735_v41 = vsub.f32 %v63_v14, %v1084_v30  ;;  %v4737_v42 = vsub.f32 %v70_v15, %v231_v31  ;;  %v94_v44 = vld [vmem:[#allocation5 + $0x148] sm:$0xff]  ;;  %v4739_v46 = vpack.c.bf16 %v235_v33, %v231_v31  ;;  %v96_v50 = vld [vmem:[#allocation5 + $0x158] sm:$0xff]  ;;  %v1088_v54 = vand.u32 4294901760, %v71_v37  ;;  %p4624_p0 = pnand %p4623_p13, %p4617_p10 }
  0x40   :  { %6832 = vst [vmem:[#allocation20_spill] sm:$0xff] %v4731_v39  ;;  %v4741_v47 = vsub.f32 %v78_v20, %v235_v33  ;;  %v4743_v48 = vpack.c.bf16 %v1090_v35, %v1086_v34  ;;  %v4745_v49 = vsub.f32 %v72_v21, %v1086_v34  ;;  %3921 = vmatpush1.bf16.msra.mxu1 %v4731_v39  ;;  %v1092_v55 = vand.u32 4294901760, %v79_v38  ;;  %v85_v59 = vld [vmem:[#allocation5 + $0x100] sm:$0xff]  ;;  %v87_v2 = vld [vmem:[#allocation5 + $0x110] sm:$0xff]  ;;  %v102_v4 = vld [vmem:[#allocation5 + $0x188] sm:$0xff] }
  0x41   :  { %6833 = vst [vmem:[#allocation21_spill] sm:$0xff] %v4739_v46  ;;  %v4748_v51 = vsub.f32 %v80_v22, %v1090_v35  ;;  %v4750_v53 = vsub.f32 %v69_v27, %v233_v36  ;;  %3731 = vmatprep.subr.bf16.mxu0 %v4739_v46  ;;  %v239_v56 = vand.u32 4294901760, %v86_v43  ;;  %v243_v57 = vand.u32 4294901760, %v94_v44  ;;  %v93_v60 = vld [vmem:[#allocation5 + $0x140] sm:$0xff]  ;;  %v95_v3 = vld [vmem:[#allocation5 + $0x150] sm:$0xff]  ;;  %v110_v9 = vld [vmem:[#allocation5 + $0x1c8] sm:$0xff] }
  0x42   :  { %6834 = vst [vmem:[#allocation22_spill] sm:$0xff] %v4743_v48  ;;  %3923 = vmatprep.subr.bf16.mxu1 %v4743_v48  ;;  %v1094_v58 = vand.u32 4294901760, %v88_v45  ;;  %v4754_v61 = vpack.c.bf16 %v237_v52, %v233_v36  ;;  %v4756_v62 = vsub.f32 %v77_v32, %v237_v52  ;;  %v4758_v63 = vsub.f32 %v71_v37, %v1088_v54  ;;  %v104_v10 = vld [vmem:[#allocation5 + $0x198] sm:$0xff]  ;;  %v101_v33 = vld [vmem:[#allocation5 + $0x180] sm:$0xff]  ;;  %v135_v39 = vld [vmem:[#allocation5 + $0x290] sm:$0xff] }
  0x43   :  { %v1098_v1 = vand.u32 4294901760, %v96_v50  ;;  %v4760_v5 = vpack.c.bf16 %v1092_v55, %v1088_v54  ;;  %v4762_v6 = vsub.f32 %v79_v38, %v1092_v55  ;;  %v4764_v7 = vpack.c.bf16 %v243_v57, %v239_v56  ;;  %v112_v11 = vld [vmem:[#allocation5 + $0x1d8] sm:$0xff]  ;;  %v109_v38 = vld [vmem:[#allocation5 + $0x1c0] sm:$0xff]  ;;  %v118_v55 = vld [vmem:[#allocation5 + $0x208] sm:$0xff] }
  0x44   :  { %6835 = vst [vmem:[#allocation23_spill] sm:$0xff] %v4754_v61  ;;  %v4766_v8 = vsub.f32 %v86_v43, %v239_v56  ;;  %3733 = vmatpush1.bf16.msra.mxu0 %v4754_v61  ;;  %v4769_v12 = vsub.f32 %v94_v44, %v243_v57  ;;  %v4773_v14 = vsub.f32 %v88_v45, %v1094_v58  ;;  %v241_v20 = vand.u32 4294901760, %v85_v59  ;;  %v103_v43 = vld [vmem:[#allocation5 + $0x190] sm:$0xff]  ;;  %v126_v56 = vld [vmem:[#allocation5 + $0x248] sm:$0xff]  ;;  %v120_v57 = vld [vmem:[#allocation5 + $0x218] sm:$0xff] }
  0x45   :  { %6836 = vst [vmem:[#allocation24_spill] sm:$0xff] %v4760_v5  ;;  %6837 = vst [vmem:[#allocation25_spill] sm:$0xff] %v4764_v7  ;;  %v4771_v13 = vpack.c.bf16 %v1098_v1, %v1094_v58  ;;  %v4775_v15 = vsub.f32 %v96_v50, %v1098_v1  ;;  %3925 = vmatpush1.bf16.msra.mxu1 %v4760_v5  ;;  %3735 = vmatprep.subr.bf16.mxu0 %v4764_v7  ;;  %v245_v21 = vand.u32 4294901760, %v93_v60  ;;  %v111_v44 = vld [vmem:[#allocation5 + $0x1d0] sm:$0xff]  ;;  %v125_v0 = vld [vmem:[#allocation5 + $0x240] sm:$0xff] }
  0x46   :  { %v1096_v22 = vand.u32 4294901760, %v87_v2  ;;  %v1100_v27 = vand.u32 4294901760, %v95_v3  ;;  %v247_v29 = vand.u32 4294901760, %v102_v4  ;;  %v251_v30 = vand.u32 4294901760, %v110_v9  ;;  %v136_v48 = vld [vmem:[#allocation5 + $0x298] sm:$0xff]  ;;  %v143_v16 = vld [vmem:[#allocation5 + $0x2d0] sm:$0xff] }
  0x47   :  { %6838 = vst [vmem:[#allocation26_spill] sm:$0xff] %v4771_v13  ;;  %3927 = vmatprep.subr.bf16.mxu1 %v4771_v13  ;;  %v1102_v31 = vand.u32 4294901760, %v104_v10  ;;  %v1106_v32 = vand.u32 4294901760, %v112_v11  ;;  %v4780_v34 = vpack.c.bf16 %v245_v21, %v241_v20  ;;  %v4782_v35 = vsub.f32 %v85_v59, %v241_v20  ;;  %v142_v13 = vld [vmem:[#allocation5 + $0x2c8] sm:$0xff] }
  0x48   :  { %v4784_v36 = vsub.f32 %v93_v60, %v245_v21  ;;  %v4786_v37 = vpack.c.bf16 %v1100_v27, %v1096_v22  ;;  %v4788_v45 = vsub.f32 %v87_v2, %v1096_v22  ;;  %v4790_v50 = vsub.f32 %v95_v3, %v1100_v27  ;;  %v128_v21 = vld [vmem:[#allocation5 + $0x258] sm:$0xff] }
  0x49   :  { %6839 = vst [vmem:[#allocation27_spill] sm:$0xff] %v4780_v34  ;;  %v4792_v52 = vpack.c.bf16 %v251_v30, %v247_v29  ;;  %v4794_v54 = vsub.f32 %v102_v4, %v247_v29  ;;  %3737 = vmatpush1.bf16.msra.mxu0 %v4780_v34  ;;  %v4798_v58 = vsub.f32 %v110_v9, %v251_v30  ;;  %v249_v1 = vand.u32 4294901760, %v101_v33  ;;  %v117_v30 = vld [vmem:[#allocation5 + $0x200] sm:$0xff]  ;;  %v134_v34 = vld [vmem:[#allocation5 + $0x288] sm:$0xff] }
  0x4a   :  { %6840 = vst [vmem:[#allocation28_spill] sm:$0xff] %v4786_v37  ;;  %3929 = vmatpush1.bf16.msra.mxu1 %v4786_v37  ;;  %v4800_v59 = vpack.c.bf16 %v1106_v32, %v1102_v31  ;;  %v4802_v60 = vsub.f32 %v104_v10, %v1102_v31  ;;  %v4805_v2 = vsub.f32 %v112_v11, %v1106_v32  ;;  %v253_v3 = vand.u32 4294901760, %v109_v38  ;;  %v119_v10 = vld [vmem:[#allocation5 + $0x210] sm:$0xff] }
  0x4b   :  { %6841 = vst [vmem:[#allocation29_spill] sm:$0xff] %v4792_v52  ;;  %3739 = vmatprep.subr.bf16.mxu0 %v4792_v52  ;;  %v1104_v4 = vand.u32 4294901760, %v103_v43  ;;  %v1108_v20 = vand.u32 4294901760, %v111_v44  ;;  %v4808_v22 = vsub.f32 %v101_v33, %v249_v1  ;;  %v255_v27 = vand.u32 4294901760, %v118_v55  ;;  %v127_v52 = vld [vmem:[#allocation5 + $0x250] sm:$0xff] }
  0x4c   :  { %6842 = vst [vmem:[#allocation30_spill] sm:$0xff] %v4800_v59  ;;  %3931 = vmatprep.subr.bf16.mxu1 %v4800_v59  ;;  %v259_v9 = vand.u32 4294901760, %v126_v56  ;;  %v1110_v29 = vand.u32 4294901760, %v120_v57  ;;  %v4810_v31 = vpack.c.bf16 %v253_v3, %v249_v1  ;;  %v4812_v37 = vsub.f32 %v109_v38, %v253_v3 }
  0x4d   :  { %v4814_v11 = vpack.c.bf16 %v1108_v20, %v1104_v4  ;;  %v4816_v32 = vsub.f32 %v103_v43, %v1104_v4  ;;  %v4818_v59 = vsub.f32 %v111_v44, %v1108_v20  ;;  %v4822_v5 = vsub.f32 %v118_v55, %v255_v27  ;;  %v144_v55 = vld [vmem:[#allocation5 + $0x2d8] sm:$0xff] }
  0x4e   :  { %6843 = vst [vmem:[#allocation31_spill] sm:$0xff] %v4810_v31  ;;  %v4820_v33 = vpack.c.bf16 %v259_v9, %v255_v27  ;;  %v4824_v7 = vsub.f32 %v126_v56, %v259_v9  ;;  %3741 = vmatpush1.bf16.msra.mxu0 %v4810_v31  ;;  %v1114_v38 = vand.u32 4294901760, %v128_v21  ;;  %v4828_v1 = vsub.f32 %v120_v57, %v1110_v29  ;;  %v133_v57 = vld [vmem:[#allocation5 + $0x280] sm:$0xff] }
  0x4f   :  { %6844 = vst [vmem:[#allocation32_spill] sm:$0xff] %v4814_v11  ;;  %6845 = vst [vmem:[#allocation33_spill] sm:$0xff] %v4816_v32  ;;  %3933 = vmatpush1.bf16.msra.mxu1 %v4814_v11  ;;  %v257_v43 = vand.u32 4294901760, %v117_v30  ;;  %v261_v3 = vand.u32 4294901760, %v125_v0  ;;  %v1112_v4 = vand.u32 4294901760, %v119_v10  ;;  %v1116_v44 = vand.u32 4294901760, %v127_v52 }
  0x50   :  { %6846 = vst [vmem:[#allocation34_spill] sm:$0xff] %v4818_v59  ;;  %6847 = vst [vmem:[#allocation35_spill] sm:$0xff] %v4820_v33  ;;  %3743 = vmatprep.subr.bf16.mxu0 %v4820_v33  ;;  %v263_v20 = vand.u32 4294901760, %v134_v34  ;;  %v267_v61 = vand.u32 4294901760, %v142_v13  ;;  %v4831_v27 = vpack.c.bf16 %v1114_v38, %v1110_v29  ;;  %v4833_v56 = vsub.f32 %v128_v21, %v1114_v38  ;;  %v141_v31 = vld [vmem:[#allocation5 + $0x2c0] sm:$0xff]  ;;  %v150_v29 = vld [vmem:[#allocation5 + $0x308] sm:$0xff] }
  0x51   :  { %6848 = vst [vmem:[#allocation36_spill] sm:$0xff] %v4822_v5  ;;  %6849 = vst [vmem:[#allocation37_spill] sm:$0xff] %v4824_v7  ;;  %v4835_v9 = vpack.c.bf16 %v261_v3, %v257_v43  ;;  %v4837_v11 = vsub.f32 %v117_v30, %v257_v43  ;;  %v4839_v46 = vsub.f32 %v125_v0, %v261_v3  ;;  %v1118_v0 = vand.u32 4294901760, %v136_v48 }
  0x52   :  { %6850 = vst [vmem:[#allocation38_spill] sm:$0xff] %v4828_v1  ;;  %6851 = vst [vmem:[#allocation39_spill] sm:$0xff] %v4831_v27  ;;  %v4841_v33 = vpack.c.bf16 %v1116_v44, %v1112_v4  ;;  %v4843_v25 = vsub.f32 %v119_v10, %v1112_v4  ;;  %v4845_v23 = vsub.f32 %v127_v52, %v1116_v44  ;;  %v158_v1 = vld [vmem:[#allocation5 + $0x348] sm:$0xff]  ;;  %3935 = vmatprep.subr.bf16.mxu1 %v4831_v27 }
  0x53   :  { %6852 = vst [vmem:[#allocation40_spill] sm:$0xff] %v4833_v56  ;;  %6853 = vst [vmem:[#allocation41_spill] sm:$0xff] %v4835_v9  ;;  %3745 = vmatpush1.bf16.msra.mxu0 %v4835_v9  ;;  %v4849_v21 = vpack.c.bf16 %v267_v61, %v263_v20  ;;  %v4851_v30 = vsub.f32 %v134_v34, %v263_v20  ;;  %v4853_v38 = vsub.f32 %v142_v13, %v267_v61  ;;  %v174_v56 = vld [vmem:[#allocation5 + $0x3c8] sm:$0xff] }
  0x54   :  { %6854 = vst [vmem:[#allocation42_spill] sm:$0xff] %v4837_v11  ;;  %6855 = vst [vmem:[#allocation43_spill] sm:$0xff] %v4839_v46  ;;  %3937 = vmatpush1.bf16.msra.mxu1 %v4841_v33  ;;  %v1122_v10 = vand.u32 4294901760, %v144_v55  ;;  %v265_v43 = vand.u32 4294901760, %v133_v57  ;;  %v269_v52 = vand.u32 4294901760, %v141_v31  ;;  %v1120_v3 = vand.u32 4294901760, %v135_v39 }
  0x55   :  { %6856 = vst [vmem:[#allocation44_spill] sm:$0xff] %v4841_v33  ;;  %6857 = vst [vmem:[#allocation45_spill] sm:$0xff] %v4843_v25  ;;  %3747 = vmatprep.subr.bf16.mxu0 %v4849_v21  ;;  %v4857_v4 = vsub.f32 %v136_v48, %v1118_v0  ;;  %v1124_v44 = vand.u32 4294901760, %v143_v16  ;;  %v271_v27 = vand.u32 4294901760, %v150_v29  ;;  %v275_v9 = vand.u32 4294901760, %v158_v1  ;;  %v160_v25 = vld [vmem:[#allocation5 + $0x358] sm:$0xff] }
  0x56   :  { %6858 = vst [vmem:[#allocation46_spill] sm:$0xff] %v4845_v23  ;;  %6859 = vst [vmem:[#allocation47_spill] sm:$0xff] %v4849_v21  ;;  %v152_v23 = vld [vmem:[#allocation5 + $0x318] sm:$0xff]  ;;  %v4859_v34 = vpack.c.bf16 %v1122_v10, %v1118_v0  ;;  %v4861_v61 = vsub.f32 %v144_v55, %v1122_v10  ;;  %v4863_v13 = vpack.c.bf16 %v269_v52, %v265_v43  ;;  %v149_v33 = vld [vmem:[#allocation5 + $0x300] sm:$0xff] }
  0x57   :  { %6860 = vst [vmem:[#allocation48_spill] sm:$0xff] %v4851_v30  ;;  %6861 = vst [vmem:[#allocation49_spill] sm:$0xff] %v4853_v38  ;;  %v4865_v20 = vsub.f32 %v133_v57, %v265_v43  ;;  %v157_v38 = vld [vmem:[#allocation5 + $0x340] sm:$0xff]  ;;  %v151_v30 = vld [vmem:[#allocation5 + $0x310] sm:$0xff]  ;;  %v4867_v46 = vsub.f32 %v141_v31, %v269_v52  ;;  %v4869_v48 = vpack.c.bf16 %v1124_v44, %v1120_v3  ;;  %v1126_v31 = vand.u32 4294901760, %v152_v23 }
  0x58   :  { %6862 = vst [vmem:[#allocation50_spill] sm:$0xff] %v4857_v4  ;;  %6863 = vst [vmem:[#allocation51_spill] sm:$0xff] %v4859_v34  ;;  %v4871_v21 = vsub.f32 %v135_v39, %v1120_v3  ;;  %v4873_v4 = vsub.f32 %v143_v16, %v1124_v44  ;;  %v159_v11 = vld [vmem:[#allocation5 + $0x350] sm:$0xff]  ;;  %v166_v0 = vld [vmem:[#allocation5 + $0x388] sm:$0xff]  ;;  %3939 = vmatprep.subr.bf16.mxu1 %v4859_v34  ;;  %3749 = vmatpush1.bf16.msra.mxu0 %v4863_v13  ;;  %v1130_v39 = vand.u32 4294901760, %v160_v25 }
  0x59   :  { %6864 = vst [vmem:[#allocation52_spill] sm:$0xff] %v4861_v61  ;;  %6865 = vst [vmem:[#allocation53_spill] sm:$0xff] %v4863_v13  ;;  %v4877_v55 = vpack.c.bf16 %v275_v9, %v271_v27  ;;  %v4879_v57 = vsub.f32 %v150_v29, %v271_v27  ;;  %v4881_v10 = vsub.f32 %v158_v1, %v275_v9  ;;  %3941 = vmatpush1.bf16.msra.mxu1 %v4869_v48 }
  0x5a   :  { %6866 = vst [vmem:[#allocation54_spill] sm:$0xff] %v4865_v20  ;;  %6867 = vst [vmem:[#allocation55_spill] sm:$0xff] %v4867_v46  ;;  %v273_v43 = vand.u32 4294901760, %v149_v33  ;;  %v277_v16 = vand.u32 4294901760, %v157_v38  ;;  %v1128_v52 = vand.u32 4294901760, %v151_v30  ;;  %v4885_v3 = vsub.f32 %v152_v23, %v1126_v31  ;;  %v175_v20 = vld [vmem:[#allocation5 + $0x3d0] sm:$0xff] }
  0x5b   :  { %6868 = vst [vmem:[#allocation56_spill] sm:$0xff] %v4869_v48  ;;  %6869 = vst [vmem:[#allocation57_spill] sm:$0xff] %v4871_v21  ;;  %3751 = vmatprep.subr.bf16.mxu0 %v4877_v55  ;;  %v1132_v44 = vand.u32 4294901760, %v159_v11  ;;  %v279_v34 = vand.u32 4294901760, %v166_v0  ;;  %v283_v13 = vand.u32 4294901760, %v174_v56  ;;  %v176_v21 = vld [vmem:[#allocation5 + $0x3d8] sm:$0xff]  ;;  %v4887_v27 = vpack.c.bf16 %v1130_v39, %v1126_v31 }
  0x5c   :  { %6870 = vst [vmem:[#allocation58_spill] sm:$0xff] %v4873_v4  ;;  %6871 = vst [vmem:[#allocation59_spill] sm:$0xff] %v4877_v55  ;;  %v168_v4 = vld [vmem:[#allocation5 + $0x398] sm:$0xff]  ;;  %v4889_v1 = vsub.f32 %v160_v25, %v1130_v39  ;;  %v4891_v9 = vpack.c.bf16 %v277_v16, %v273_v43  ;;  %v4893_v29 = vsub.f32 %v149_v33, %v273_v43  ;;  %v165_v48 = vld [vmem:[#allocation5 + $0x380] sm:$0xff] }
  0x5d   :  { %6872 = vst [vmem:[#allocation60_spill] sm:$0xff] %v4879_v57  ;;  %6873 = vst [vmem:[#allocation61_spill] sm:$0xff] %v4881_v10  ;;  %v173_v10 = vld [vmem:[#allocation5 + $0x3c0] sm:$0xff]  ;;  %v167_v57 = vld [vmem:[#allocation5 + $0x390] sm:$0xff]  ;;  %v4895_v46 = vsub.f32 %v157_v38, %v277_v16  ;;  %v4897_v23 = vpack.c.bf16 %v1132_v44, %v1128_v52  ;;  %v4899_v55 = vsub.f32 %v151_v30, %v1128_v52  ;;  %3943 = vmatprep.subr.bf16.mxu1 %v4887_v27 }
  0x5e   :  { %6874 = vst [vmem:[#allocation62_spill] sm:$0xff] %v4885_v3  ;;  %6875 = vst [vmem:[#allocation63_spill] sm:$0xff] %v4887_v27  ;;  %v4901_v3 = vsub.f32 %v159_v11, %v1132_v44  ;;  %3753 = vmatpush1.bf16.msra.mxu0 %v4891_v9  ;;  %v4905_v25 = vpack.c.bf16 %v283_v13, %v279_v34  ;;  %v4907_v33 = vsub.f32 %v166_v0, %v279_v34 }
  0x5f   :  { %6876 = vst [vmem:[#allocation64_spill] sm:$0xff] %v4891_v9  ;;  %6877 = vst [vmem:[#allocation65_spill] sm:$0xff] %v4897_v23  ;;  %v4909_v31 = vsub.f32 %v174_v56, %v283_v13  ;;  %v1134_v39 = vand.u32 4294901760, %v168_v4  ;;  %3945 = vmatpush1.bf16.msra.mxu1 %v4897_v23  ;;  %v1138_v38 = vand.u32 4294901760, %v176_v21  ;;  %v281_v43 = vand.u32 4294901760, %v165_v48 }
  0x60   :  { %6878 = vst [vmem:[#allocation66_spill] sm:$0xff] %v4905_v25  ;;  %v285_v30 = vand.u32 4294901760, %v173_v10  ;;  %v1136_v16 = vand.u32 4294901760, %v167_v57  ;;  %3755 = vmatprep.subr.bf16.mxu0 %v4905_v25  ;;  %v1140_v52 = vand.u32 4294901760, %v175_v20  ;;  %v6567_v44 = vand.u32 4294901760, %v4712_v17 }
  0x61   :  { %6879 = vst [vmem:[#allocation67_spill] sm:$0xff] %v4909_v31  ;;  %v4913_v11 = vsub.f32 %v168_v4, %v1134_v39  ;;  %v6566_v9 = vand.u32 4294901760, %v4714_v18  ;;  %v4917_v34 = vpack.c.bf16 %v1138_v38, %v1134_v39  ;;  %v4919_v56 = vsub.f32 %v176_v21, %v1138_v38  ;;  %v52_v23 = vld [vmem:[#allocation2] sm:$0x1] }
  0x62   :  { %v4921_v13 = vpack.c.bf16 %v285_v30, %v281_v43  ;;  %v4923_v0 = vsub.f32 %v165_v48, %v281_v43  ;;  %v4925_v27 = vsub.f32 %v173_v10, %v285_v30  ;;  %v4927_v31 = vpack.c.bf16 %v1140_v52, %v1136_v16 }
  0x63   :  { %6880 = vst [vmem:[#allocation68_spill] sm:$0xff] %v4913_v11  ;;  %6881 = vst [vmem:[#allocation69_spill] sm:$0xff] %v4917_v34  ;;  %v4929_v4 = vsub.f32 %v167_v57, %v1136_v16  ;;  %v4931_v25 = vsub.f32 %v175_v20, %v1140_v52  ;;  %3947 = vmatprep.subr.bf16.mxu1 %v4917_v34  ;;  %v334_v21 = vsub.f32 %v4712_v17, %v6567_v44 }
  0x64   :  { %6882 = vst [vmem:[#allocation70_spill] sm:$0xff] %v4919_v56  ;;  %6883 = vst [vmem:[#allocation71_spill] sm:$0xff] %v4921_v13  ;;  %3757 = vmatpush1.bf16.msra.mxu0 %v4921_v13  ;;  %v346_v48 = vsub.f32 %v4714_v18, %v6566_v9  ;;  %v6570_v10 = vand.u32 4294901760, %v4716_v19  ;;  %v6575_v39 = vand.u32 4294901760, %v4720_v24  ;;  %3949 = vmatpush1.bf16.msra.mxu1 %v4927_v31  ;;  %v4944_v20 = vand.u32 4294901760, %v52_v23 }
  0x65   :  { %6884 = vst [vmem:[#allocation72_spill] sm:$0xff] %v4923_v0  ;;  %6885 = vst [vmem:[#allocation73_spill] sm:$0xff] %v4925_v27  ;;  %v6582_v57 = vand.u32 4294901760, %v4724_v26  ;;  %v6583_v38 = vand.u32 4294901760, %v4727_v28  ;;  %v6589_v43 = vand.u32 4294901760, %v4733_v40  ;;  %v335_v30 = vand.u32 4294901760, %v334_v21 }
  0x66   :  { %6886 = vst [vmem:[#allocation74_spill] sm:$0xff] %v4927_v31  ;;  %6887 = vst [vmem:[#allocation75_spill] sm:$0xff] %v4929_v4  ;;  %v347_v16 = vand.u32 4294901760, %v346_v48  ;;  %v1189_v52 = vsub.f32 %v4716_v19, %v6570_v10  ;;  %v1201_v9 = vsub.f32 %v4720_v24, %v6575_v39  ;;  %v4956_v44 = vsub.f32 %v52_v23, %v4944_v20 }
  0x67   :  { %6888 = vst [vmem:[#allocation76_spill] sm:$0xff] %v4931_v25  ;;  %6889 = vst [vmem:[#allocation77_spill] sm:$0xff] %v4944_v20  ;;  %v340_v31 = vsub.f32 %v4724_v26, %v6582_v57  ;;  %v352_v21 = vsub.f32 %v4727_v28, %v6583_v38  ;;  %v1195_v48 = vsub.f32 %v4733_v40, %v6589_v43  ;;  %v6587_v39 = vand.u32 4294901760, %v4735_v41 }
  0x68   :  { %6890 = vst [vmem:[#allocation78_spill] sm:$0xff] %v4956_v44  ;;  %v3758_v10 = vpack.c.bf16 %v347_v16, %v335_v30  ;;  %v1190_v13 = vand.u32 4294901760, %v1189_v52  ;;  %v1202_v34 = vand.u32 4294901760, %v1201_v9  ;;  %v4969_v23 = vand.u32 4294901760, %v4956_v44 }
  0x69   :  { %v341_v20 = vand.u32 4294901760, %v340_v31  ;;  %v353_v24 = vand.u32 4294901760, %v352_v21  ;;  %v1196_v19 = vand.u32 4294901760, %v1195_v48  ;;  %v1207_v38 = vsub.f32 %v4735_v41, %v6587_v39 }
  0x6a   :  { %6891 = vst [vmem:[#allocation79_spill] sm:$0xff] %v4969_v23  ;;  %3759 = vmatprep.subr.bf16.mxu0 %v3758_v10  ;;  %v3950_v57 = vpack.c.bf16 %v1202_v34, %v1190_v13  ;;  %v6586_v28 = vand.u32 4294901760, %v4737_v42  ;;  %v6588_v30 = vand.u32 4294901760, %v4741_v47  ;;  %v323_v9 = vsub.f32 %v4956_v44, %v4969_v23 }
  0x6b   :  { %v3760_v16 = vpack.c.bf16 %v353_v24, %v341_v20  ;;  %v6590_v52 = vand.u32 4294901760, %v4745_v49  ;;  %v6591_v31 = vand.u32 4294901760, %v4748_v51  ;;  %v1208_v21 = vand.u32 4294901760, %v1207_v38 }
  0x6c   :  { %3951 = vmatprep.subr.bf16.mxu1 %v3950_v57  ;;  %v358_v34 = vsub.f32 %v4737_v42, %v6586_v28  ;;  %v370_v13 = vsub.f32 %v4741_v47, %v6588_v30  ;;  %v6592_v10 = vand.u32 4294901760, %v4750_v53  ;;  %v4987_v48 = vand.u32 4294901760, %v323_v9 }
  0x6d   :  { %v1213_v24 = vsub.f32 %v4745_v49, %v6590_v52  ;;  %v1225_v20 = vsub.f32 %v4748_v51, %v6591_v31  ;;  %v6601_v57 = vand.u32 4294901760, %v4756_v62  ;;  %v3952_v38 = vpack.c.bf16 %v1208_v21, %v1196_v19 }
  0x6e   :  { %6892 = vst [vmem:[#allocation80_spill] sm:$0xff] %v4987_v48  ;;  %v359_v28 = vand.u32 4294901760, %v358_v34  ;;  %v371_v39 = vand.u32 4294901760, %v370_v13  ;;  %v364_v30 = vsub.f32 %v4750_v53, %v6592_v10  ;;  %325 = vmatmul.mubr.f32.vlgmr.msra.gmra.mrb[0].mxu0 %v4987_v48  ;;  %1180 = vmatmul.mubr.f32.vlgmr.msra.gmra.mrb[0].mxu1 %v4987_v48  ;;  %v6597_v31 = vand.u32 4294901760, %v4758_v63 }
  0x6f   :  { %v1214_v9 = vand.u32 4294901760, %v1213_v24  ;;  %v1226_v43 = vand.u32 4294901760, %v1225_v20  ;;  %v376_v52 = vsub.f32 %v4756_v62, %v6601_v57  ;;  %3761 = vmatpush1.bf16.msra.mxu0 %v3760_v16  ;;  %3953 = vmatpush1.bf16.msra.mxu1 %v3952_v38  ;;  %v6598_v34 = vand.u32 4294901760, %v4762_v6 }
  0x70   :  { %v3762_v19 = vpack.c.bf16 %v371_v39, %v359_v28  ;;  %v365_v21 = vand.u32 4294901760, %v364_v30  ;;  %v6599_v13 = vand.u32 4294901760, %v4766_v8  ;;  %v1219_v24 = vsub.f32 %v4758_v63, %v6597_v31 }
  0x71   :  { %v3954_v10 = vpack.c.bf16 %v1226_v43, %v1214_v9  ;;  %v377_v23 = vand.u32 4294901760, %v376_v52  ;;  %v6600_v20 = vand.u32 4294901760, %v4769_v12  ;;  %v6893_v48 = vmov 0.0  }
  0x72   :  { %555 = vmatprep.mubr.f32.mxu0 %v6893_v48  ;;  %1410 = vmatprep.mubr.f32.mxu1 %v6893_v48  ;;  %v1231_v28 = vsub.f32 %v4762_v6, %v6598_v34  ;;  %v382_v39 = vsub.f32 %v4766_v8, %v6599_v13  ;;  %v6602_v43 = vand.u32 4294901760, %v4773_v14  ;;  %v6613_v30 = vand.u32 4294901760, %v4775_v15 }
  0x73   :  { %3763 = vmatprep.subr.bf16.mxu0 %v3762_v19  ;;  %3955 = vmatprep.subr.bf16.mxu1 %v3954_v10  ;;  %v3764_v16 = vpack.c.bf16 %v377_v23, %v365_v21  ;;  %v1220_v52 = vand.u32 4294901760, %v1219_v24  ;;  %v394_v38 = vsub.f32 %v4769_v12, %v6600_v20  ;;  %v6605_v9 = vand.u32 4294901760, %v4782_v35 }
  0x74   :  { %v1232_v19 = vand.u32 4294901760, %v1231_v28  ;;  %v383_v31 = vand.u32 4294901760, %v382_v39  ;;  %v1237_v34 = vsub.f32 %v4773_v14, %v6602_v43  ;;  %v1249_v13 = vsub.f32 %v4775_v15, %v6613_v30 }
  0x75   :  { %3765 = vmatpush1.bf16.msra.mxu0 %v3764_v16  ;;  %v395_v10 = vand.u32 4294901760, %v394_v38  ;;  %v388_v23 = vsub.f32 %v4782_v35, %v6605_v9  ;;  %v6606_v21 = vand.u32 4294901760, %v4784_v36  ;;  %v6610_v24 = vand.u32 4294901760, %v4788_v45 }
  0x76   :  { %v3956_v28 = vpack.c.bf16 %v1232_v19, %v1220_v52  ;;  %v1238_v39 = vand.u32 4294901760, %v1237_v34  ;;  %v1250_v20 = vand.u32 4294901760, %v1249_v13  ;;  %v6607_v57 = vand.u32 4294901760, %v4790_v50 }
  0x77   :  { %v3766_v43 = vpack.c.bf16 %v395_v10, %v383_v31  ;;  %v389_v44 = vand.u32 4294901760, %v388_v23  ;;  %v400_v16 = vsub.f32 %v4784_v36, %v6606_v21  ;;  %v1243_v38 = vsub.f32 %v4788_v45, %v6610_v24 }
  0x78   :  { %3957 = vmatpush1.bf16.msra.mxu1 %v3956_v28  ;;  %v3958_v9 = vpack.c.bf16 %v1250_v20, %v1238_v39  ;;  %v1255_v52 = vsub.f32 %v4790_v50, %v6607_v57  ;;  %v6608_v34 = vand.u32 4294901760, %v4794_v54  ;;  %v6609_v13 = vand.u32 4294901760, %v4798_v58 }
  0x79   :  { %3767 = vmatprep.subr.bf16.mxu0 %v3766_v43  ;;  %v401_v31 = vand.u32 4294901760, %v400_v16  ;;  %v1244_v19 = vand.u32 4294901760, %v1243_v38  ;;  %v6611_v10 = vand.u32 4294901760, %v4802_v60  ;;  %v6612_v23 = vand.u32 4294901760, %v4805_v2 }
  0x7a   :  { %3959 = vmatprep.subr.bf16.mxu1 %v3958_v9  ;;  %v1256_v21 = vand.u32 4294901760, %v1255_v52  ;;  %v406_v20 = vsub.f32 %v4794_v54, %v6608_v34  ;;  %v418_v28 = vsub.f32 %v4798_v58, %v6609_v13  ;;  %v6616_v39 = vand.u32 4294901760, %v4808_v22 }
  0x7b   :  { %v3768_v57 = vpack.c.bf16 %v401_v31, %v389_v44  ;;  %v1261_v43 = vsub.f32 %v4802_v60, %v6611_v10  ;;  %v1273_v9 = vsub.f32 %v4805_v2, %v6612_v23  ;;  %v6615_v16 = vand.u32 4294901760, %v4812_v37 }
  0x7c   :  { %v3960_v38 = vpack.c.bf16 %v1256_v21, %v1244_v19  ;;  %v407_v52 = vand.u32 4294901760, %v406_v20  ;;  %v419_v34 = vand.u32 4294901760, %v418_v28  ;;  %v412_v13 = vsub.f32 %v4808_v22, %v6616_v39 }
  0x7d   :  { %3769 = vmatpush1.bf16.msra.mxu0 %v3768_v57  ;;  %v1262_v24 = vand.u32 4294901760, %v1261_v43  ;;  %v1274_v44 = vand.u32 4294901760, %v1273_v9  ;;  %v424_v31 = vsub.f32 %v4812_v37, %v6615_v16  ;;  %v6614_v10 = vand.u32 4294901760, %v4816_v32 }
  0x7e   :  { %3961 = vmatpush1.bf16.msra.mxu1 %v3960_v38  ;;  %v3770_v23 = vpack.c.bf16 %v419_v34, %v407_v52  ;;  %v413_v30 = vand.u32 4294901760, %v412_v13  ;;  %v6619_v21 = vand.u32 4294901760, %v4818_v59  ;;  %v6620_v19 = vand.u32 4294901760, %v4822_v5  ;;  %v6894_v13 = vld [vmem:[#allocation38_spill] sm:$0xff]  ;;  %v6895_v52 = vld [vmem:[#allocation40_spill] sm:$0xff] }
  0x7f   :  { %v3962_v20 = vpack.c.bf16 %v1274_v44, %v1262_v24  ;;  %v425_v28 = vand.u32 4294901760, %v424_v31  ;;  %v1267_v57 = vsub.f32 %v4816_v32, %v6614_v10  ;;  %v6621_v43 = vand.u32 4294901760, %v4824_v7 }
  0x80   :  { %3771 = vmatprep.subr.bf16.mxu0 %v3770_v23  ;;  %v1279_v9 = vsub.f32 %v4818_v59, %v6619_v21  ;;  %v430_v34 = vsub.f32 %v4822_v5, %v6620_v19  ;;  %v6629_v38 = vand.u32 4294901760, %v6894_v13  ;;  %v6632_v24 = vand.u32 4294901760, %v6895_v52  ;;  %v6896_v23 = vld [vmem:[#allocation42_spill] sm:$0xff] }
  0x81   :  { %3963 = vmatprep.subr.bf16.mxu1 %v3962_v20  ;;  %v3772_v44 = vpack.c.bf16 %v425_v28, %v413_v30  ;;  %v1268_v31 = vand.u32 4294901760, %v1267_v57  ;;  %v442_v10 = vsub.f32 %v4824_v7, %v6621_v43  ;;  %v6631_v16 = vand.u32 4294901760, %v6896_v23  ;;  %v6897_v28 = vld [vmem:[#allocation43_spill] sm:$0xff]  ;;  %v6898_v43 = vld [vmem:[#allocation45_spill] sm:$0xff]  ;;  %v6899_v7 = vld [vmem:[#allocation46_spill] sm:$0xff] }
  0x82   :  { %v1280_v39 = vand.u32 4294901760, %v1279_v9  ;;  %v431_v32 = vand.u32 4294901760, %v430_v34  ;;  %v1285_v21 = vsub.f32 %v6894_v13, %v6629_v38  ;;  %v1297_v19 = vsub.f32 %v6895_v52, %v6632_v24 }
  0x83   :  { %3773 = vmatpush1.bf16.msra.mxu0 %v3772_v44  ;;  %v443_v20 = vand.u32 4294901760, %v442_v10  ;;  %v436_v30 = vsub.f32 %v6896_v23, %v6631_v16  ;;  %v6634_v57 = vand.u32 4294901760, %v6897_v28  ;;  %v6637_v59 = vand.u32 4294901760, %v6898_v43 }
  0x84   :  { %v3964_v9 = vpack.c.bf16 %v1280_v39, %v1268_v31  ;;  %v1286_v34 = vand.u32 4294901760, %v1285_v21  ;;  %v1298_v48 = vand.u32 4294901760, %v1297_v19  ;;  %v6636_v5 = vand.u32 4294901760, %v6899_v7  ;;  %v6900_v21 = vld [vmem:[#allocation48_spill] sm:$0xff]  ;;  %v6901_v31 = vld [vmem:[#allocation49_spill] sm:$0xff] }
  0x85   :  { %v3774_v38 = vpack.c.bf16 %v443_v20, %v431_v32  ;;  %v437_v13 = vand.u32 4294901760, %v436_v30  ;;  %v448_v44 = vsub.f32 %v6897_v28, %v6634_v57  ;;  %v1291_v10 = vsub.f32 %v6898_v43, %v6637_v59  ;;  %v6902_v30 = vld [vmem:[#allocation50_spill] sm:$0xff] }
  0x86   :  { %3965 = vmatpush1.bf16.msra.mxu1 %v3964_v9  ;;  %v3966_v16 = vpack.c.bf16 %v1298_v48, %v1286_v34  ;;  %v1303_v39 = vsub.f32 %v6899_v7, %v6636_v5  ;;  %v6639_v19 = vand.u32 4294901760, %v6900_v21  ;;  %v6640_v24 = vand.u32 4294901760, %v6901_v31  ;;  %v6903_v34 = vld [vmem:[#allocation54_spill] sm:$0xff] }
  0x87   :  { %3775 = vmatprep.subr.bf16.mxu0 %v3774_v38  ;;  %v449_v32 = vand.u32 4294901760, %v448_v44  ;;  %v1292_v20 = vand.u32 4294901760, %v1291_v10  ;;  %v6642_v23 = vand.u32 4294901760, %v6902_v30  ;;  %v6644_v57 = vand.u32 4294901760, %v4861_v61  ;;  %v6904_v44 = vld [vmem:[#allocation55_spill] sm:$0xff] }
  0x88   :  { %3967 = vmatprep.subr.bf16.mxu1 %v3966_v16  ;;  %v1304_v28 = vand.u32 4294901760, %v1303_v39  ;;  %v454_v48 = vsub.f32 %v6900_v21, %v6639_v19  ;;  %v466_v9 = vsub.f32 %v6901_v31, %v6640_v24  ;;  %v6651_v5 = vand.u32 4294901760, %v6903_v34  ;;  %v6906_v21 = vld [vmem:[#allocation58_spill] sm:$0xff] }
  0x89   :  { %v3776_v59 = vpack.c.bf16 %v449_v32, %v437_v13  ;;  %v1309_v38 = vsub.f32 %v6902_v30, %v6642_v23  ;;  %v1321_v16 = vsub.f32 %v4861_v61, %v6644_v57  ;;  %v6649_v10 = vand.u32 4294901760, %v6904_v44  ;;  %v6905_v23 = vld [vmem:[#allocation57_spill] sm:$0xff] }
  0x8a   :  { %v3968_v39 = vpack.c.bf16 %v1304_v28, %v1292_v20  ;;  %v455_v7 = vand.u32 4294901760, %v454_v48  ;;  %v467_v19 = vand.u32 4294901760, %v466_v9  ;;  %v460_v24 = vsub.f32 %v6903_v34, %v6651_v5  ;;  %v6907_v20 = vld [vmem:[#allocation60_spill] sm:$0xff] }
  0x8b   :  { %3777 = vmatpush1.bf16.msra.mxu0 %v3776_v59  ;;  %v1310_v31 = vand.u32 4294901760, %v1309_v38  ;;  %v1322_v13 = vand.u32 4294901760, %v1321_v16  ;;  %v472_v32 = vsub.f32 %v6904_v44, %v6649_v10  ;;  %v6650_v30 = vand.u32 4294901760, %v6905_v23  ;;  %v6908_v38 = vld [vmem:[#allocation61_spill] sm:$0xff] }
  0x8c   :  { %3969 = vmatpush1.bf16.msra.mxu1 %v3968_v39  ;;  %v3778_v57 = vpack.c.bf16 %v467_v19, %v455_v7  ;;  %v461_v61 = vand.u32 4294901760, %v460_v24  ;;  %v6652_v28 = vand.u32 4294901760, %v6906_v21  ;;  %v6653_v48 = vand.u32 4294901760, %v6907_v20  ;;  %v6909_v24 = vld [vmem:[#allocation62_spill] sm:$0xff] }
  0x8d   :  { %v3970_v9 = vpack.c.bf16 %v1322_v13, %v1310_v31  ;;  %v473_v43 = vand.u32 4294901760, %v472_v32  ;;  %v1315_v59 = vsub.f32 %v6905_v23, %v6650_v30  ;;  %v6654_v16 = vand.u32 4294901760, %v6908_v38 }
  0x8e   :  { %3779 = vmatprep.subr.bf16.mxu0 %v3778_v57  ;;  %v1327_v10 = vsub.f32 %v6906_v21, %v6652_v28  ;;  %v478_v7 = vsub.f32 %v6907_v20, %v6653_v48  ;;  %v6656_v19 = vand.u32 4294901760, %v6909_v24  ;;  %v6660_v31 = vand.u32 4294901760, %v4889_v1 }
  0x8f   :  { %3971 = vmatprep.subr.bf16.mxu1 %v3970_v9  ;;  %v3780_v39 = vpack.c.bf16 %v473_v43, %v461_v61  ;;  %v1316_v13 = vand.u32 4294901760, %v1315_v59  ;;  %v490_v32 = vsub.f32 %v6908_v38, %v6654_v16  ;;  %v6658_v57 = vand.u32 4294901760, %v4893_v29 }
  0x90   :  { %v1328_v30 = vand.u32 4294901760, %v1327_v10  ;;  %v479_v5 = vand.u32 4294901760, %v478_v7  ;;  %v1333_v28 = vsub.f32 %v6909_v24, %v6656_v19  ;;  %v1345_v48 = vsub.f32 %v4889_v1, %v6660_v31 }
  0x91   :  { %3781 = vmatpush1.bf16.msra.mxu0 %v3780_v39  ;;  %v491_v9 = vand.u32 4294901760, %v490_v32  ;;  %v484_v61 = vsub.f32 %v4893_v29, %v6658_v57  ;;  %v6659_v43 = vand.u32 4294901760, %v4895_v46  ;;  %v6664_v59 = vand.u32 4294901760, %v4899_v55 }
  0x92   :  { %v3972_v10 = vpack.c.bf16 %v1328_v30, %v1316_v13  ;;  %v1334_v7 = vand.u32 4294901760, %v1333_v28  ;;  %v1346_v16 = vand.u32 4294901760, %v1345_v48  ;;  %v6661_v38 = vand.u32 4294901760, %v4901_v3  ;;  %v6910_v48 = vld [vmem:[#allocation67_spill] sm:$0xff] }
  0x93   :  { %v3782_v19 = vpack.c.bf16 %v491_v9, %v479_v5  ;;  %v485_v24 = vand.u32 4294901760, %v484_v61  ;;  %v496_v39 = vsub.f32 %v4895_v46, %v6659_v43  ;;  %v1339_v32 = vsub.f32 %v4899_v55, %v6664_v59 }
  0x94   :  { %3973 = vmatpush1.bf16.msra.mxu1 %v3972_v10  ;;  %v3974_v57 = vpack.c.bf16 %v1346_v16, %v1334_v7  ;;  %v1351_v30 = vsub.f32 %v4901_v3, %v6661_v38  ;;  %v6662_v28 = vand.u32 4294901760, %v4907_v33  ;;  %v6663_v13 = vand.u32 4294901760, %v6910_v48 }
  0x95   :  { %3783 = vmatprep.subr.bf16.mxu0 %v3782_v19  ;;  %v497_v5 = vand.u32 4294901760, %v496_v39  ;;  %v1340_v9 = vand.u32 4294901760, %v1339_v32  ;;  %v6665_v61 = vand.u32 4294901760, %v4913_v11  ;;  %v6666_v43 = vand.u32 4294901760, %v4919_v56 }
  0x96   :  { %3975 = vmatprep.subr.bf16.mxu1 %v3974_v57  ;;  %v1352_v31 = vand.u32 4294901760, %v1351_v30  ;;  %v502_v16 = vsub.f32 %v4907_v33, %v6662_v28  ;;  %v514_v10 = vsub.f32 %v6910_v48, %v6663_v13  ;;  %v6672_v7 = vand.u32 4294901760, %v4923_v0 }
  0x97   :  { %v3784_v38 = vpack.c.bf16 %v497_v5, %v485_v24  ;;  %v1357_v19 = vsub.f32 %v4913_v11, %v6665_v61  ;;  %v1369_v57 = vsub.f32 %v4919_v56, %v6666_v43  ;;  %v6671_v39 = vand.u32 4294901760, %v4925_v27 }
  0x98   :  { %v3976_v32 = vpack.c.bf16 %v1352_v31, %v1340_v9  ;;  %v503_v30 = vand.u32 4294901760, %v502_v16  ;;  %v515_v28 = vand.u32 4294901760, %v514_v10  ;;  %v508_v13 = vsub.f32 %v4923_v0, %v6672_v7 }
  0x99   :  { %3785 = vmatpush1.bf16.msra.mxu0 %v3784_v38  ;;  %v1358_v59 = vand.u32 4294901760, %v1357_v19  ;;  %v1370_v24 = vand.u32 4294901760, %v1369_v57  ;;  %v520_v5 = vsub.f32 %v4925_v27, %v6671_v39  ;;  %v6669_v61 = vand.u32 4294901760, %v4929_v4  ;;  %v6916_v39 = vld [vmem:[#allocation37_spill] sm:$0xff] }
  0x9a   :  { %3977 = vmatpush1.bf16.msra.mxu1 %v3976_v32  ;;  %v3786_v43 = vpack.c.bf16 %v515_v28, %v503_v30  ;;  %v509_v56 = vand.u32 4294901760, %v508_v13  ;;  %v6670_v31 = vand.u32 4294901760, %v4931_v25  ;;  %v3790_v19 = vpack.c.bf16 %v4714_v18, %v4712_v17  ;;  %v6911_v32 = vld [vmem:[#allocation15_spill] sm:$0xff] }
  0x9b   :  { %v3978_v9 = vpack.c.bf16 %v1370_v24, %v1358_v59  ;;  %v521_v16 = vand.u32 4294901760, %v520_v5  ;;  %v1363_v10 = vsub.f32 %v4929_v4, %v6669_v61  ;;  %v6912_v59 = vld [vmem:[#allocation17_spill] sm:$0xff]  ;;  %v6913_v24 = vld [vmem:[#allocation19_spill] sm:$0xff]  ;;  %v6917_v7 = vmov 0.0  }
  0x9c   :  { %3787 = vmatprep.subr.bf16.mxu0 %v3786_v43  ;;  %v1375_v38 = vsub.f32 %v4931_v25, %v6670_v31  ;;  %v3982_v30 = vpack.c.bf16 %v6912_v59, %v6911_v32  ;;  %v3792_v5 = vpack.c.bf16 %v6913_v24, %v4724_v26  ;;  %v3794_v43 = vpack.c.bf16 %v4741_v47, %v4737_v42  ;;  %v6914_v31 = vld [vmem:[#allocation77_spill] sm:$0xff] }
  0x9d   :  { %3979 = vmatprep.subr.bf16.mxu1 %v3978_v9  ;;  %v3788_v57 = vpack.c.bf16 %v521_v16, %v509_v56  ;;  %v1364_v28 = vand.u32 4294901760, %v1363_v10  ;;  %v3984_v56 = vpack.c.bf16 %v4735_v41, %v4733_v40  ;;  %v3986_v9 = vpack.c.bf16 %v4748_v51, %v4745_v49 }
  0x9e   :  { %v1376_v13 = vand.u32 4294901760, %v1375_v38  ;;  %v3796_v16 = vpack.c.bf16 %v4756_v62, %v4750_v53  ;;  %v3988_v10 = vpack.c.bf16 %v4762_v6, %v4758_v63  ;;  %v3798_v38 = vpack.c.bf16 %v4769_v12, %v4766_v8 }
  0x9f   :  { %3789 = vmatpush1.bf16.msra.mxu0 %v3788_v57  ;;  %v3992_v57 = vpack.c.bf16 %v4790_v50, %v4788_v45  ;;  %v6918_v18 = vand.u32 4294901760, %v6911_v32  ;;  %v6919_v17 = vand.u32 4294901760, %v6912_v59  ;;  %v6920_v4 = vand.u32 4294901760, %v4724_v26 }
  0xa0   :  { %v3980_v61 = vpack.c.bf16 %v1376_v13, %v1364_v28  ;;  %3791 = vmatprep.subr.bf16.mxu0 %v3790_v19  ;;  %v3800_v19 = vpack.c.bf16 %v4784_v36, %v4782_v35  ;;  %v3802_v28 = vpack.c.bf16 %v4798_v58, %v4794_v54  ;;  %v3994_v13 = vpack.c.bf16 %v4805_v2, %v4802_v60 }
  0xa1   :  { %v5245_v25 = vpack.c.bf16 %v6919_v17, %v6918_v18  ;;  %v6922_v0 = vand.u32 4294901760, %v4733_v40  ;;  %v6923_v11 = vand.u32 4294901760, %v4735_v41  ;;  %v6924_v32 = vand.u32 4294901760, %v4737_v42 }
  0xa2   :  { %3981 = vmatpush1.bf16.msra.mxu1 %v3980_v61  ;;  %557 = vmatmul.mubr.f32.vlgmr.msra.gmra.mrb[0].mxu0 %v6914_v31  ;;  %v3990_v61 = vpack.c.bf16 %v4775_v15, %v4773_v14  ;;  %v6925_v17 = vand.u32 4294901760, %v4741_v47  ;;  %v6926_v26 = vand.u32 4294901760, %v4745_v49  ;;  %v6927_v59 = vand.u32 4294901760, %v4748_v51 }
  0xa3   :  { %3983 = vmatprep.subr.bf16.mxu1 %v3982_v30  ;;  %3793 = vmatpush1.bf16.msra.mxu0 %v3792_v5  ;;  %v3804_v30 = vpack.c.bf16 %v4812_v37, %v4808_v22  ;;  %v6915_v5 = vld [vmem:[#allocation36_spill] sm:$0xff]  ;;  %v5258_v48 = vpack.c.bf16 %v6923_v11, %v6922_v0  ;;  %v6928_v40 = vand.u32 4294901760, %v4750_v53  ;;  %v6929_v41 = vand.u32 4294901760, %v4756_v62 }
  0xa4   :  { %3795 = vmatprep.subr.bf16.mxu0 %v3794_v43  ;;  %v3806_v43 = vpack.c.bf16 %v6916_v39, %v6915_v5  ;;  %691 = vmatprep.mubr.f32.mxu0 %v6917_v7  ;;  %v5264_v18 = vpack.c.bf16 %v6925_v17, %v6924_v32  ;;  %v6930_v42 = vand.u32 4294901760, %v4758_v63  ;;  %v6931_v47 = vand.u32 4294901760, %v4762_v6 }
  0xa5   :  { %1412 = vmatmul.mubr.f32.vlgmr.msra.gmra.mrb[0].mxu1 %v6914_v31  ;;  %v6921_v31 = vand.u32 4294901760, %v6913_v24  ;;  %v5276_v11 = vpack.c.bf16 %v6929_v41, %v6928_v40  ;;  %v6933_v49 = vand.u32 4294901760, %v4769_v12  ;;  %v6934_v24 = vand.u32 4294901760, %v4773_v14  ;;  %v6952_v41 = vld [vmem:[#allocation38_spill] sm:$0xff] }
  0xa6   :  { %3985 = vmatpush1.bf16.msra.mxu1 %v3984_v56  ;;  %1546 = vmatprep.mubr.f32.mxu1 %v6917_v7  ;;  %v5282_v0 = vpack.c.bf16 %v6931_v47, %v6930_v42  ;;  %v6935_v53 = vand.u32 4294901760, %v4775_v15  ;;  %v6936_v56 = vand.u32 4294901760, %v4782_v35  ;;  %v6937_v63 = vand.u32 4294901760, %v4784_v36  ;;  %v6955_v47 = vld [vmem:[#allocation42_spill] sm:$0xff] }
  0xa7   :  { %v5252_v27 = vpack.c.bf16 %v6921_v31, %v6920_v4  ;;  %3987 = vmatprep.subr.bf16.mxu1 %v3986_v9  ;;  %3797 = vmatpush1.bf16.msra.mxu0 %v3796_v16  ;;  %v5270_v4 = vpack.c.bf16 %v6927_v59, %v6926_v26  ;;  %v6932_v31 = vand.u32 4294901760, %v4766_v8  ;;  %v6938_v9 = vand.u32 4294901760, %v4788_v45  ;;  %v6948_v59 = vld [vmem:[#allocation34_spill] sm:$0xff] }
  0xa8   :  { %3799 = vmatprep.subr.bf16.mxu0 %v3798_v38  ;;  %v5294_v62 = vpack.c.bf16 %v6935_v53, %v6934_v24  ;;  %v5300_v6 = vpack.c.bf16 %v6937_v63, %v6936_v56  ;;  %v6939_v8 = vand.u32 4294901760, %v4790_v50  ;;  %v6940_v12 = vand.u32 4294901760, %v4794_v54  ;;  %v6946_v50 = vld [vmem:[#allocation33_spill] sm:$0xff]  ;;  %v6962_v63 = vld [vmem:[#allocation46_spill] sm:$0xff] }
  0xa9   :  { %v5288_v51 = vpack.c.bf16 %v6933_v49, %v6932_v31  ;;  %v6941_v14 = vand.u32 4294901760, %v4798_v58  ;;  %v6942_v15 = vand.u32 4294901760, %v4802_v60  ;;  %v6943_v35 = vand.u32 4294901760, %v4805_v2  ;;  %v6957_v49 = vld [vmem:[#allocation43_spill] sm:$0xff]  ;;  %v6960_v56 = vld [vmem:[#allocation45_spill] sm:$0xff] }
  0xaa   :  { %v5306_v16 = vpack.c.bf16 %v6939_v8, %v6938_v9  ;;  %v6944_v36 = vand.u32 4294901760, %v4808_v22  ;;  %v6945_v45 = vand.u32 4294901760, %v4812_v37  ;;  %v6947_v26 = vand.u32 4294901760, %v6946_v50  ;;  %3989 = vmatpush1.bf16.msra.mxu1 %v3988_v10 }
  0xab   :  { %v5312_v38 = vpack.c.bf16 %v6941_v14, %v6940_v12  ;;  %v5318_v32 = vpack.c.bf16 %v6943_v35, %v6942_v15  ;;  %v6949_v54 = vand.u32 4294901760, %v6948_v59  ;;  %v6950_v58 = vand.u32 4294901760, %v6915_v5  ;;  %3991 = vmatprep.subr.bf16.mxu1 %v3990_v61  ;;  %3801 = vmatpush1.bf16.msra.mxu0 %v3800_v19  ;;  %v6967_v12 = vld [vmem:[#allocation49_spill] sm:$0xff]  ;;  %v6970_v35 = vld [vmem:[#allocation50_spill] sm:$0xff] }
  0xac   :  { %v5324_v17 = vpack.c.bf16 %v6945_v45, %v6944_v36  ;;  %v6951_v60 = vand.u32 4294901760, %v6916_v39  ;;  %v6953_v42 = vand.u32 4294901760, %v6952_v41  ;;  %v6954_v22 = vand.u32 4294901760, %v6895_v52  ;;  %v6965_v39 = vld [vmem:[#allocation48_spill] sm:$0xff]  ;;  %3803 = vmatprep.subr.bf16.mxu0 %v3802_v28 }
  0xad   :  { %v5330_v40 = vpack.c.bf16 %v6949_v54, %v6947_v26  ;;  %v6956_v31 = vand.u32 4294901760, %v6955_v47  ;;  %v6958_v24 = vand.u32 4294901760, %v6957_v49  ;;  %v6961_v10 = vand.u32 4294901760, %v6960_v56  ;;  %v6972_v45 = vld [vmem:[#allocation52_spill] sm:$0xff] }
  0xae   :  { %v5336_v2 = vpack.c.bf16 %v6951_v60, %v6950_v58  ;;  %v5342_v37 = vpack.c.bf16 %v6954_v22, %v6953_v42  ;;  %v6963_v5 = vand.u32 4294901760, %v6962_v63  ;;  %v6966_v8 = vand.u32 4294901760, %v6965_v39  ;;  %3993 = vmatpush1.bf16.msra.mxu1 %v3992_v57 }
  0xaf   :  { %v5348_v53 = vpack.c.bf16 %v6958_v24, %v6956_v31  ;;  %v6968_v14 = vand.u32 4294901760, %v6967_v12  ;;  %v6971_v36 = vand.u32 4294901760, %v6970_v35  ;;  %v6973_v26 = vand.u32 4294901760, %v6972_v45  ;;  %v6982_v24 = vld [vmem:[#allocation61_spill] sm:$0xff]  ;;  %3995 = vmatprep.subr.bf16.mxu1 %v3994_v13  ;;  %3805 = vmatpush1.bf16.msra.mxu0 %v3804_v30 }
  0xb0   :  { %v5354_v9 = vpack.c.bf16 %v6963_v5, %v6961_v10  ;;  %v6975_v58 = vand.u32 4294901760, %v6903_v34  ;;  %v6976_v60 = vand.u32 4294901760, %v6904_v44  ;;  %v6978_v61 = vand.u32 4294901760, %v6905_v23  ;;  %3807 = vmatprep.subr.bf16.mxu0 %v3806_v43 }
  0xb1   :  { %6959 = vst [vmem:[#allocation40_spill] sm:$0xff] %v5348_v53  ;;  %v5360_v15 = vpack.c.bf16 %v6968_v14, %v6966_v8  ;;  %v5366_v54 = vpack.c.bf16 %v6973_v26, %v6971_v36  ;;  %v6979_v19 = vand.u32 4294901760, %v6906_v21  ;;  %v6981_v31 = vand.u32 4294901760, %v6907_v20  ;;  %v6985_v8 = vld [vmem:[#allocation62_spill] sm:$0xff] }
  0xb2   :  { %6964 = vst [vmem:[#allocation54_spill] sm:$0xff] %v5354_v9  ;;  %v5372_v42 = vpack.c.bf16 %v6976_v60, %v6975_v58  ;;  %v6983_v10 = vand.u32 4294901760, %v6982_v24  ;;  %v6986_v14 = vand.u32 4294901760, %v6985_v8  ;;  %v6987_v36 = vand.u32 4294901760, %v4889_v1 }
  0xb3   :  { %6969 = vst [vmem:[#allocation55_spill] sm:$0xff] %v5360_v15  ;;  %6974 = vst [vmem:[#allocation57_spill] sm:$0xff] %v5366_v54  ;;  %v5378_v22 = vpack.c.bf16 %v6979_v19, %v6978_v61  ;;  %v6989_v28 = vand.u32 4294901760, %v4893_v29  ;;  %v6990_v58 = vand.u32 4294901760, %v4895_v46  ;;  %v6992_v61 = vand.u32 4294901760, %v4899_v55 }
  0xb4   :  { %6977 = vst [vmem:[#allocation58_spill] sm:$0xff] %v5372_v42  ;;  %v5384_v5 = vpack.c.bf16 %v6983_v10, %v6981_v31  ;;  %v5390_v26 = vpack.c.bf16 %v6987_v36, %v6986_v14  ;;  %v6993_v19 = vand.u32 4294901760, %v4901_v3  ;;  %v6995_v31 = vand.u32 4294901760, %v4907_v33  ;;  %v6996_v10 = vld [vmem:[#allocation67_spill] sm:$0xff]  ;;  %v6999_v14 = vld [vmem:[#allocation68_spill] sm:$0xff] }
  0xb5   :  { %6980 = vst [vmem:[#allocation60_spill] sm:$0xff] %v5378_v22  ;;  %v5396_v60 = vpack.c.bf16 %v6990_v58, %v6989_v28  ;;  %v7000_v36 = vand.u32 4294901760, %v6999_v14  ;;  %v7003_v28 = vld [vmem:[#allocation72_spill] sm:$0xff]  ;;  %v3810_v57 = vpack.c.bf16 %v6967_v12, %v6965_v39  ;;  %v4002_v13 = vpack.c.bf16 %v6972_v45, %v6970_v35  ;;  %v7021_v39 = vld [vmem:[#allocation26_spill] sm:$0xff]  ;;  %v7022_v12 = vld [vmem:[#allocation27_spill] sm:$0xff] }
  0xb6   :  { %6984 = vst [vmem:[#allocation15_spill] sm:$0xff] %v5384_v5  ;;  %6988 = vst [vmem:[#allocation17_spill] sm:$0xff] %v5390_v26  ;;  %v5402_v22 = vpack.c.bf16 %v6993_v19, %v6992_v61  ;;  %v6997_v5 = vand.u32 4294901760, %v6996_v10  ;;  %v7001_v26 = vld [vmem:[#allocation70_spill] sm:$0xff]  ;;  %v7004_v58 = vand.u32 4294901760, %v7003_v28  ;;  %v3996_v61 = vpack.c.bf16 %v6948_v59, %v6946_v50  ;;  %v7007_v19 = vld [vmem:[#allocation75_spill] sm:$0xff] }
  0xb7   :  { %6991 = vst [vmem:[#allocation19_spill] sm:$0xff] %v5396_v60  ;;  %v7002_v54 = vand.u32 4294901760, %v7001_v26  ;;  %v7005_v60 = vld [vmem:[#allocation73_spill] sm:$0xff]  ;;  %v4000_v50 = vpack.c.bf16 %v6962_v63, %v6960_v56  ;;  %v3812_v30 = vpack.c.bf16 %v6904_v44, %v6903_v34  ;;  %v4004_v43 = vpack.c.bf16 %v6906_v21, %v6905_v23  ;;  %v7020_v63 = vld [vmem:[#allocation24_spill] sm:$0xff]  ;;  %v7025_v45 = vld [vmem:[#allocation30_spill] sm:$0xff] }
  0xb8   :  { %6994 = vst [vmem:[#allocation36_spill] sm:$0xff] %v5402_v22  ;;  %v5408_v42 = vpack.c.bf16 %v6997_v5, %v6995_v31  ;;  %v7006_v15 = vand.u32 4294901760, %v7005_v60  ;;  %v7008_v22 = vand.u32 4294901760, %v7007_v19  ;;  %v7009_v5 = vld [vmem:[#allocation76_spill] sm:$0xff]  ;;  %3997 = vmatpush1.bf16.msra.mxu1 %v3996_v61  ;;  %v4006_v59 = vpack.c.bf16 %v4889_v1, %v6985_v8  ;;  %v7019_v56 = vld [vmem:[#allocation25_spill] sm:$0xff]  ;;  %v7035_v61 = vld [vmem:[#allocation59_spill] sm:$0xff] }
  0xb9   :  { %v5414_v9 = vpack.c.bf16 %v7002_v54, %v7000_v36  ;;  %v7010_v31 = vand.u32 4294901760, %v7009_v5  ;;  %v3998_v54 = vpack.c.bf16 %v6895_v52, %v6952_v41  ;;  %v3808_v36 = vpack.c.bf16 %v6957_v49, %v6955_v47  ;;  %v7011_v1 = vld [vmem:[#allocation12_spill] sm:$0xff]  ;;  %v7017_v47 = vld [vmem:[#allocation22_spill] sm:$0xff]  ;;  %v7018_v49 = vld [vmem:[#allocation23_spill] sm:$0xff] }
  0xba   :  { %6998 = vst [vmem:[#allocation37_spill] sm:$0xff] %v5408_v42  ;;  %v5420_v53 = vpack.c.bf16 %v7006_v15, %v7004_v58  ;;  %v3814_v52 = vpack.c.bf16 %v6982_v24, %v6907_v20  ;;  %v3816_v41 = vpack.c.bf16 %v4895_v46, %v4893_v29  ;;  %v3818_v34 = vpack.c.bf16 %v6996_v10, %v4907_v33  ;;  %v7012_v29 = vld [vmem:[#allocation78_spill] sm:$0xff]  ;;  %v7015_v33 = vld [vmem:[#allocation21_spill] sm:$0xff]  ;;  %v7016_v20 = vld [vmem:[#allocation20_spill] sm:$0xff] }
  0xbb   :  { %v5428_v42 = vpack.c.bf16 %v7010_v31, %v7008_v22  ;;  %3999 = vmatprep.subr.bf16.mxu1 %v3998_v54  ;;  %3809 = vmatpush1.bf16.msra.mxu0 %v3808_v36  ;;  %v4008_v44 = vpack.c.bf16 %v4901_v3, %v4899_v55  ;;  %v4010_v23 = vpack.c.bf16 %v7001_v26, %v6999_v14  ;;  %v7013_v55 = vld [vmem:[#allocation16_spill] sm:$0xff]  ;;  %v7014_v3 = vld [vmem:[#allocation18_spill] sm:$0xff]  ;;  %v7023_v15 = vld [vmem:[#allocation29_spill] sm:$0xff] }
  0xbc   :  { %3811 = vmatprep.subr.bf16.mxu0 %v3810_v57  ;;  %4001 = vmatpush1.bf16.msra.mxu1 %v4000_v50  ;;  %v3820_v21 = vpack.c.bf16 %v7005_v60, %v7003_v28  ;;  %v4012_v46 = vpack.c.bf16 %v7009_v5, %v7007_v19  ;;  %v7024_v35 = vld [vmem:[#allocation28_spill] sm:$0xff]  ;;  %v7026_v22 = vld [vmem:[#allocation31_spill] sm:$0xff]  ;;  %v7030_v60 = vld [vmem:[#allocation41_spill] sm:$0xff] }
  0xbd   :  { %4003 = vmatprep.subr.bf16.mxu1 %v4002_v13  ;;  %v7027_v24 = vld [vmem:[#allocation35_spill] sm:$0xff]  ;;  %v7028_v8 = vld [vmem:[#allocation32_spill] sm:$0xff]  ;;  %v7034_v58 = vld [vmem:[#allocation53_spill] sm:$0xff] }
  0xbe   :  { %v7029_v26 = vld [vmem:[#allocation39_spill] sm:$0xff]  ;;  %v7032_v14 = vld [vmem:[#allocation44_spill] sm:$0xff]  ;;  %v7039_v54 = vld [vmem:[#allocation66_spill] sm:$0xff] }
  0xbf   :  { %3813 = vmatpush1.bf16.msra.mxu0 %v3812_v30  ;;  %v7031_v10 = vld [vmem:[#allocation47_spill] sm:$0xff]  ;;  %v7036_v19 = vld [vmem:[#allocation56_spill] sm:$0xff]  ;;  %v7040_v36 = vld [vmem:[#allocation13_spill] sm:$0xff] }
  0xc0   :  { %3815 = vmatprep.subr.bf16.mxu0 %v3814_v52  ;;  %4005 = vmatpush1.bf16.msra.mxu1 %v4004_v43  ;;  %v7033_v28 = vld [vmem:[#allocation51_spill] sm:$0xff]  ;;  %v7038_v31 = vld [vmem:[#allocation64_spill] sm:$0xff]  ;;  %v7041_v57 = vand.u32 4294901760, %v7040_v36  ;;  %v7042_v50 = vld [vmem:[#allocation14_spill] sm:$0xff] }
  0xc1   :  { %4007 = vmatprep.subr.bf16.mxu1 %v4006_v59  ;;  %v7037_v5 = vld [vmem:[#allocation63_spill] sm:$0xff]  ;;  %v7043_v13 = vand.u32 4294901760, %v7042_v50  ;;  %v7044_v52 = vld [vmem:[#allocation65_spill] sm:$0xff] }
  0xc2   :  { %v7045_v43 = vld [vmem:[#allocation69_spill] sm:$0xff]  ;;  %v7046_v59 = vld [vmem:[#allocation71_spill] sm:$0xff] }
  0xc3   :  { %3817 = vmatpush1.bf16.msra.mxu0 %v3816_v41  ;;  %v3854_v30 = vpack.c.bf16 %v7043_v13, %v7041_v57  ;;  %v7047_v41 = vld [vmem:[#allocation74_spill] sm:$0xff]  ;;  %v76_v50 = vld [vmem:[#allocation5 + $0xb8] sm:$0xff] }
  0xc4   :  { %3819 = vmatprep.subr.bf16.mxu0 %v3818_v34  ;;  %4009 = vmatpush1.bf16.msra.mxu1 %v4008_v44  ;;  %v7048_v34 = vld [vmem:[#allocation79_spill] sm:$0xff]  ;;  %v7049_v44 = vld [vmem:[#allocation40_spill] sm:$0xff]  ;;  %v84_v13 = vld [vmem:[#allocation5 + $0xf8] sm:$0xff] }
  0xc5   :  { %4011 = vmatprep.subr.bf16.mxu1 %v4010_v23  ;;  %v74_v23 = vld [vmem:[#allocation5 + $0xa8] sm:$0xff] }
  0xc7   :  { %3821 = vmatpush1.bf16.msra.mxu0 %v3820_v21  ;;  %v82_v21 = vld [vmem:[#allocation5 + $0xe8] sm:$0xff] }
  0xc8   :  { %3823 = vmatprep.subr.bf16.mxu0 %v7011_v1  ;;  %4013 = vmatpush1.bf16.msra.mxu1 %v4012_v46  ;;  %v7050_v46 = vld [vmem:[#allocation55_spill] sm:$0xff] }
  0xc9   :  { %4015 = vmatprep.subr.bf16.mxu1 %v7013_v55 }
  0xca   :  { %694 = vmatmul.mubr.f32.vlgmr.msra.gmra.mrb[0].mxu0 %v7012_v29 }
  0xcb   :  { %3825 = vmatpush1.bf16.msra.mxu0 %v7014_v3  ;;  %796 = vmatprep.mubr.f32.mxu0 %v6917_v7 }
  0xcc   :  { %3827 = vmatprep.subr.bf16.mxu0 %v7015_v33  ;;  %1549 = vmatmul.mubr.f32.vlgmr.msra.gmra.mrb[0].mxu1 %v7012_v29  ;;  %v1945_v29 = vand.u32 4294901760, %v82_v21 }
  0xcd   :  { %4017 = vmatpush1.bf16.msra.mxu1 %v7016_v20  ;;  %1651 = vmatprep.mubr.f32.mxu1 %v6917_v7 }
  0xce   :  { %4019 = vmatprep.subr.bf16.mxu1 %v7017_v47 }
  0xcf   :  { %3829 = vmatpush1.bf16.msra.mxu0 %v7018_v49 }
  0xd0   :  { %3831 = vmatprep.subr.bf16.mxu0 %v7019_v56 }
  0xd1   :  { %4021 = vmatpush1.bf16.msra.mxu1 %v7020_v63 }
  0xd2   :  { %4023 = vmatprep.subr.bf16.mxu1 %v7021_v39 }
  0xd3   :  { %3833 = vmatpush1.bf16.msra.mxu0 %v7022_v12 }
  0xd4   :  { %3835 = vmatprep.subr.bf16.mxu0 %v7023_v15 }
  0xd5   :  { %4025 = vmatpush1.bf16.msra.mxu1 %v7024_v35 }
  0xd6   :  { %4027 = vmatprep.subr.bf16.mxu1 %v7025_v45 }
  0xd7   :  { %3837 = vmatpush1.bf16.msra.mxu0 %v7026_v22 }
  0xd8   :  { %3839 = vmatprep.subr.bf16.mxu0 %v7027_v24 }
  0xd9   :  { %4029 = vmatpush1.bf16.msra.mxu1 %v7028_v8 }
  0xda   :  { %4031 = vmatprep.subr.bf16.mxu1 %v7029_v26 }
  0xdb   :  { %3841 = vmatpush1.bf16.msra.mxu0 %v7030_v60 }
  0xdc   :  { %3843 = vmatprep.subr.bf16.mxu0 %v7031_v10 }
  0xdd   :  { %4033 = vmatpush1.bf16.msra.mxu1 %v7032_v14 }
  0xde   :  { %4035 = vmatprep.subr.bf16.mxu1 %v7033_v28 }
  0xdf   :  { %3845 = vmatpush1.bf16.msra.mxu0 %v7034_v58 }
  0xe0   :  { %3847 = vmatprep.subr.bf16.mxu0 %v7035_v61 }
  0xe1   :  { %4037 = vmatpush1.bf16.msra.mxu1 %v7036_v19 }
  0xe2   :  { %4039 = vmatprep.subr.bf16.mxu1 %v7037_v5  ;;  %v90_v5 = vld [vmem:[#allocation5 + $0x128] sm:$0xff] }
  0xe3   :  { %3849 = vmatpush1.bf16.msra.mxu0 %v7038_v31  ;;  %v2800_v31 = vand.u32 4294901760, %v84_v13 }
  0xe4   :  { %3851 = vmatprep.subr.bf16.mxu0 %v7039_v54  ;;  %v2796_v54 = vand.u32 4294901760, %v76_v50 }
  0xe5   :  { %4041 = vmatpush1.bf16.msra.mxu1 %v7044_v52  ;;  %v75_v52 = vld [vmem:[#allocation5 + $0xb0] sm:$0xff] }
  0xe6   :  { %4043 = vmatprep.subr.bf16.mxu1 %v7045_v43  ;;  %v7056_v43 = vld [vmem:[#allocation57_spill] sm:$0xff] }
  0xe7   :  { %3853 = vmatpush1.bf16.msra.mxu0 %v7046_v59  ;;  %v81_v59 = vld [vmem:[#allocation5 + $0xe0] sm:$0xff] }
  0xe8   :  { %3855 = vmatprep.subr.bf16.mxu0 %v3854_v30  ;;  %v7053_v30 = vld [vmem:[#allocation54_spill] sm:$0xff] }
  0xe9   :  { %4045 = vmatpush1.bf16.msra.mxu1 %v7047_v41  ;;  %v73_v41 = vld [vmem:[#allocation5 + $0xa0] sm:$0xff] }
  0xea   :  { %800 = vmatmul.mubr.f32.vlgmr.msra.gmra.mrb[0].mxu0 %v7048_v34  ;;  %4047 = vmatprep.subr.bf16.mxu1 %v5245_v25  ;;  %v66_v25 = vld [vmem:[#allocation5 + $0x68] sm:$0xff] }
  0xeb   :  { %3857 = vmatpush1.bf16.msra.mxu0 %v5252_v27  ;;  %966 = vmatprep.mubr.f32.mxu0 %v6917_v7  ;;  %v58_v27 = vld [vmem:[#allocation5 + $0x28] sm:$0xff] }
  0xec   :  { %3859 = vmatprep.subr.bf16.mxu0 %v5264_v18  ;;  %1655 = vmatmul.mubr.f32.vlgmr.msra.gmra.mrb[0].mxu1 %v7048_v34  ;;  %v68_v18 = vld [vmem:[#allocation5 + $0x78] sm:$0xff] }
  0xed   :  { %4049 = vmatpush1.bf16.msra.mxu1 %v5258_v48  ;;  %1821 = vmatprep.mubr.f32.mxu1 %v6917_v7  ;;  %v60_v48 = vld [vmem:[#allocation5 + $0x38] sm:$0xff] }
  0xee   :  { %4051 = vmatprep.subr.bf16.mxu1 %v5270_v4  ;;  %v57_v4 = vld [vmem:[#allocation5 + $0x20] sm:$0xff] }
  0xef   :  { %3861 = vmatpush1.bf16.msra.mxu0 %v5276_v11  ;;  %v65_v11 = vld [vmem:[#allocation5 + $0x60] sm:$0xff] }
  0xf0   :  { %3863 = vmatprep.subr.bf16.mxu0 %v5288_v51  ;;  %v1937_v51 = vand.u32 4294901760, %v66_v25 }
  0xf1   :  { %4053 = vmatpush1.bf16.msra.mxu1 %v5282_v0  ;;  %v1933_v0 = vand.u32 4294901760, %v58_v27 }
  0xf2   :  { %4055 = vmatprep.subr.bf16.mxu1 %v5294_v62  ;;  %v2788_v62 = vand.u32 4294901760, %v60_v48  ;;  %v5528_v34 = vsub.f32 %v66_v25, %v1937_v51  ;;  %v7061_v25 = vld [vmem:[#allocation15_spill] sm:$0xff] }
  0xf3   :  { %3865 = vmatpush1.bf16.msra.mxu0 %v5300_v6  ;;  %v2792_v6 = vand.u32 4294901760, %v68_v18  ;;  %v5525_v36 = vsub.f32 %v58_v27, %v1933_v0 }
  0xf4   :  { %3867 = vmatprep.subr.bf16.mxu0 %v5312_v38  ;;  %v59_v38 = vld [vmem:[#allocation5 + $0x30] sm:$0xff]  ;;  %7054 = vst [vmem:[#allocation38_spill] sm:$0xff] %v5528_v34  ;;  %v5534_v27 = vsub.f32 %v60_v48, %v2788_v62 }
  0xf5   :  { %4057 = vmatpush1.bf16.msra.mxu1 %v5306_v16  ;;  %v67_v16 = vld [vmem:[#allocation5 + $0x70] sm:$0xff]  ;;  %7052 = vst [vmem:[#allocation34_spill] sm:$0xff] %v5525_v36  ;;  %v2790_v57 = vand.u32 4294901760, %v59_v38 }
  0xf6   :  { %4059 = vmatprep.subr.bf16.mxu1 %v5318_v32  ;;  %v1935_v32 = vand.u32 4294901760, %v57_v4  ;;  %7058 = vst [vmem:[#allocation43_spill] sm:$0xff] %v5534_v27  ;;  %v7080_v27 = vld [vmem:[#allocation36_spill] sm:$0xff] }
  0xf7   :  { %3869 = vmatpush1.bf16.msra.mxu0 %v5324_v17  ;;  %v1939_v17 = vand.u32 4294901760, %v65_v11  ;;  %v5547_v48 = vsub.f32 %v59_v38, %v2790_v57  ;;  %v5558_v38 = vsub.f32 %v82_v21, %v1945_v29 }
  0xf8   :  { %3871 = vmatprep.subr.bf16.mxu0 %v5336_v2  ;;  %v5523_v2 = vpack.c.bf16 %v1937_v51, %v1933_v0  ;;  %v5536_v0 = vsub.f32 %v68_v18, %v2792_v6  ;;  %v5541_v51 = vsub.f32 %v57_v4, %v1935_v32  ;;  %v1943_v18 = vand.u32 4294901760, %v73_v41 }
  0xf9   :  { %4061 = vmatpush1.bf16.msra.mxu1 %v5330_v40  ;;  %v2794_v40 = vand.u32 4294901760, %v67_v16  ;;  %7065 = vst [vmem:[#allocation52_spill] sm:$0xff] %v5547_v48  ;;  %v2798_v4 = vand.u32 4294901760, %v75_v52  ;;  %7072 = vst [vmem:[#allocation68_spill] sm:$0xff] %v5558_v38  ;;  %v89_v48 = vld [vmem:[#allocation5 + $0x120] sm:$0xff]  ;;  %v106_v38 = vld [vmem:[#allocation5 + $0x1a8] sm:$0xff] }
  0xfa   :  { %4063 = vmatprep.subr.bf16.mxu1 %v5342_v37  ;;  %7051 = vst [vmem:[#allocation33_spill] sm:$0xff] %v5523_v2  ;;  %v5530_v37 = vpack.c.bf16 %v2792_v6, %v2788_v62  ;;  %7059 = vst [vmem:[#allocation45_spill] sm:$0xff] %v5536_v0  ;;  %v5538_v2 = vpack.c.bf16 %v1939_v17, %v1935_v32  ;;  %v1947_v62 = vand.u32 4294901760, %v81_v59  ;;  %v7066_v6 = vld [vmem:[#allocation60_spill] sm:$0xff] }
  0xfb   :  { %3873 = vmatpush1.bf16.msra.mxu0 %v7049_v44  ;;  %v1941_v44 = vand.u32 4294901760, %v74_v23  ;;  %7062 = vst [vmem:[#allocation48_spill] sm:$0xff] %v5541_v51  ;;  %v5545_v19 = vpack.c.bf16 %v2794_v40, %v2790_v57  ;;  %v1949_v57 = vand.u32 4294901760, %v90_v5  ;;  %v5567_v0 = vsub.f32 %v73_v41, %v1943_v18 }
  0xfc   :  { %3875 = vmatprep.subr.bf16.mxu0 %v7050_v46  ;;  %7055 = vst [vmem:[#allocation42_spill] sm:$0xff] %v5530_v37  ;;  %v7057_v46 = vld [vmem:[#allocation58_spill] sm:$0xff]  ;;  %7060 = vst [vmem:[#allocation46_spill] sm:$0xff] %v5538_v2  ;;  %v5543_v37 = vsub.f32 %v65_v11, %v1939_v17  ;;  %v92_v11 = vld [vmem:[#allocation5 + $0x138] sm:$0xff] }
  0xfd   :  { %4065 = vmatpush1.bf16.msra.mxu1 %v7053_v30  ;;  %v83_v30 = vld [vmem:[#allocation5 + $0xf0] sm:$0xff]  ;;  %7064 = vst [vmem:[#allocation50_spill] sm:$0xff] %v5545_v19  ;;  %v5552_v2 = vpack.c.bf16 %v1945_v29, %v1941_v44  ;;  %v100_v17 = vld [vmem:[#allocation5 + $0x178] sm:$0xff]  ;;  %v5556_v51 = vsub.f32 %v74_v23, %v1941_v44  ;;  %7077 = vst [vmem:[#allocation75_spill] sm:$0xff] %v5567_v0  ;;  %v5569_v23 = vpack.c.bf16 %v1947_v62, %v1943_v18 }
  0xfe   :  { %4067 = vmatprep.subr.bf16.mxu1 %v7056_v43  ;;  %7063 = vst [vmem:[#allocation49_spill] sm:$0xff] %v5543_v37  ;;  %v98_v43 = vld [vmem:[#allocation5 + $0x168] sm:$0xff]  ;;  %v2802_v32 = vand.u32 4294901760, %v83_v30  ;;  %v5571_v29 = vsub.f32 %v81_v59, %v1947_v62  ;;  %v2804_v21 = vand.u32 4294901760, %v92_v11  ;;  %v2808_v44 = vand.u32 4294901760, %v100_v17  ;;  %v108_v62 = vld [vmem:[#allocation5 + $0x1b8] sm:$0xff] }
  0xff   :  { %3877 = vmatpush1.bf16.msra.mxu0 %v7057_v46  ;;  %v5550_v46 = vsub.f32 %v67_v16, %v2794_v40  ;;  %7068 = vst [vmem:[#allocation62_spill] sm:$0xff] %v5552_v2  ;;  %v7070_v37 = vld [vmem:[#allocation19_spill] sm:$0xff]  ;;  %7071 = vst [vmem:[#allocation67_spill] sm:$0xff] %v5556_v51  ;;  %v1953_v19 = vand.u32 4294901760, %v98_v43  ;;  %v7073_v16 = vld [vmem:[#allocation37_spill] sm:$0xff]  ;;  %v5561_v40 = vpack.c.bf16 %v2800_v31, %v2796_v54 }
 0x100   :  { %3879 = vmatprep.subr.bf16.mxu0 %v7061_v25  ;;  %v7069_v25 = vld [vmem:[#allocation17_spill] sm:$0xff]  ;;  %v5563_v2 = vsub.f32 %v76_v50, %v2796_v54  ;;  %7078 = vst [vmem:[#allocation76_spill] sm:$0xff] %v5569_v23  ;;  %7079 = vst [vmem:[#allocation12_spill] sm:$0xff] %v5571_v29  ;;  %v114_v51 = vld [vmem:[#allocation5 + $0x1e8] sm:$0xff]  ;;  %v5576_v54 = vsub.f32 %v75_v52, %v2798_v4  ;;  %v5580_v41 = vsub.f32 %v83_v30, %v2802_v32 }
 0x101   :  { %4069 = vmatpush1.bf16.msra.mxu1 %v7066_v6  ;;  %7067 = vst [vmem:[#allocation61_spill] sm:$0xff] %v5550_v46  ;;  %v97_v6 = vld [vmem:[#allocation5 + $0x160] sm:$0xff]  ;;  %7074 = vst [vmem:[#allocation70_spill] sm:$0xff] %v5561_v40  ;;  %v5565_v46 = vsub.f32 %v84_v13, %v2800_v31  ;;  %v1951_v31 = vand.u32 4294901760, %v89_v48  ;;  %v5582_v59 = vpack.c.bf16 %v1953_v19, %v1949_v57  ;;  %v116_v23 = vld [vmem:[#allocation5 + $0x1f8] sm:$0xff] }
 0x102   :  { %4071 = vmatprep.subr.bf16.mxu1 %v7069_v25  ;;  %7075 = vst [vmem:[#allocation72_spill] sm:$0xff] %v5563_v2  ;;  %v91_v25 = vld [vmem:[#allocation5 + $0x130] sm:$0xff]  ;;  %7082 = vst [vmem:[#allocation18_spill] sm:$0xff] %v5576_v54  ;;  %v1955_v50 = vand.u32 4294901760, %v97_v6  ;;  %v5587_v52 = vsub.f32 %v98_v43, %v1953_v19  ;;  %v105_v40 = vld [vmem:[#allocation5 + $0x1a0] sm:$0xff]  ;;  %v5589_v54 = vpack.c.bf16 %v2808_v44, %v2804_v21  ;;  %v2812_v43 = vand.u32 4294901760, %v108_v62 }
 0x103   :  { %3881 = vmatpush1.bf16.msra.mxu0 %v7070_v37  ;;  %7076 = vst [vmem:[#allocation73_spill] sm:$0xff] %v5565_v46  ;;  %v99_v37 = vld [vmem:[#allocation5 + $0x170] sm:$0xff]  ;;  %7083 = vst [vmem:[#allocation21_spill] sm:$0xff] %v5580_v41  ;;  %v2806_v13 = vand.u32 4294901760, %v91_v25  ;;  %v5593_v30 = vsub.f32 %v100_v17, %v2808_v44  ;;  %v1959_v17 = vand.u32 4294901760, %v105_v40 }
 0x104   :  { %3883 = vmatprep.subr.bf16.mxu0 %v7073_v16  ;;  %v5574_v16 = vpack.c.bf16 %v2802_v32, %v2798_v4  ;;  %7084 = vst [vmem:[#allocation20_spill] sm:$0xff] %v5582_v59  ;;  %v2810_v18 = vand.u32 4294901760, %v99_v37  ;;  %7086 = vst [vmem:[#allocation23_spill] sm:$0xff] %v5587_v52  ;;  %v1957_v4 = vand.u32 4294901760, %v106_v38  ;;  %v5595_v32 = vsub.f32 %v89_v48, %v1951_v31  ;;  %v107_v59 = vld [vmem:[#allocation5 + $0x1b0] sm:$0xff]  ;;  %v122_v52 = vld [vmem:[#allocation5 + $0x228] sm:$0xff] }
 0x105   :  { %4073 = vmatpush1.bf16.msra.mxu1 %v7080_v27  ;;  %v5585_v27 = vsub.f32 %v90_v5, %v1949_v57  ;;  %7087 = vst [vmem:[#allocation25_spill] sm:$0xff] %v5589_v54  ;;  %7089 = vst [vmem:[#allocation26_spill] sm:$0xff] %v5593_v30  ;;  %v115_v41 = vld [vmem:[#allocation5 + $0x1f0] sm:$0xff]  ;;  %v5599_v19 = vpack.c.bf16 %v1955_v50, %v1951_v31  ;;  %v5601_v5 = vsub.f32 %v97_v6, %v1955_v50  ;;  %v130_v54 = vld [vmem:[#allocation5 + $0x268] sm:$0xff] }
 0x106   :  { %7081 = vst [vmem:[#allocation16_spill] sm:$0xff] %v5574_v16  ;;  %4075 = vmatprep.subr.bf16.mxu1 %v5414_v9  ;;  %v1961_v16 = vand.u32 4294901760, %v114_v51  ;;  %v113_v9 = vld [vmem:[#allocation5 + $0x1e0] sm:$0xff]  ;;  %7090 = vst [vmem:[#allocation27_spill] sm:$0xff] %v5595_v32  ;;  %v2816_v57 = vand.u32 4294901760, %v116_v23  ;;  %v5605_v48 = vpack.c.bf16 %v2810_v18, %v2806_v13  ;;  %v5611_v6 = vsub.f32 %v99_v37, %v2810_v18  ;;  %v124_v50 = vld [vmem:[#allocation5 + $0x238] sm:$0xff] }
 0x107   :  { %3885 = vmatpush1.bf16.msra.mxu0 %v5420_v53  ;;  %7085 = vst [vmem:[#allocation22_spill] sm:$0xff] %v5585_v27  ;;  %v5591_v53 = vsub.f32 %v92_v11, %v2804_v21  ;;  %7092 = vst [vmem:[#allocation29_spill] sm:$0xff] %v5599_v19  ;;  %v5607_v11 = vsub.f32 %v91_v25, %v2806_v13  ;;  %v2814_v44 = vand.u32 4294901760, %v107_v59  ;;  %v2818_v31 = vand.u32 4294901760, %v115_v41  ;;  %v129_v19 = vld [vmem:[#allocation5 + $0x260] sm:$0xff] }
 0x108   :  { %3887 = vmatprep.subr.bf16.mxu0 %v7011_v1  ;;  %v7091_v1 = vld [vmem:[#allocation77_spill] sm:$0xff]  ;;  %7093 = vst [vmem:[#allocation28_spill] sm:$0xff] %v5601_v5  ;;  %7094 = vst [vmem:[#allocation30_spill] sm:$0xff] %v5605_v48  ;;  %v5613_v21 = vpack.c.bf16 %v1961_v16, %v1957_v4  ;;  %v5618_v25 = vsub.f32 %v114_v51, %v1961_v16  ;;  %v1965_v13 = vand.u32 4294901760, %v122_v52  ;;  %v1969_v48 = vand.u32 4294901760, %v130_v54 }
 0x109   :  { %7088 = vst [vmem:[#allocation24_spill] sm:$0xff] %v5591_v53  ;;  %4077 = vmatpush1.bf16.msra.mxu1 %v5428_v42  ;;  %7095 = vst [vmem:[#allocation31_spill] sm:$0xff] %v5607_v11  ;;  %v1963_v42 = vand.u32 4294901760, %v113_v9  ;;  %v5624_v37 = vsub.f32 %v108_v62, %v2812_v43  ;;  %v5626_v18 = vsub.f32 %v116_v23, %v2816_v57 }
 0x10a   :  { %968 = vmatmul.mubr.f32.vlgmr.msra.gmra.mrb[0].mxu0 %v7091_v1  ;;  %4079 = vmatprep.subr.bf16.mxu1 %v7013_v55  ;;  %7096 = vst [vmem:[#allocation35_spill] sm:$0xff] %v5611_v6  ;;  %7097 = vst [vmem:[#allocation32_spill] sm:$0xff] %v5613_v21  ;;  %v132_v55 = vld [vmem:[#allocation5 + $0x278] sm:$0xff]  ;;  %v121_v21 = vld [vmem:[#allocation5 + $0x220] sm:$0xff]  ;;  %v5637_v62 = vpack.c.bf16 %v2818_v31, %v2814_v44 }
 0x10b   :  { %3889 = vmatpush1.bf16.msra.mxu0 %v7014_v3  ;;  %1070 = vmatprep.mubr.f32.mxu0 %v6917_v7  ;;  %v5616_v3 = vsub.f32 %v106_v38, %v1957_v4  ;;  %7099 = vst [vmem:[#allocation41_spill] sm:$0xff] %v5618_v25  ;;  %7101 = vst [vmem:[#allocation44_spill] sm:$0xff] %v5624_v37  ;;  %v123_v6 = vld [vmem:[#allocation5 + $0x230] sm:$0xff]  ;;  %v5630_v51 = vpack.c.bf16 %v1963_v42, %v1959_v17  ;;  %v2824_v16 = vand.u32 4294901760, %v132_v55  ;;  %v138_v25 = vld [vmem:[#allocation5 + $0x2a8] sm:$0xff] }
 0x10c   :  { %3891 = vmatprep.subr.bf16.mxu0 %v7015_v33  ;;  %1823 = vmatmul.mubr.f32.vlgmr.msra.gmra.mrb[0].mxu1 %v7091_v1  ;;  %v5622_v33 = vpack.c.bf16 %v2816_v57, %v2812_v43  ;;  %7102 = vst [vmem:[#allocation51_spill] sm:$0xff] %v5626_v18  ;;  %v5632_v38 = vsub.f32 %v105_v40, %v1959_v17  ;;  %v131_v4 = vld [vmem:[#allocation5 + $0x270] sm:$0xff]  ;;  %7106 = vst [vmem:[#allocation14_spill] sm:$0xff] %v5637_v62  ;;  %v1967_v40 = vand.u32 4294901760, %v121_v21  ;;  %v148_v18 = vld [vmem:[#allocation5 + $0x2f8] sm:$0xff] }
 0x10d   :  { %7098 = vst [vmem:[#allocation39_spill] sm:$0xff] %v5616_v3  ;;  %4081 = vmatpush1.bf16.msra.mxu1 %v7016_v20  ;;  %1925 = vmatprep.mubr.f32.mxu1 %v6917_v7  ;;  %7103 = vst [vmem:[#allocation53_spill] sm:$0xff] %v5630_v51  ;;  %v2820_v20 = vand.u32 4294901760, %v124_v50  ;;  %v5635_v23 = vsub.f32 %v113_v9, %v1963_v42  ;;  %v5639_v43 = vsub.f32 %v107_v59, %v2814_v44  ;;  %v145_v62 = vld [vmem:[#allocation5 + $0x2e0] sm:$0xff] }
 0x10e   :  { %7100 = vst [vmem:[#allocation47_spill] sm:$0xff] %v5622_v33  ;;  %4083 = vmatprep.subr.bf16.mxu1 %v7017_v47  ;;  %7104 = vst [vmem:[#allocation59_spill] sm:$0xff] %v5632_v38  ;;  %v146_v33 = vld [vmem:[#allocation5 + $0x2e8] sm:$0xff]  ;;  %v5641_v47 = vsub.f32 %v115_v41, %v2818_v31  ;;  %v5645_v57 = vsub.f32 %v122_v52, %v1965_v13  ;;  %v1971_v17 = vand.u32 4294901760, %v129_v19  ;;  %v140_v38 = vld [vmem:[#allocation5 + $0x2b8] sm:$0xff]  ;;  %v2822_v37 = vand.u32 4294901760, %v123_v6 }
 0x10f   :  { %3893 = vmatpush1.bf16.msra.mxu0 %v7018_v49  ;;  %7105 = vst [vmem:[#allocation13_spill] sm:$0xff] %v5635_v23  ;;  %7107 = vst [vmem:[#allocation40_spill] sm:$0xff] %v5639_v43  ;;  %v5643_v49 = vpack.c.bf16 %v1969_v48, %v1965_v13  ;;  %v1973_v9 = vand.u32 4294901760, %v138_v25  ;;  %v1977_v42 = vand.u32 4294901760, %v146_v33  ;;  %v137_v23 = vld [vmem:[#allocation5 + $0x2a0] sm:$0xff]  ;;  %v5650_v41 = vsub.f32 %v130_v54, %v1969_v48  ;;  %v154_v48 = vld [vmem:[#allocation5 + $0x328] sm:$0xff] }
 0x110   :  { %3895 = vmatprep.subr.bf16.mxu0 %v7019_v56  ;;  %7108 = vst [vmem:[#allocation55_spill] sm:$0xff] %v5641_v47  ;;  %7110 = vst [vmem:[#allocation57_spill] sm:$0xff] %v5645_v57  ;;  %v2826_v56 = vand.u32 4294901760, %v131_v4  ;;  %v5652_v59 = vpack.c.bf16 %v2824_v16, %v2820_v20  ;;  %v5654_v52 = vsub.f32 %v124_v50, %v2820_v20  ;;  %v2828_v31 = vand.u32 4294901760, %v140_v38  ;;  %v139_v57 = vld [vmem:[#allocation5 + $0x2b0] sm:$0xff]  ;;  %v156_v20 = vld [vmem:[#allocation5 + $0x338] sm:$0xff] }
 0x111   :  { %7109 = vst [vmem:[#allocation54_spill] sm:$0xff] %v5643_v49  ;;  %4085 = vmatpush1.bf16.msra.mxu1 %v7020_v63  ;;  %7111 = vst [vmem:[#allocation58_spill] sm:$0xff] %v5650_v41  ;;  %v5657_v44 = vsub.f32 %v132_v55, %v2824_v16  ;;  %v5659_v63 = vsub.f32 %v121_v21, %v1967_v40  ;;  %v2832_v13 = vand.u32 4294901760, %v148_v18  ;;  %v147_v47 = vld [vmem:[#allocation5 + $0x2f0] sm:$0xff]  ;;  %v1979_v54 = vand.u32 4294901760, %v145_v62  ;;  %v162_v41 = vld [vmem:[#allocation5 + $0x368] sm:$0xff] }
 0x112   :  { %4087 = vmatprep.subr.bf16.mxu1 %v7021_v39  ;;  %7112 = vst [vmem:[#allocation15_spill] sm:$0xff] %v5652_v59  ;;  %v5661_v43 = vpack.c.bf16 %v1971_v17, %v1967_v40  ;;  %v5663_v39 = vsub.f32 %v129_v19, %v1971_v17  ;;  %v5666_v50 = vpack.c.bf16 %v2826_v56, %v2822_v37  ;;  %v164_v16 = vld [vmem:[#allocation5 + $0x378] sm:$0xff]  ;;  %v153_v40 = vld [vmem:[#allocation5 + $0x320] sm:$0xff]  ;;  %v1985_v59 = vand.u32 4294901760, %v162_v41 }
 0x113   :  { %3897 = vmatpush1.bf16.msra.mxu0 %v7022_v12  ;;  %v1975_v12 = vand.u32 4294901760, %v137_v23  ;;  %v5670_v21 = vsub.f32 %v131_v4, %v2826_v56  ;;  %v5672_v55 = vpack.c.bf16 %v1977_v42, %v1973_v9  ;;  %v5676_v19 = vsub.f32 %v138_v25, %v1973_v9 }
 0x114   :  { %3899 = vmatprep.subr.bf16.mxu0 %v7023_v15  ;;  %7113 = vst [vmem:[#allocation60_spill] sm:$0xff] %v5661_v43  ;;  %7114 = vst [vmem:[#allocation17_spill] sm:$0xff] %v5666_v50  ;;  %v5668_v15 = vsub.f32 %v123_v6, %v2822_v37  ;;  %v5678_v17 = vsub.f32 %v146_v33, %v1977_v42  ;;  %v2834_v43 = vand.u32 4294901760, %v147_v47  ;;  %v161_v50 = vld [vmem:[#allocation5 + $0x360] sm:$0xff]  ;;  %v155_v6 = vld [vmem:[#allocation5 + $0x330] sm:$0xff]  ;;  %v2836_v25 = vand.u32 4294901760, %v156_v20 }
 0x115   :  { %4089 = vmatpush1.bf16.msra.mxu1 %v7024_v35  ;;  %7115 = vst [vmem:[#allocation19_spill] sm:$0xff] %v5672_v55  ;;  %7116 = vst [vmem:[#allocation37_spill] sm:$0xff] %v5676_v19  ;;  %v2830_v35 = vand.u32 4294901760, %v139_v57  ;;  %v163_v37 = vld [vmem:[#allocation5 + $0x370] sm:$0xff]  ;;  %v5681_v4 = vpack.c.bf16 %v2832_v13, %v2828_v31  ;;  %v5683_v56 = vsub.f32 %v140_v38, %v2828_v31  ;;  %v1981_v55 = vand.u32 4294901760, %v154_v48 }
 0x116   :  { %4091 = vmatprep.subr.bf16.mxu1 %v7025_v45  ;;  %7117 = vst [vmem:[#allocation36_spill] sm:$0xff] %v5678_v17  ;;  %v5685_v45 = vsub.f32 %v148_v18, %v2832_v13  ;;  %v2840_v33 = vand.u32 4294901760, %v164_v16  ;;  %v1983_v9 = vand.u32 4294901760, %v153_v40  ;;  %v1987_v42 = vand.u32 4294901760, %v161_v50 }
 0x117   :  { %3901 = vmatpush1.bf16.msra.mxu0 %v7026_v22  ;;  %7118 = vst [vmem:[#allocation81_spill] sm:$0xff] %v5681_v4  ;;  %v5687_v22 = vpack.c.bf16 %v1979_v54, %v1975_v12  ;;  %v2838_v17 = vand.u32 4294901760, %v155_v6  ;;  %v2842_v19 = vand.u32 4294901760, %v163_v37  ;;  %v5694_v38 = vsub.f32 %v145_v62, %v1979_v54  ;;  %v170_v4 = vld [vmem:[#allocation5 + $0x3a8] sm:$0xff]  ;;  %v180_v54 = vld [vmem:[#allocation5 + $0x3f8] sm:$0xff] }
 0x118   :  { %3903 = vmatprep.subr.bf16.mxu0 %v7027_v24  ;;  %7119 = vst [vmem:[#allocation82_spill] sm:$0xff] %v5685_v45  ;;  %v5692_v24 = vsub.f32 %v137_v23, %v1975_v12  ;;  %v5696_v18 = vpack.c.bf16 %v2834_v43, %v2830_v35  ;;  %v5699_v31 = vsub.f32 %v139_v57, %v2830_v35  ;;  %v172_v12 = vld [vmem:[#allocation5 + $0x3b8] sm:$0xff]  ;;  %v7145_v35 = vld [vmem:[#allocation64_spill] sm:$0xff] }
 0x119   :  { %7120 = vst [vmem:[#allocation83_spill] sm:$0xff] %v5687_v22  ;;  %4093 = vmatpush1.bf16.msra.mxu1 %v7028_v8  ;;  %7122 = vst [vmem:[#allocation85_spill] sm:$0xff] %v5694_v38  ;;  %v5701_v13 = vsub.f32 %v147_v47, %v2834_v43  ;;  %v5703_v8 = vpack.c.bf16 %v1985_v59, %v1981_v55  ;;  %v5705_v22 = vsub.f32 %v154_v48, %v1981_v55 }
 0x11a   :  { %4095 = vmatprep.subr.bf16.mxu1 %v7029_v26  ;;  %7121 = vst [vmem:[#allocation84_spill] sm:$0xff] %v5692_v24  ;;  %7123 = vst [vmem:[#allocation86_spill] sm:$0xff] %v5696_v18  ;;  %v178_v26 = vld [vmem:[#allocation5 + $0x3e8] sm:$0xff]  ;;  %v5707_v45 = vsub.f32 %v162_v41, %v1985_v59  ;;  %v5711_v23 = vsub.f32 %v156_v20, %v2836_v25  ;;  %v5713_v62 = vsub.f32 %v164_v16, %v2840_v33  ;;  %v169_v41 = vld [vmem:[#allocation5 + $0x3a0] sm:$0xff] }
 0x11b   :  { %3905 = vmatpush1.bf16.msra.mxu0 %v7030_v60  ;;  %7124 = vst [vmem:[#allocation87_spill] sm:$0xff] %v5699_v31  ;;  %7125 = vst [vmem:[#allocation88_spill] sm:$0xff] %v5701_v13  ;;  %v5709_v60 = vpack.c.bf16 %v2840_v33, %v2836_v25  ;;  %v5718_v43 = vsub.f32 %v153_v40, %v1983_v9  ;;  %v5720_v47 = vsub.f32 %v161_v50, %v1987_v42  ;;  %v177_v20 = vld [vmem:[#allocation5 + $0x3e0] sm:$0xff]  ;;  %v171_v16 = vld [vmem:[#allocation5 + $0x3b0] sm:$0xff] }
 0x11c   :  { %3907 = vmatprep.subr.bf16.mxu0 %v7031_v10  ;;  %7126 = vst [vmem:[#allocation89_spill] sm:$0xff] %v5703_v8  ;;  %7127 = vst [vmem:[#allocation90_spill] sm:$0xff] %v5705_v22  ;;  %v5716_v10 = vpack.c.bf16 %v1987_v42, %v1983_v9  ;;  %v5722_v57 = vpack.c.bf16 %v2842_v19, %v2838_v17  ;;  %v5726_v59 = vsub.f32 %v155_v6, %v2838_v17  ;;  %v179_v50 = vld [vmem:[#allocation5 + $0x3f0] sm:$0xff]  ;;  %v7138_v25 = vld [vmem:[#allocation43_spill] sm:$0xff] }
 0x11d   :  { %7128 = vst [vmem:[#allocation91_spill] sm:$0xff] %v5707_v45  ;;  %7129 = vst [vmem:[#allocation92_spill] sm:$0xff] %v5709_v60  ;;  %4097 = vmatpush1.bf16.msra.mxu1 %v7032_v14  ;;  %v5728_v48 = vsub.f32 %v163_v37, %v2842_v19  ;;  %v1989_v14 = vand.u32 4294901760, %v170_v4  ;;  %v1993_v55 = vand.u32 4294901760, %v178_v26  ;;  %v2844_v17 = vand.u32 4294901760, %v172_v12  ;;  %v7141_v37 = vld [vmem:[#allocation56_spill] sm:$0xff] }
 0x11e   :  { %7130 = vst [vmem:[#allocation93_spill] sm:$0xff] %v5711_v23  ;;  %7131 = vst [vmem:[#allocation94_spill] sm:$0xff] %v5713_v62  ;;  %4099 = vmatprep.subr.bf16.mxu1 %v7033_v28  ;;  %v7139_v28 = vld [vmem:[#allocation45_spill] sm:$0xff]  ;;  %v2848_v19 = vand.u32 4294901760, %v180_v54  ;;  %v1991_v6 = vand.u32 4294901760, %v169_v41  ;;  %v1995_v42 = vand.u32 4294901760, %v177_v20 }
 0x11f   :  { %7132 = vst [vmem:[#allocation95_spill] sm:$0xff] %v5716_v10  ;;  %7133 = vst [vmem:[#allocation96_spill] sm:$0xff] %v5718_v43  ;;  %3909 = vmatpush1.bf16.msra.mxu0 %v7034_v58  ;;  %v5735_v58 = vsub.f32 %v170_v4, %v1989_v14  ;;  %v7142_v10 = vld [vmem:[#allocation48_spill] sm:$0xff]  ;;  %v7143_v60 = vld [vmem:[#allocation49_spill] sm:$0xff]  ;;  %v5742_v33 = vpack.c.bf16 %v1993_v55, %v1989_v14  ;;  %v2850_v9 = vand.u32 4294901760, %v179_v50 }
 0x120   :  { %7134 = vst [vmem:[#allocation97_spill] sm:$0xff] %v5720_v47  ;;  %7135 = vst [vmem:[#allocation98_spill] sm:$0xff] %v5722_v57  ;;  %3911 = vmatprep.subr.bf16.mxu0 %v7035_v61  ;;  %v2846_v57 = vand.u32 4294901760, %v171_v16  ;;  %v7144_v40 = vld [vmem:[#allocation63_spill] sm:$0xff]  ;;  %v7147_v4 = vld [vmem:[#allocation52_spill] sm:$0xff]  ;;  %v7151_v61 = vand.u32 4294901760, %v5528_v34  ;;  %v5765_v62 = vsub.f32 %v180_v54, %v2848_v19  ;;  %v5779_v54 = vsub.f32 %v169_v41, %v1991_v6 }
 0x121   :  { %7136 = vst [vmem:[#allocation99_spill] sm:$0xff] %v5726_v59  ;;  %7137 = vst [vmem:[#allocation100_spill] sm:$0xff] %v5728_v48  ;;  %4101 = vmatpush1.bf16.msra.mxu1 %v7141_v37  ;;  %v7148_v48 = vld [vmem:[#allocation61_spill] sm:$0xff]  ;;  %v7149_v47 = vld [vmem:[#allocation66_spill] sm:$0xff]  ;;  %v7150_v37 = vand.u32 4294901760, %v5525_v36  ;;  %v5761_v59 = vpack.c.bf16 %v2848_v19, %v2844_v17  ;;  %v5793_v41 = vsub.f32 %v177_v20, %v1995_v42 }
 0x122   :  { %7140 = vst [vmem:[#allocation101_spill] sm:$0xff] %v5735_v58  ;;  %4103 = vmatprep.subr.bf16.mxu1 %v7144_v40  ;;  %7146 = vst [vmem:[#allocation56_spill] sm:$0xff] %v5742_v33  ;;  %v2056_v18 = vsub.f32 %v5528_v34, %v7151_v61  ;;  %v7152_v40 = vand.u32 4294901760, %v7138_v25  ;;  %v5759_v33 = vsub.f32 %v178_v26, %v1993_v55  ;;  %v7157_v61 = vand.u32 4294901760, %v7142_v10  ;;  %v7159_v26 = vld [vmem:[#allocation67_spill] sm:$0xff]  ;;  %v7169_v20 = vld [vmem:[#allocation42_spill] sm:$0xff] }
 0x123   :  { %3913 = vmatpush1.bf16.msra.mxu0 %v7145_v35  ;;  %v2044_v43 = vsub.f32 %v5525_v36, %v7150_v37  ;;  %v7153_v35 = vand.u32 4294901760, %v7139_v28  ;;  %7154 = vst [vmem:[#allocation63_spill] sm:$0xff] %v5761_v59  ;;  %v7155_v37 = vld [vmem:[#allocation65_spill] sm:$0xff]  ;;  %v5768_v36 = vpack.c.bf16 %v1995_v42, %v1991_v6  ;;  %v5795_v6 = vpack.c.bf16 %v2850_v9, %v2846_v57 }
 0x124   :  { %3915 = vmatprep.subr.bf16.mxu0 %v7149_v47  ;;  %v2899_v14 = vsub.f32 %v7138_v25, %v7152_v40  ;;  %v5763_v47 = vsub.f32 %v172_v12, %v2844_v17  ;;  %v2050_v40 = vsub.f32 %v7142_v10, %v7157_v61  ;;  %v7158_v25 = vand.u32 4294901760, %v7143_v60  ;;  %v7161_v12 = vld [vmem:[#allocation71_spill] sm:$0xff]  ;;  %v7164_v10 = vld [vmem:[#allocation68_spill] sm:$0xff] }
 0x125   :  { %v2911_v58 = vsub.f32 %v7139_v28, %v7153_v35  ;;  %4105 = vmatpush1.bf16.msra.mxu1 %v7155_v37  ;;  %7156 = vst [vmem:[#allocation64_spill] sm:$0xff] %v5768_v36  ;;  %v7160_v28 = vld [vmem:[#allocation69_spill] sm:$0xff]  ;;  %v7162_v17 = vand.u32 4294901760, %v7147_v4  ;;  %v7163_v37 = vand.u32 4294901760, %v7148_v48  ;;  %v2045_v55 = vand.u32 4294901760, %v2044_v43  ;;  %7166 = vst [vmem:[#allocation66_spill] sm:$0xff] %v5795_v6 }
 0x126   :  { %v2062_v35 = vsub.f32 %v7143_v60, %v7158_v25  ;;  %4107 = vmatprep.subr.bf16.mxu1 %v7160_v28  ;;  %v7165_v60 = vld [vmem:[#allocation33_spill] sm:$0xff]  ;;  %v2057_v28 = vand.u32 4294901760, %v2056_v18  ;;  %v2900_v34 = vand.u32 4294901760, %v2899_v14  ;;  %v7167_v36 = vld [vmem:[#allocation74_spill] sm:$0xff]  ;;  %v2051_v25 = vand.u32 4294901760, %v2050_v40 }
 0x127   :  { %3917 = vmatpush1.bf16.msra.mxu0 %v7161_v12  ;;  %v5784_v19 = vsub.f32 %v7147_v4, %v7162_v17  ;;  %v5789_v61 = vsub.f32 %v7148_v48, %v7163_v37  ;;  %v2912_v12 = vand.u32 4294901760, %v2911_v58  ;;  %v6755_v17 = vand.u32 4294901760, %v5563_v2  ;;  %v7170_v58 = vld [vmem:[#allocation46_spill] sm:$0xff] }
 0x128   :  { %4111 = vmatprep.subr.bf16.mxu0 %v7165_v60  ;;  %v5801_v37 = vsub.f32 %v171_v16, %v2846_v57  ;;  %v2063_v60 = vand.u32 4294901760, %v2062_v35  ;;  %v7168_v18 = vand.u32 4294901760, %v7159_v26  ;;  %v5808_v42 = vsub.f32 %v179_v50, %v2850_v9  ;;  %v7173_v16 = vld [vmem:[#allocation62_spill] sm:$0xff] }
 0x129   :  { %4109 = vmatpush1.bf16.msra.mxu1 %v7167_v36  ;;  %v2906_v14 = vand.u32 4294901760, %v5784_v19  ;;  %v2918_v36 = vand.u32 4294901760, %v5789_v61  ;;  %v7172_v4 = vand.u32 4294901760, %v7164_v10  ;;  %v5817_v40 = vpack.c.bf16 %v2057_v28, %v2045_v55  ;;  %v7175_v61 = vld [vmem:[#allocation18_spill] sm:$0xff]  ;;  %v7176_v55 = vld [vmem:[#allocation21_spill] sm:$0xff] }
 0x12a   :  { %1072 = vmatmul.mubr.f32.vlgmr.msra.gmra.mrb[0].mxu0 %v7091_v1  ;;  %v2068_v43 = vsub.f32 %v7159_v26, %v7168_v18  ;;  %4303 = vmatprep.subr.bf16.mxu1 %v7169_v20  ;;  %7171 = vst [vmem:[#allocation65_spill] sm:$0xff] %v5808_v42  ;;  %v5819_v35 = vpack.c.bf16 %v2912_v12, %v2900_v34  ;;  %v7177_v34 = vld [vmem:[#allocation50_spill] sm:$0xff]  ;;  %v7239_v26 = vld [vmem:[#allocation96_spill] sm:$0xff] }
 0x12b   :  { %4113 = vmatpush1.bf16.msra.mxu0 %v7170_v58  ;;  %v2080_v57 = vsub.f32 %v7164_v10, %v7172_v4  ;;  %2029 = vmatprep.mubr.f32.mxu0 %v6917_v7  ;;  %v2923_v9 = vsub.f32 %v5563_v2, %v6755_v17  ;;  %v7174_v4 = vand.u32 4294901760, %v5565_v46  ;;  %v5834_v12 = vpack.c.bf16 %v2063_v60, %v2051_v25  ;;  %v7178_v58 = vld [vmem:[#allocation23_spill] sm:$0xff]  ;;  %v7179_v17 = vld [vmem:[#allocation70_spill] sm:$0xff]  ;;  %v7180_v2 = vld [vmem:[#allocation76_spill] sm:$0xff] }
 0x12c   :  { %4115 = vmatprep.subr.bf16.mxu0 %v7173_v16  ;;  %1927 = vmatmul.mubr.f32.vlgmr.msra.gmra.mrb[0].mxu1 %v7091_v1  ;;  %v2069_v50 = vand.u32 4294901760, %v2068_v43  ;;  %v7182_v60 = vand.u32 4294901760, %v5567_v0  ;;  %v7183_v43 = vand.u32 4294901760, %v5571_v29  ;;  %v7189_v16 = vld [vmem:[#allocation35_spill] sm:$0xff]  ;;  %v7246_v10 = vand.u32 4294901760, %v5705_v22 }
 0x12d   :  { %v2935_v19 = vsub.f32 %v5565_v46, %v7174_v4  ;;  %4305 = vmatpush1.bf16.msra.mxu1 %v7177_v34  ;;  %2884 = vmatprep.mubr.f32.mxu1 %v6917_v7  ;;  %v2081_v4 = vand.u32 4294901760, %v2080_v57  ;;  %v7181_v46 = vld [vmem:[#allocation20_spill] sm:$0xff]  ;;  %v2924_v18 = vand.u32 4294901760, %v2923_v9  ;;  %v7184_v34 = vand.u32 4294901760, %v7175_v61 }
 0x12e   :  { %4307 = vmatprep.subr.bf16.mxu1 %v7179_v17  ;;  %v5847_v25 = vsub.f32 %v5567_v0, %v7182_v60  ;;  %v5852_v20 = vsub.f32 %v5571_v29, %v7183_v43  ;;  %v7186_v17 = vld [vmem:[#allocation16_spill] sm:$0xff]  ;;  %v7187_v43 = vand.u32 4294901760, %v5585_v27  ;;  %v7188_v9 = vand.u32 4294901760, %v7178_v58  ;;  %v7190_v29 = vld [vmem:[#allocation25_spill] sm:$0xff]  ;;  %v7218_v0 = vld [vmem:[#allocation82_spill] sm:$0xff] }
 0x12f   :  { %4117 = vmatpush1.bf16.msra.mxu0 %v7180_v2  ;;  %v2936_v28 = vand.u32 4294901760, %v2935_v19  ;;  %v7185_v2 = vand.u32 4294901760, %v7176_v55  ;;  %v7255_v22 = vand.u32 4294901760, %v7239_v26 }
 0x130   :  { %4119 = vmatprep.subr.bf16.mxu0 %v7181_v46  ;;  %v5859_v46 = vsub.f32 %v7175_v61, %v7184_v34  ;;  %v5870_v57 = vsub.f32 %v5585_v27, %v7187_v43  ;;  %v5875_v19 = vsub.f32 %v7178_v58, %v7188_v9  ;;  %v7193_v43 = vand.u32 4294901760, %v5593_v30  ;;  %v7195_v61 = vld [vmem:[#allocation32_spill] sm:$0xff] }
 0x131   :  { %v5864_v60 = vsub.f32 %v7176_v55, %v7185_v2  ;;  %4309 = vmatpush1.bf16.msra.mxu1 %v7186_v17  ;;  %v7191_v2 = vld [vmem:[#allocation29_spill] sm:$0xff]  ;;  %v7192_v17 = vand.u32 4294901760, %v5591_v53  ;;  %v7194_v9 = vand.u32 4294901760, %v5595_v32  ;;  %v7196_v58 = vand.u32 4294901760, %v5601_v5 }
 0x132   :  { %4311 = vmatprep.subr.bf16.mxu1 %v7190_v29  ;;  %v5889_v27 = vsub.f32 %v5593_v30, %v7193_v43  ;;  %v5897_v29 = vpack.c.bf16 %v2918_v36, %v2906_v14  ;;  %v5911_v30 = vpack.c.bf16 %v2936_v28, %v2924_v18  ;;  %v7198_v36 = vld [vmem:[#allocation30_spill] sm:$0xff]  ;;  %v7201_v28 = vld [vmem:[#allocation47_spill] sm:$0xff]  ;;  %v7206_v14 = vld [vmem:[#allocation60_spill] sm:$0xff] }
 0x133   :  { %4121 = vmatpush1.bf16.msra.mxu0 %v7191_v2  ;;  %v5884_v55 = vsub.f32 %v5591_v53, %v7192_v17  ;;  %v5894_v34 = vsub.f32 %v5595_v32, %v7194_v9  ;;  %v5899_v2 = vpack.c.bf16 %v2081_v4, %v2069_v50  ;;  %v5904_v17 = vsub.f32 %v5601_v5, %v7196_v58  ;;  %v7207_v50 = vld [vmem:[#allocation44_spill] sm:$0xff]  ;;  %v7221_v58 = vld [vmem:[#allocation59_spill] sm:$0xff] }
 0x134   :  { %4123 = vmatprep.subr.bf16.mxu0 %v7195_v61  ;;  %v7197_v53 = vand.u32 4294901760, %v5607_v11  ;;  %v7199_v4 = vand.u32 4294901760, %v7189_v16  ;;  %v7209_v61 = vand.u32 4294901760, %v5659_v63  ;;  %v7212_v9 = vand.u32 4294901760, %v5668_v15 }
 0x135   :  { %4313 = vmatpush1.bf16.msra.mxu1 %v7198_v36  ;;  %v7202_v36 = vld [vmem:[#allocation14_spill] sm:$0xff]  ;;  %v7213_v32 = vand.u32 4294901760, %v5670_v21 }
 0x136   :  { %v5909_v43 = vsub.f32 %v5607_v11, %v7197_v53  ;;  %v5922_v5 = vsub.f32 %v7189_v16, %v7199_v4  ;;  %v7200_v53 = vand.u32 4294901760, %v5616_v3  ;;  %4315 = vmatprep.subr.bf16.mxu1 %v7201_v28  ;;  %v6784_v28 = vand.u32 4294901760, %v5657_v44  ;;  %v7208_v11 = vld [vmem:[#allocation51_spill] sm:$0xff] }
 0x137   :  { %4125 = vmatpush1.bf16.msra.mxu0 %v5630_v51  ;;  %v7205_v51 = vld [vmem:[#allocation15_spill] sm:$0xff]  ;;  %v7210_v4 = vand.u32 4294901760, %v5663_v39 }
 0x138   :  { %v5927_v18 = vsub.f32 %v5616_v3, %v7200_v53  ;;  %4127 = vmatprep.subr.bf16.mxu0 %v5643_v49  ;;  %v6785_v53 = vand.u32 4294901760, %v5654_v52  ;;  %v7203_v49 = vld [vmem:[#allocation41_spill] sm:$0xff] }
 0x139   :  { %4317 = vmatpush1.bf16.msra.mxu1 %v7202_v36  ;;  %v5962_v3 = vpack.c.bf16 %v7210_v4, %v7209_v61  ;;  %v7225_v61 = vand.u32 4294901760, %v5683_v56  ;;  %v7226_v4 = vand.u32 4294901760, %v7218_v0 }
 0x13a   :  { %v5952_v16 = vpack.c.bf16 %v6784_v28, %v6785_v53  ;;  %4319 = vmatprep.subr.bf16.mxu1 %v7205_v51  ;;  %v5968_v28 = vpack.c.bf16 %v7213_v32, %v7212_v9  ;;  %v7215_v53 = vld [vmem:[#allocation19_spill] sm:$0xff]  ;;  %v7217_v51 = vld [vmem:[#allocation36_spill] sm:$0xff]  ;;  %v7219_v32 = vld [vmem:[#allocation17_spill] sm:$0xff]  ;;  %v7220_v9 = vand.u32 4294901760, %v7203_v49 }
 0x13b   :  { %4129 = vmatpush1.bf16.msra.mxu0 %v7206_v14  ;;  %7211 = vst [vmem:[#allocation71_spill] sm:$0xff] %v5962_v3  ;;  %v7223_v48 = vand.u32 4294901760, %v7217_v51  ;;  %v5996_v3 = vpack.c.bf16 %v7226_v4, %v7225_v61  ;;  %v7235_v61 = vand.u32 4294901760, %v5699_v31  ;;  %v7236_v4 = vand.u32 4294901760, %v5701_v13  ;;  %v7252_v13 = vld [vmem:[#allocation92_spill] sm:$0xff] }
 0x13c   :  { %7204 = vst [vmem:[#allocation69_spill] sm:$0xff] %v5952_v16  ;;  %7214 = vst [vmem:[#allocation74_spill] sm:$0xff] %v5968_v28  ;;  %4131 = vmatprep.subr.bf16.mxu0 %v7215_v53  ;;  %v7216_v16 = vld [vmem:[#allocation37_spill] sm:$0xff]  ;;  %v5983_v14 = vsub.f32 %v7203_v49, %v7220_v9  ;;  %v7229_v53 = vld [vmem:[#allocation83_spill] sm:$0xff]  ;;  %v7230_v9 = vand.u32 4294901760, %v7207_v50 }
 0x13d   :  { %4321 = vmatpush1.bf16.msra.mxu1 %v7219_v32  ;;  %v7222_v36 = vand.u32 4294901760, %v7216_v16  ;;  %7227 = vst [vmem:[#allocation36_spill] sm:$0xff] %v5996_v3  ;;  %v7228_v32 = vld [vmem:[#allocation81_spill] sm:$0xff]  ;;  %v6016_v3 = vpack.c.bf16 %v7236_v4, %v7235_v61  ;;  %v7243_v61 = vld [vmem:[#allocation86_spill] sm:$0xff]  ;;  %v7244_v4 = vand.u32 4294901760, %v7208_v11 }
 0x13e   :  { %4323 = vmatprep.subr.bf16.mxu1 %v7228_v32  ;;  %v6003_v28 = vsub.f32 %v7207_v50, %v7230_v9  ;;  %v7231_v49 = vld [vmem:[#allocation13_spill] sm:$0xff]  ;;  %v7238_v32 = vld [vmem:[#allocation94_spill] sm:$0xff]  ;;  %v7247_v50 = vand.u32 4294901760, %v5707_v45 }
 0x13f   :  { %v5990_v1 = vpack.c.bf16 %v7223_v48, %v7222_v36  ;;  %4133 = vmatpush1.bf16.msra.mxu0 %v7229_v53  ;;  %v7232_v48 = vand.u32 4294901760, %v5692_v24  ;;  %v7233_v36 = vand.u32 4294901760, %v5694_v38  ;;  %7237 = vst [vmem:[#allocation102_spill] sm:$0xff] %v6016_v3  ;;  %v7242_v24 = vld [vmem:[#allocation100_spill] sm:$0xff]  ;;  %v2983_v53 = vsub.f32 %v7208_v11, %v7244_v4  ;;  %v7254_v11 = vld [vmem:[#allocation55_spill] sm:$0xff] }
 0x140   :  { %4135 = vmatprep.subr.bf16.mxu0 %v5703_v8  ;;  %v7245_v3 = vld [vmem:[#allocation40_spill] sm:$0xff]  ;;  %v6036_v8 = vpack.c.bf16 %v7247_v50, %v7246_v10  ;;  %v7250_v31 = vand.u32 4294901760, %v7238_v32  ;;  %v2129_v4 = vand.u32 4294901760, %v5983_v14  ;;  %v7265_v14 = vand.u32 4294901760, %v7231_v49 }
 0x141   :  { %7224 = vst [vmem:[#allocation37_spill] sm:$0xff] %v5990_v1  ;;  %v6010_v1 = vpack.c.bf16 %v7233_v36, %v7232_v48  ;;  %v7240_v48 = vld [vmem:[#allocation97_spill] sm:$0xff]  ;;  %4325 = vmatpush1.bf16.msra.mxu1 %v7243_v61  ;;  %v7249_v36 = vand.u32 4294901760, %v5711_v23  ;;  %v7253_v61 = vld [vmem:[#allocation95_spill] sm:$0xff] }
 0x142   :  { %7248 = vst [vmem:[#allocation94_spill] sm:$0xff] %v6036_v8  ;;  %4327 = vmatprep.subr.bf16.mxu1 %v7252_v13  ;;  %v7256_v45 = vand.u32 4294901760, %v7240_v48  ;;  %v7259_v8 = vand.u32 4294901760, %v7242_v24  ;;  %v2134_v9 = vsub.f32 %v7231_v49, %v7265_v14  ;;  %v7267_v48 = vand.u32 4294901760, %v5759_v33 }
 0x143   :  { %7234 = vst [vmem:[#allocation82_spill] sm:$0xff] %v6010_v1  ;;  %v7241_v1 = vld [vmem:[#allocation99_spill] sm:$0xff]  ;;  %v6042_v38 = vpack.c.bf16 %v7250_v31, %v7249_v36  ;;  %4137 = vmatpush1.bf16.msra.mxu0 %v7253_v61  ;;  %v7261_v36 = vld [vmem:[#allocation56_spill] sm:$0xff]  ;;  %v7283_v49 = vand.u32 4294901760, %v5859_v46  ;;  %v2972_v46 = vand.u32 4294901760, %v6003_v28 }
 0x144   :  { %v6052_v10 = vpack.c.bf16 %v7256_v45, %v7255_v22  ;;  %v7258_v50 = vand.u32 4294901760, %v7241_v1  ;;  %4139 = vmatprep.subr.bf16.mxu0 %v7261_v36  ;;  %v7269_v22 = vand.u32 4294901760, %v5763_v47  ;;  %v7274_v36 = vld [vmem:[#allocation57_spill] sm:$0xff] }
 0x145   :  { %7251 = vst [vmem:[#allocation96_spill] sm:$0xff] %v6042_v38  ;;  %v7262_v38 = vld [vmem:[#allocation101_spill] sm:$0xff] }
 0x146   :  { %7257 = vst [vmem:[#allocation99_spill] sm:$0xff] %v6052_v10  ;;  %v6058_v31 = vpack.c.bf16 %v7259_v8, %v7258_v50  ;;  %v7263_v8 = vld [vmem:[#allocation98_spill] sm:$0xff]  ;;  %v7264_v50 = vand.u32 4294901760, %v7221_v58  ;;  %v7266_v13 = vand.u32 4294901760, %v7262_v38  ;;  %v7270_v10 = vand.u32 4294901760, %v5765_v62 }
 0x147   :  { %4329 = vmatpush1.bf16.msra.mxu1 %v7263_v8  ;;  %v7272_v8 = vld [vmem:[#allocation64_spill] sm:$0xff] }
 0x148   :  { %7260 = vst [vmem:[#allocation100_spill] sm:$0xff] %v6058_v31  ;;  %v2122_v61 = vsub.f32 %v7221_v58, %v7264_v50  ;;  %v6080_v31 = vpack.c.bf16 %v7267_v48, %v7266_v13  ;;  %v6086_v45 = vpack.c.bf16 %v7270_v10, %v7269_v22  ;;  %4331 = vmatprep.subr.bf16.mxu1 %v5761_v59  ;;  %v7273_v50 = vand.u32 4294901760, %v7245_v3 }
 0x149   :  { %4141 = vmatpush1.bf16.msra.mxu0 %v7272_v8  ;;  %v7275_v58 = vand.u32 4294901760, %v5779_v54  ;;  %v7276_v13 = vand.u32 4294901760, %v5793_v41  ;;  %v7279_v10 = vand.u32 4294901760, %v5808_v42  ;;  %v7284_v59 = vand.u32 4294901760, %v5864_v60 }
 0x14a   :  { %7268 = vst [vmem:[#allocation55_spill] sm:$0xff] %v6080_v31  ;;  %7271 = vst [vmem:[#allocation101_spill] sm:$0xff] %v6086_v45  ;;  %v2977_v14 = vsub.f32 %v7245_v3, %v7273_v50  ;;  %v7278_v31 = vand.u32 4294901760, %v5801_v37  ;;  %4143 = vmatprep.subr.bf16.mxu0 %v5817_v40  ;;  %v7281_v45 = vand.u32 4294901760, %v5847_v25  ;;  %v7282_v50 = vand.u32 4294901760, %v5852_v20 }
 0x14b   :  { %v6098_v48 = vpack.c.bf16 %v7276_v13, %v7275_v58  ;;  %v4340_v3 = vpack.c.bf16 %v7284_v59, %v7283_v49  ;;  %v7285_v58 = vand.u32 4294901760, %v7254_v11  ;;  %v7288_v40 = vand.u32 4294901760, %v5875_v19  ;;  %4333 = vmatpush1.bf16.msra.mxu1 %v5795_v6  ;;  %v7291_v49 = vld [vmem:[#allocation80_spill] sm:$0xff] }
 0x14c   :  { %v6104_v22 = vpack.c.bf16 %v7279_v10, %v7278_v31  ;;  %v4148_v8 = vpack.c.bf16 %v7282_v50, %v7281_v45  ;;  %v7287_v31 = vand.u32 4294901760, %v5870_v57  ;;  %v7289_v25 = vand.u32 4294901760, %v5884_v55  ;;  %2035 = vmatmul.mubr.f32.vlgmr.msra.gmra.mrb[2].mxu0 %v7291_v49  ;;  %4335 = vmatprep.subr.bf16.mxu1 %v5819_v35 }
 0x14d   :  { %7277 = vst [vmem:[#allocation57_spill] sm:$0xff] %v6098_v48  ;;  %v2989_v13 = vsub.f32 %v7254_v11, %v7285_v58  ;;  %v7286_v48 = vld [vmem:[#allocation58_spill] sm:$0xff]  ;;  %v7290_v20 = vand.u32 4294901760, %v5889_v27  ;;  %v2984_v60 = vand.u32 4294901760, %v2983_v53  ;;  %v7292_v59 = vand.u32 4294901760, %v5894_v34  ;;  %4145 = vmatpush1.bf16.msra.mxu0 %v5834_v12  ;;  %2265 = vmatprep.mubr.f32.mxu0 %v6917_v7 }
 0x14e   :  { %7280 = vst [vmem:[#allocation103_spill] sm:$0xff] %v6104_v22  ;;  %v6817_v42 = vand.u32 4294901760, %v7286_v48  ;;  %v4150_v10 = vpack.c.bf16 %v7288_v40, %v7287_v31  ;;  %v7293_v50 = vand.u32 4294901760, %v5904_v17  ;;  %v7294_v19 = vand.u32 4294901760, %v5909_v43  ;;  %4147 = vmatprep.subr.bf16.mxu0 %v5899_v2  ;;  %2890 = vmatmul.mubr.f32.vlgmr.msra.gmra.mrb[2].mxu1 %v7291_v49 }
 0x14f   :  { %v4342_v45 = vpack.c.bf16 %v7290_v20, %v7289_v25  ;;  %v7295_v58 = vand.u32 4294901760, %v5922_v5  ;;  %v7296_v27 = vand.u32 4294901760, %v5927_v18  ;;  %v2123_v28 = vand.u32 4294901760, %v2122_v61  ;;  %4337 = vmatpush1.bf16.msra.mxu1 %v5897_v29  ;;  %3120 = vmatprep.mubr.f32.mxu1 %v6917_v7 }
 0x150   :  { %v4152_v57 = vpack.c.bf16 %v7293_v50, %v7292_v59  ;;  %v2135_v53 = vand.u32 4294901760, %v2134_v9  ;;  %v2978_v40 = vand.u32 4294901760, %v2977_v14  ;;  %v7297_v34 = vand.u32 4294901760, %v7274_v36  ;;  %4339 = vmatprep.subr.bf16.mxu1 %v5911_v30 }
 0x151   :  { %v4344_v55 = vpack.c.bf16 %v7295_v58, %v7294_v19  ;;  %v4154_v31 = vpack.c.bf16 %v2129_v4, %v7296_v27  ;;  %v2990_v43 = vand.u32 4294901760, %v2989_v13  ;;  %v2152_v5 = vsub.f32 %v7286_v48, %v6817_v42  ;;  %4149 = vmatpush1.bf16.msra.mxu0 %v4148_v8  ;;  %v7308_v42 = vld [vmem:[#allocation84_spill] sm:$0xff] }
 0x152   :  { %v2140_v17 = vsub.f32 %v7274_v36, %v7297_v34  ;;  %v7298_v18 = vand.u32 4294901760, %v5654_v52  ;;  %v7299_v12 = vand.u32 4294901760, %v5657_v44  ;;  %v4346_v61 = vpack.c.bf16 %v2984_v60, %v2972_v46  ;;  %4151 = vmatprep.subr.bf16.mxu0 %v4150_v10 }
 0x153   :  { %v7300_v2 = vand.u32 4294901760, %v5659_v63  ;;  %v7301_v14 = vand.u32 4294901760, %v5663_v39  ;;  %v7302_v25 = vand.u32 4294901760, %v5668_v15  ;;  %v7303_v59 = vand.u32 4294901760, %v5670_v21  ;;  %4341 = vmatpush1.bf16.msra.mxu1 %v4340_v3  ;;  %v7316_v3 = vld [vmem:[#allocation90_spill] sm:$0xff] }
 0x154   :  { %v2995_v35 = vsub.f32 %v5654_v52, %v7298_v18  ;;  %v3007_v9 = vsub.f32 %v5657_v44, %v7299_v12  ;;  %v7304_v46 = vand.u32 4294901760, %v7216_v16  ;;  %v7305_v49 = vand.u32 4294901760, %v7217_v51  ;;  %4343 = vmatprep.subr.bf16.mxu1 %v4342_v45 }
 0x155   :  { %v2146_v4 = vsub.f32 %v5659_v63, %v7300_v2  ;;  %v2158_v13 = vsub.f32 %v5663_v39, %v7301_v14  ;;  %v3001_v20 = vsub.f32 %v5668_v15, %v7302_v25  ;;  %v3013_v50 = vsub.f32 %v5670_v21, %v7303_v59  ;;  %4153 = vmatpush1.bf16.msra.mxu0 %v4152_v57 }
 0x156   :  { %v2164_v60 = vsub.f32 %v7216_v16, %v7304_v46  ;;  %v2176_v19 = vsub.f32 %v7217_v51, %v7305_v49  ;;  %v4156_v58 = vpack.c.bf16 %v2135_v53, %v2123_v28  ;;  %v2141_v27 = vand.u32 4294901760, %v2140_v17  ;;  %v7310_v28 = vld [vmem:[#allocation85_spill] sm:$0xff]  ;;  %4155 = vmatprep.subr.bf16.mxu0 %v4154_v31 }
 0x157   :  { %v7306_v29 = vand.u32 4294901760, %v5683_v56  ;;  %v7307_v18 = vand.u32 4294901760, %v7218_v0  ;;  %v4348_v2 = vpack.c.bf16 %v2990_v43, %v2978_v40  ;;  %v2153_v14 = vand.u32 4294901760, %v2152_v5  ;;  %v7312_v43 = vld [vmem:[#allocation87_spill] sm:$0xff]  ;;  %4345 = vmatpush1.bf16.msra.mxu1 %v4344_v55 }
 0x158   :  { %v2996_v25 = vand.u32 4294901760, %v2995_v35  ;;  %v3008_v59 = vand.u32 4294901760, %v3007_v9  ;;  %v2147_v46 = vand.u32 4294901760, %v2146_v4  ;;  %v2159_v49 = vand.u32 4294901760, %v2158_v13  ;;  %v7314_v9 = vld [vmem:[#allocation88_spill] sm:$0xff]  ;;  %4347 = vmatprep.subr.bf16.mxu1 %v4346_v61 }
 0x159   :  { %v3019_v34 = vsub.f32 %v5683_v56, %v7306_v29  ;;  %v3031_v12 = vsub.f32 %v7218_v0, %v7307_v18  ;;  %v7309_v30 = vand.u32 4294901760, %v7308_v42  ;;  %v7311_v53 = vand.u32 4294901760, %v7310_v28  ;;  %4157 = vmatpush1.bf16.msra.mxu0 %v4156_v58 }
 0x15a   :  { %v3002_v29 = vand.u32 4294901760, %v3001_v20  ;;  %v3014_v22 = vand.u32 4294901760, %v3013_v50  ;;  %v2165_v6 = vand.u32 4294901760, %v2164_v60  ;;  %v2177_v18 = vand.u32 4294901760, %v2176_v19  ;;  %v7318_v60 = vld [vmem:[#allocation91_spill] sm:$0xff] }
 0x15b   :  { %v2170_v8 = vsub.f32 %v7308_v42, %v7309_v30  ;;  %v2182_v17 = vsub.f32 %v7310_v28, %v7311_v53  ;;  %v3020_v10 = vand.u32 4294901760, %v3019_v34  ;;  %v3032_v40 = vand.u32 4294901760, %v3031_v12  ;;  %4349 = vmatpush1.bf16.msra.mxu1 %v4348_v2 }
 0x15c   :  { %v7313_v5 = vand.u32 4294901760, %v7312_v43  ;;  %v7315_v4 = vand.u32 4294901760, %v7314_v9  ;;  %v4158_v30 = vpack.c.bf16 %v2153_v14, %v2141_v27  ;;  %v4350_v53 = vpack.c.bf16 %v3008_v59, %v2996_v25 }
 0x15d   :  { %v7317_v20 = vand.u32 4294901760, %v7316_v3  ;;  %v7319_v45 = vand.u32 4294901760, %v7318_v60  ;;  %v2171_v19 = vand.u32 4294901760, %v2170_v8  ;;  %v2183_v34 = vand.u32 4294901760, %v2182_v17 }
 0x15e   :  { %v3025_v35 = vsub.f32 %v7312_v43, %v7313_v5  ;;  %v3037_v13 = vsub.f32 %v7314_v9, %v7315_v4  ;;  %v7320_v12 = vand.u32 4294901760, %v5711_v23  ;;  %v7321_v43 = vand.u32 4294901760, %v7238_v32  ;;  %v7323_v4 = vld [vmem:[#allocation97_spill] sm:$0xff]  ;;  %4159 = vmatprep.subr.bf16.mxu0 %v4158_v30  ;;  %4351 = vmatprep.subr.bf16.mxu1 %v4350_v53 }
 0x15f   :  { %v2188_v50 = vsub.f32 %v7316_v3, %v7317_v20  ;;  %v2200_v57 = vsub.f32 %v7318_v60, %v7319_v45  ;;  %v4160_v27 = vpack.c.bf16 %v2159_v49, %v2147_v46  ;;  %v4352_v14 = vpack.c.bf16 %v3014_v22, %v3002_v29 }
 0x160   :  { %v3043_v5 = vsub.f32 %v5711_v23, %v7320_v12  ;;  %v3055_v31 = vsub.f32 %v7238_v32, %v7321_v43  ;;  %v7322_v25 = vand.u32 4294901760, %v7239_v26  ;;  %v7324_v20 = vand.u32 4294901760, %v7323_v4 }
 0x161   :  { %v4162_v17 = vpack.c.bf16 %v2177_v18, %v2165_v6  ;;  %v4354_v45 = vpack.c.bf16 %v3032_v40, %v3020_v10  ;;  %v3026_v12 = vand.u32 4294901760, %v3025_v35  ;;  %v3038_v23 = vand.u32 4294901760, %v3037_v13  ;;  %4161 = vmatpush1.bf16.msra.mxu0 %v4160_v27  ;;  %4353 = vmatpush1.bf16.msra.mxu1 %v4352_v14 }
 0x162   :  { %v2194_v59 = vsub.f32 %v7239_v26, %v7322_v25  ;;  %v2206_v8 = vsub.f32 %v7323_v4, %v7324_v20  ;;  %v2189_v9 = vand.u32 4294901760, %v2188_v50  ;;  %v2201_v43 = vand.u32 4294901760, %v2200_v57 }
 0x163   :  { %v7325_v55 = vand.u32 4294901760, %v7262_v38  ;;  %v7326_v46 = vand.u32 4294901760, %v5759_v33  ;;  %v4164_v29 = vpack.c.bf16 %v2183_v34, %v2171_v19  ;;  %v3044_v25 = vand.u32 4294901760, %v3043_v5  ;;  %4163 = vmatprep.subr.bf16.mxu0 %v4162_v17  ;;  %4355 = vmatprep.subr.bf16.mxu1 %v4354_v45 }
 0x164   :  { %v3056_v20 = vand.u32 4294901760, %v3055_v31  ;;  %v7327_v61 = vand.u32 4294901760, %v7241_v1  ;;  %v2195_v58 = vand.u32 4294901760, %v2194_v59  ;;  %v2207_v18 = vand.u32 4294901760, %v2206_v8 }
 0x165   :  { %v2212_v22 = vsub.f32 %v7262_v38, %v7325_v55  ;;  %v2224_v49 = vsub.f32 %v5759_v33, %v7326_v46  ;;  %v7328_v10 = vand.u32 4294901760, %v7242_v24  ;;  %v7329_v35 = vand.u32 4294901760, %v5763_v47  ;;  %4165 = vmatpush1.bf16.msra.mxu0 %v4164_v29  ;;  %v7338_v29 = vld [vmem:[#allocation43_spill] sm:$0xff] }
 0x166   :  { %v3049_v6 = vsub.f32 %v7241_v1, %v7327_v61  ;;  %v7330_v30 = vand.u32 4294901760, %v5765_v62  ;;  %v7331_v57 = vand.u32 4294901760, %v5779_v54  ;;  %v7332_v19 = vand.u32 4294901760, %v5793_v41 }
 0x167   :  { %v3061_v40 = vsub.f32 %v7242_v24, %v7328_v10  ;;  %v3067_v13 = vsub.f32 %v5763_v47, %v7329_v35  ;;  %v4166_v5 = vpack.c.bf16 %v2201_v43, %v2189_v9  ;;  %v2213_v31 = vand.u32 4294901760, %v2212_v22  ;;  %v7334_v35 = vld [vmem:[#allocation65_spill] sm:$0xff] }
 0x168   :  { %v3079_v50 = vsub.f32 %v5765_v62, %v7330_v30  ;;  %v2218_v2 = vsub.f32 %v5779_v54, %v7331_v57  ;;  %v2230_v34 = vsub.f32 %v5793_v41, %v7332_v19  ;;  %v2225_v59 = vand.u32 4294901760, %v2224_v49 }
 0x169   :  { %v4356_v8 = vpack.c.bf16 %v3038_v23, %v3026_v12  ;;  %v4358_v55 = vpack.c.bf16 %v3056_v20, %v3044_v25  ;;  %v3050_v53 = vand.u32 4294901760, %v3049_v6  ;;  %v4168_v27 = vpack.c.bf16 %v2207_v18, %v2195_v58  ;;  %4167 = vmatprep.subr.bf16.mxu0 %v4166_v5  ;;  %v7336_v6 = vld [vmem:[#allocation34_spill] sm:$0xff]  ;;  %v7343_v5 = vld [vmem:[#allocation68_spill] sm:$0xff] }
 0x16a   :  { %v3062_v46 = vand.u32 4294901760, %v3061_v40  ;;  %v7333_v61 = vand.u32 4294901760, %v5801_v37  ;;  %v7335_v30 = vand.u32 4294901760, %v7334_v35  ;;  %v3068_v17 = vand.u32 4294901760, %v3067_v13  ;;  %v7337_v58 = vld [vmem:[#allocation38_spill] sm:$0xff]  ;;  %v7339_v40 = vld [vmem:[#allocation45_spill] sm:$0xff] }
 0x16b   :  { %v3080_v9 = vand.u32 4294901760, %v3079_v50  ;;  %v2219_v43 = vand.u32 4294901760, %v2218_v2  ;;  %v2231_v22 = vand.u32 4294901760, %v2230_v34  ;;  %v4170_v23 = vpack.c.bf16 %v2225_v59, %v2213_v31  ;;  %4357 = vmatpush1.bf16.msra.mxu1 %v4356_v8  ;;  %4169 = vmatpush1.bf16.msra.mxu0 %v4168_v27  ;;  %v7340_v50 = vld [vmem:[#allocation48_spill] sm:$0xff]  ;;  %v7341_v2 = vld [vmem:[#allocation49_spill] sm:$0xff]  ;;  %v7342_v34 = vld [vmem:[#allocation67_spill] sm:$0xff] }
 0x16c   :  { %v3073_v10 = vsub.f32 %v5801_v37, %v7333_v61  ;;  %v3085_v57 = vsub.f32 %v7334_v35, %v7335_v30  ;;  %v4360_v14 = vpack.c.bf16 %v3062_v46, %v3050_v53  ;;  %4359 = vmatprep.subr.bf16.mxu1 %v4358_v55  ;;  %v4174_v18 = vpack.c.bf16 %v7337_v58, %v7336_v6  ;;  %v7344_v59 = vld [vmem:[#allocation77_spill] sm:$0xff]  ;;  %v7345_v8 = vld [vmem:[#allocation52_spill] sm:$0xff] }
 0x16d   :  { %v4362_v25 = vpack.c.bf16 %v3080_v9, %v3068_v17  ;;  %v4172_v20 = vpack.c.bf16 %v2231_v22, %v2219_v43  ;;  %4171 = vmatprep.subr.bf16.mxu0 %v4170_v23  ;;  %v4366_v13 = vpack.c.bf16 %v7339_v40, %v7338_v29  ;;  %v4176_v19 = vpack.c.bf16 %v7341_v2, %v7340_v50  ;;  %v7346_v55 = vld [vmem:[#allocation61_spill] sm:$0xff]  ;;  %v7347_v27 = vld [vmem:[#allocation72_spill] sm:$0xff]  ;;  %v7351_v17 = vld [vmem:[#allocation22_spill] sm:$0xff] }
 0x16e   :  { %v3074_v12 = vand.u32 4294901760, %v3073_v10  ;;  %v3086_v49 = vand.u32 4294901760, %v3085_v57  ;;  %v4178_v31 = vpack.c.bf16 %v7343_v5, %v7342_v34  ;;  %v4368_v53 = vpack.c.bf16 %v7346_v55, %v7345_v8  ;;  %v7348_v46 = vld [vmem:[#allocation73_spill] sm:$0xff]  ;;  %v7349_v10 = vld [vmem:[#allocation75_spill] sm:$0xff]  ;;  %v7350_v30 = vld [vmem:[#allocation12_spill] sm:$0xff] }
 0x16f   :  { %4361 = vmatpush1.bf16.msra.mxu1 %v4360_v14  ;;  %4173 = vmatpush1.bf16.msra.mxu0 %v4172_v20  ;;  %v4370_v61 = vpack.c.bf16 %v7348_v46, %v7347_v27  ;;  %v4180_v57 = vpack.c.bf16 %v7350_v30, %v7349_v10  ;;  %v7352_v9 = vld [vmem:[#allocation23_spill] sm:$0xff]  ;;  %v7353_v22 = vld [vmem:[#allocation18_spill] sm:$0xff]  ;;  %v7354_v23 = vld [vmem:[#allocation21_spill] sm:$0xff] }
 0x170   :  { %v4364_v45 = vpack.c.bf16 %v3086_v49, %v3074_v12  ;;  %4363 = vmatprep.subr.bf16.mxu1 %v4362_v25  ;;  %4175 = vmatprep.subr.bf16.mxu0 %v4174_v18  ;;  %v4182_v43 = vpack.c.bf16 %v7352_v9, %v7351_v17  ;;  %v4372_v14 = vpack.c.bf16 %v7354_v23, %v7353_v22  ;;  %v7355_v12 = vld [vmem:[#allocation24_spill] sm:$0xff]  ;;  %v7356_v49 = vld [vmem:[#allocation26_spill] sm:$0xff]  ;;  %v7357_v20 = vld [vmem:[#allocation27_spill] sm:$0xff] }
 0x171   :  { %v4374_v25 = vpack.c.bf16 %v7356_v49, %v7355_v12  ;;  %v7358_v18 = vld [vmem:[#allocation28_spill] sm:$0xff]  ;;  %v7364_v22 = vld [vmem:[#allocation51_spill] sm:$0xff]  ;;  %v7366_v17 = vld [vmem:[#allocation13_spill] sm:$0xff] }
 0x172   :  { %2267 = vmatmul.mubr.f32.vlgmr.msra.gmra.mrb[2].mxu0 %v7344_v59  ;;  %v7363_v23 = vld [vmem:[#allocation44_spill] sm:$0xff] }
 0x173   :  { %4365 = vmatpush1.bf16.msra.mxu1 %v4364_v45  ;;  %4177 = vmatpush1.bf16.msra.mxu0 %v4176_v19  ;;  %v4184_v45 = vpack.c.bf16 %v7358_v18, %v7357_v20  ;;  %v7360_v19 = vld [vmem:[#allocation41_spill] sm:$0xff]  ;;  %v4190_v18 = vpack.c.bf16 %v7286_v48, %v7274_v36 }
 0x174   :  { %4367 = vmatprep.subr.bf16.mxu1 %v4366_v13  ;;  %4179 = vmatprep.subr.bf16.mxu0 %v4178_v31  ;;  %v7359_v13 = vld [vmem:[#allocation39_spill] sm:$0xff] }
 0x175   :  { %2401 = vmatprep.mubr.f32.mxu0 %v6917_v7  ;;  %v4186_v31 = vpack.c.bf16 %v7360_v19, %v7359_v13 }
 0x176   :  { %3122 = vmatmul.mubr.f32.vlgmr.msra.gmra.mrb[2].mxu1 %v7344_v59  ;;  %v7361_v59 = vld [vmem:[#allocation31_spill] sm:$0xff] }
 0x177   :  { %4369 = vmatpush1.bf16.msra.mxu1 %v4368_v53  ;;  %3256 = vmatprep.mubr.f32.mxu1 %v6917_v7  ;;  %v7362_v53 = vld [vmem:[#allocation35_spill] sm:$0xff] }
 0x178   :  { %4371 = vmatprep.subr.bf16.mxu1 %v4370_v61  ;;  %4181 = vmatpush1.bf16.msra.mxu0 %v4180_v57  ;;  %v4376_v9 = vpack.c.bf16 %v7362_v53, %v7361_v59  ;;  %v4378_v61 = vpack.c.bf16 %v7364_v22, %v7363_v23  ;;  %v7365_v57 = vld [vmem:[#allocation59_spill] sm:$0xff] }
 0x179   :  { %4183 = vmatprep.subr.bf16.mxu0 %v4182_v43  ;;  %v4188_v30 = vpack.c.bf16 %v7366_v17, %v7365_v57  ;;  %v7367_v43 = vld [vmem:[#allocation40_spill] sm:$0xff] }
 0x17a   :  { %v4380_v19 = vpack.c.bf16 %v7254_v11, %v7367_v43 }
 0x17b   :  { %4373 = vmatpush1.bf16.msra.mxu1 %v4372_v14  ;;  %v4382_v14 = vpack.c.bf16 %v5657_v44, %v5654_v52  ;;  %v4198_v52 = vpack.c.bf16 %v7318_v60, %v7316_v3  ;;  %v7368_v44 = vld [vmem:[#allocation87_spill] sm:$0xff]  ;;  %v7382_v3 = vld [vmem:[#allocation29_spill] sm:$0xff]  ;;  %v7383_v60 = vld [vmem:[#allocation32_spill] sm:$0xff] }
 0x17c   :  { %4375 = vmatprep.subr.bf16.mxu1 %v4374_v25  ;;  %4185 = vmatpush1.bf16.msra.mxu0 %v4184_v45  ;;  %v4192_v25 = vpack.c.bf16 %v5663_v39, %v5659_v63  ;;  %v4194_v45 = vpack.c.bf16 %v7217_v51, %v7216_v16  ;;  %v7369_v63 = vld [vmem:[#allocation88_spill] sm:$0xff]  ;;  %v7370_v39 = vld [vmem:[#allocation93_spill] sm:$0xff]  ;;  %v4204_v16 = vpack.c.bf16 %v5793_v41, %v5779_v54  ;;  %v7377_v54 = vld [vmem:[#allocation70_spill] sm:$0xff] }
 0x17d   :  { %4187 = vmatprep.subr.bf16.mxu0 %v4186_v31  ;;  %v4384_v31 = vpack.c.bf16 %v5670_v21, %v5668_v15  ;;  %v4388_v51 = vpack.c.bf16 %v7369_v63, %v7368_v44  ;;  %v4390_v15 = vpack.c.bf16 %v7238_v32, %v7370_v39  ;;  %v4200_v21 = vpack.c.bf16 %v7323_v4, %v7239_v26  ;;  %v7378_v41 = vld [vmem:[#allocation76_spill] sm:$0xff]  ;;  %v7384_v4 = vld [vmem:[#allocation30_spill] sm:$0xff] }
 0x17e   :  { %v4396_v26 = vpack.c.bf16 %v7334_v35, %v5801_v37  ;;  %v7379_v37 = vld [vmem:[#allocation20_spill] sm:$0xff]  ;;  %v7385_v35 = vld [vmem:[#allocation47_spill] sm:$0xff]  ;;  %v7396_v44 = vld [vmem:[#allocation86_spill] sm:$0xff] }
 0x17f   :  { %4377 = vmatpush1.bf16.msra.mxu1 %v4376_v9  ;;  %v4386_v9 = vpack.c.bf16 %v7218_v0, %v5683_v56  ;;  %v4202_v0 = vpack.c.bf16 %v5759_v33, %v7262_v38  ;;  %v4392_v56 = vpack.c.bf16 %v7242_v24, %v7241_v1  ;;  %v7371_v38 = vld [vmem:[#allocation33_spill] sm:$0xff]  ;;  %v7372_v33 = vld [vmem:[#allocation78_spill] sm:$0xff]  ;;  %v7380_v32 = vld [vmem:[#allocation16_spill] sm:$0xff] }
 0x180   :  { %4379 = vmatprep.subr.bf16.mxu1 %v4378_v61  ;;  %4189 = vmatpush1.bf16.msra.mxu0 %v4188_v30  ;;  %v4196_v30 = vpack.c.bf16 %v7310_v28, %v7308_v42  ;;  %v4394_v42 = vpack.c.bf16 %v5765_v62, %v5763_v47  ;;  %v7373_v1 = vld [vmem:[#allocation42_spill] sm:$0xff]  ;;  %v7381_v28 = vld [vmem:[#allocation25_spill] sm:$0xff]  ;;  %v7397_v63 = vld [vmem:[#allocation92_spill] sm:$0xff] }
 0x181   :  { %4191 = vmatprep.subr.bf16.mxu0 %v4190_v18  ;;  %v7374_v24 = vld [vmem:[#allocation46_spill] sm:$0xff]  ;;  %v7386_v18 = vld [vmem:[#allocation53_spill] sm:$0xff]  ;;  %v7399_v39 = vld [vmem:[#allocation56_spill] sm:$0xff] }
 0x182   :  { %v7375_v62 = vld [vmem:[#allocation62_spill] sm:$0xff] }
 0x183   :  { %4381 = vmatpush1.bf16.msra.mxu1 %v4380_v19  ;;  %v7376_v47 = vld [vmem:[#allocation50_spill] sm:$0xff] }
 0x184   :  { %4383 = vmatprep.subr.bf16.mxu1 %v4382_v14  ;;  %4193 = vmatpush1.bf16.msra.mxu0 %v4192_v25  ;;  %v7387_v19 = vld [vmem:[#allocation54_spill] sm:$0xff]  ;;  %v7389_v14 = vld [vmem:[#allocation15_spill] sm:$0xff]  ;;  %v7390_v25 = vld [vmem:[#allocation60_spill] sm:$0xff] }
 0x185   :  { %4195 = vmatprep.subr.bf16.mxu0 %v4194_v45  ;;  %v7388_v61 = vld [vmem:[#allocation14_spill] sm:$0xff]  ;;  %v7391_v45 = vld [vmem:[#allocation19_spill] sm:$0xff] }
 0x187   :  { %4385 = vmatpush1.bf16.msra.mxu1 %v4384_v31  ;;  %v7392_v31 = vld [vmem:[#allocation17_spill] sm:$0xff] }
 0x188   :  { %4387 = vmatprep.subr.bf16.mxu1 %v4386_v9  ;;  %4197 = vmatpush1.bf16.msra.mxu0 %v4196_v30  ;;  %v7393_v9 = vld [vmem:[#allocation81_spill] sm:$0xff]  ;;  %v7394_v30 = vld [vmem:[#allocation83_spill] sm:$0xff] }
 0x189   :  { %4199 = vmatprep.subr.bf16.mxu0 %v4198_v52  ;;  %v7395_v52 = vld [vmem:[#allocation89_spill] sm:$0xff] }
 0x18b   :  { %4389 = vmatpush1.bf16.msra.mxu1 %v4388_v51  ;;  %v7398_v51 = vld [vmem:[#allocation95_spill] sm:$0xff] }
 0x18c   :  { %4391 = vmatprep.subr.bf16.mxu1 %v4390_v15  ;;  %4201 = vmatpush1.bf16.msra.mxu0 %v4200_v21  ;;  %v7400_v15 = vand.u32 4294901760, %v7336_v6  ;;  %v7401_v21 = vand.u32 4294901760, %v7337_v58  ;;  %v7409_v6 = vand.u32 4294901760, %v7342_v34  ;;  %v7410_v58 = vand.u32 4294901760, %v7343_v5  ;;  %v7418_v5 = vld [vmem:[#allocation12_spill] sm:$0xff] }
 0x18d   :  { %4203 = vmatprep.subr.bf16.mxu0 %v4202_v0  ;;  %v7417_v34 = vand.u32 4294901760, %v7349_v10  ;;  %v7428_v10 = vand.u32 4294901760, %v7355_v12 }
 0x18e   :  { %v4238_v0 = vpack.c.bf16 %v7401_v21, %v7400_v15  ;;  %v4242_v15 = vpack.c.bf16 %v7410_v58, %v7409_v6  ;;  %v7411_v21 = vld [vmem:[#allocation66_spill] sm:$0xff]  ;;  %v7422_v58 = vld [vmem:[#allocation23_spill] sm:$0xff] }
 0x18f   :  { %4393 = vmatpush1.bf16.msra.mxu1 %v4392_v56  ;;  %v7402_v56 = vld [vmem:[#allocation98_spill] sm:$0xff] }
 0x190   :  { %4395 = vmatprep.subr.bf16.mxu1 %v4394_v42  ;;  %4205 = vmatpush1.bf16.msra.mxu0 %v4204_v16  ;;  %v7403_v42 = vld [vmem:[#allocation63_spill] sm:$0xff]  ;;  %v7404_v16 = vld [vmem:[#allocation64_spill] sm:$0xff] }
 0x191   :  { %4207 = vmatprep.subr.bf16.mxu0 %v7371_v38 }
 0x193   :  { %4397 = vmatpush1.bf16.msra.mxu1 %v4396_v26  ;;  %2404 = vmatmul.mubr.f32.vlgmr.msra.gmra.mrb[2].mxu0 %v7372_v33  ;;  %v7405_v26 = vand.u32 4294901760, %v7338_v29  ;;  %v7413_v29 = vand.u32 4294901760, %v7345_v8  ;;  %v7423_v8 = vand.u32 4294901760, %v7422_v58  ;;  %v7442_v58 = vand.u32 4294901760, %v7274_v36  ;;  %v7449_v36 = vld [vmem:[#allocation74_spill] sm:$0xff] }
 0x194   :  { %4399 = vmatprep.subr.bf16.mxu1 %v7373_v1  ;;  %4209 = vmatpush1.bf16.msra.mxu0 %v7374_v24 }
 0x195   :  { %4211 = vmatprep.subr.bf16.mxu0 %v7375_v62  ;;  %2506 = vmatprep.mubr.f32.mxu0 %v6917_v7 }
 0x196   :  { %3259 = vmatmul.mubr.f32.vlgmr.msra.gmra.mrb[2].mxu1 %v7372_v33  ;;  %v7406_v33 = vand.u32 4294901760, %v7339_v40  ;;  %v7414_v40 = vand.u32 4294901760, %v7346_v55  ;;  %v7424_v55 = vld [vmem:[#allocation18_spill] sm:$0xff] }
 0x197   :  { %4401 = vmatpush1.bf16.msra.mxu1 %v7376_v47  ;;  %3361 = vmatprep.mubr.f32.mxu1 %v6917_v7 }
 0x198   :  { %4403 = vmatprep.subr.bf16.mxu1 %v7377_v54  ;;  %4213 = vmatpush1.bf16.msra.mxu0 %v7378_v41 }
 0x199   :  { %4215 = vmatprep.subr.bf16.mxu0 %v7379_v37 }
 0x19b   :  { %4405 = vmatpush1.bf16.msra.mxu1 %v7380_v32 }
 0x19c   :  { %4407 = vmatprep.subr.bf16.mxu1 %v7381_v28  ;;  %4217 = vmatpush1.bf16.msra.mxu0 %v7382_v3 }
 0x19d   :  { %4219 = vmatprep.subr.bf16.mxu0 %v7383_v60 }
 0x19f   :  { %4409 = vmatpush1.bf16.msra.mxu1 %v7384_v4 }
 0x1a0   :  { %4411 = vmatprep.subr.bf16.mxu1 %v7385_v35  ;;  %4221 = vmatpush1.bf16.msra.mxu0 %v7386_v18 }
 0x1a1   :  { %4223 = vmatprep.subr.bf16.mxu0 %v7387_v19 }
 0x1a3   :  { %4413 = vmatpush1.bf16.msra.mxu1 %v7388_v61 }
 0x1a4   :  { %4415 = vmatprep.subr.bf16.mxu1 %v7389_v14  ;;  %4225 = vmatpush1.bf16.msra.mxu0 %v7390_v25 }
 0x1a5   :  { %4227 = vmatprep.subr.bf16.mxu0 %v7391_v45 }
 0x1a7   :  { %4417 = vmatpush1.bf16.msra.mxu1 %v7392_v31 }
 0x1a8   :  { %4419 = vmatprep.subr.bf16.mxu1 %v7393_v9  ;;  %4229 = vmatpush1.bf16.msra.mxu0 %v7394_v30 }
 0x1a9   :  { %4231 = vmatprep.subr.bf16.mxu0 %v7395_v52 }
 0x1ab   :  { %4421 = vmatpush1.bf16.msra.mxu1 %v7396_v44 }
 0x1ac   :  { %4423 = vmatprep.subr.bf16.mxu1 %v7397_v63  ;;  %4233 = vmatpush1.bf16.msra.mxu0 %v7398_v51  ;;  %v4430_v63 = vpack.c.bf16 %v7406_v33, %v7405_v26  ;;  %v7407_v51 = vand.u32 4294901760, %v7340_v50  ;;  %v4432_v26 = vpack.c.bf16 %v7414_v40, %v7413_v29  ;;  %v7415_v50 = vand.u32 4294901760, %v7347_v27  ;;  %v7420_v33 = vld [vmem:[#allocation22_spill] sm:$0xff] }
 0x1ad   :  { %4235 = vmatprep.subr.bf16.mxu0 %v7399_v39  ;;  %v7408_v39 = vand.u32 4294901760, %v7341_v2  ;;  %v7416_v2 = vand.u32 4294901760, %v7348_v46  ;;  %v7421_v6 = vand.u32 4294901760, %v7420_v33  ;;  %v7425_v27 = vand.u32 4294901760, %v7424_v55  ;;  %v7426_v46 = vld [vmem:[#allocation21_spill] sm:$0xff] }
 0x1ae   :  { %v7430_v40 = vand.u32 4294901760, %v7357_v20  ;;  %v7439_v20 = vand.u32 4294901760, %v7364_v22  ;;  %v7445_v55 = vand.u32 4294901760, %v7254_v11  ;;  %v7446_v22 = vld [vmem:[#allocation69_spill] sm:$0xff]  ;;  %v7453_v11 = vld [vmem:[#allocation102_spill] sm:$0xff] }
 0x1af   :  { %4425 = vmatpush1.bf16.msra.mxu1 %v7402_v56  ;;  %v4240_v44 = vpack.c.bf16 %v7408_v39, %v7407_v51  ;;  %v4434_v51 = vpack.c.bf16 %v7416_v2, %v7415_v50  ;;  %v7419_v39 = vand.u32 4294901760, %v7418_v5  ;;  %v7431_v50 = vld [vmem:[#allocation28_spill] sm:$0xff] }
 0x1b0   :  { %4427 = vmatprep.subr.bf16.mxu1 %v7403_v42  ;;  %4237 = vmatpush1.bf16.msra.mxu0 %v7404_v16  ;;  %v7412_v42 = vld [vmem:[#allocation79_spill] sm:$0xff]  ;;  %v7432_v2 = vand.u32 4294901760, %v7431_v50  ;;  %v7461_v50 = vld [vmem:[#allocation77_spill] sm:$0xff] }
 0x1b1   :  { %4239 = vmatprep.subr.bf16.mxu0 %v4238_v0  ;;  %v4244_v0 = vpack.c.bf16 %v7419_v39, %v7417_v34  ;;  %v7434_v34 = vld [vmem:[#allocation41_spill] sm:$0xff] }
 0x1b2   :  { %v7435_v5 = vand.u32 4294901760, %v7434_v34 }
 0x1b3   :  { %4429 = vmatpush1.bf16.msra.mxu1 %v7411_v21  ;;  %2510 = vmatmul.mubr.f32.vlgmr.msra.gmra.mrb[2].mxu0 %v7412_v42  ;;  %v4246_v21 = vpack.c.bf16 %v7423_v8, %v7421_v6 }
 0x1b4   :  { %4431 = vmatprep.subr.bf16.mxu1 %v4430_v63  ;;  %4241 = vmatpush1.bf16.msra.mxu0 %v4240_v44  ;;  %v7427_v44 = vand.u32 4294901760, %v7426_v46  ;;  %v7454_v46 = vld [vmem:[#allocation96_spill] sm:$0xff] }
 0x1b5   :  { %4243 = vmatprep.subr.bf16.mxu0 %v4242_v15  ;;  %2676 = vmatprep.mubr.f32.mxu0 %v6917_v7  ;;  %v7429_v15 = vand.u32 4294901760, %v7356_v49  ;;  %v7438_v49 = vand.u32 4294901760, %v7363_v23 }
 0x1b6   :  { %3365 = vmatmul.mubr.f32.vlgmr.msra.gmra.mrb[2].mxu1 %v7412_v42  ;;  %v4436_v63 = vpack.c.bf16 %v7427_v44, %v7425_v27  ;;  %v4248_v42 = vpack.c.bf16 %v7432_v2, %v7430_v40  ;;  %v7451_v27 = vld [vmem:[#allocation82_spill] sm:$0xff]  ;;  %v7455_v44 = vld [vmem:[#allocation99_spill] sm:$0xff] }
 0x1b7   :  { %4433 = vmatpush1.bf16.msra.mxu1 %v4432_v26  ;;  %3531 = vmatprep.mubr.f32.mxu1 %v6917_v7  ;;  %v4438_v29 = vpack.c.bf16 %v7429_v15, %v7428_v10  ;;  %v7433_v26 = vand.u32 4294901760, %v7359_v13  ;;  %v4442_v33 = vpack.c.bf16 %v7439_v20, %v7438_v49  ;;  %v7441_v13 = vand.u32 4294901760, %v7366_v17  ;;  %v7447_v17 = vld [vmem:[#allocation71_spill] sm:$0xff]  ;;  %v7457_v10 = vld [vmem:[#allocation100_spill] sm:$0xff]  ;;  %v7458_v15 = vld [vmem:[#allocation101_spill] sm:$0xff] }
 0x1b8   :  { %4435 = vmatprep.subr.bf16.mxu1 %v4434_v51  ;;  %4245 = vmatpush1.bf16.msra.mxu0 %v4244_v0  ;;  %v7436_v51 = vand.u32 4294901760, %v7361_v59  ;;  %v7437_v0 = vand.u32 4294901760, %v7362_v53  ;;  %v7443_v59 = vand.u32 4294901760, %v7286_v48  ;;  %v7444_v53 = vand.u32 4294901760, %v7367_v43  ;;  %v7450_v48 = vld [vmem:[#allocation36_spill] sm:$0xff]  ;;  %v7452_v43 = vld [vmem:[#allocation94_spill] sm:$0xff] }
 0x1b9   :  { %4247 = vmatprep.subr.bf16.mxu0 %v4246_v21  ;;  %v4250_v39 = vpack.c.bf16 %v7435_v5, %v7433_v26  ;;  %v7440_v21 = vand.u32 4294901760, %v7365_v57  ;;  %v7448_v57 = vld [vmem:[#allocation37_spill] sm:$0xff]  ;;  %v7460_v40 = vld [vmem:[#allocation103_spill] sm:$0xff] }
 0x1ba   :  { %v4440_v12 = vpack.c.bf16 %v7437_v0, %v7436_v51  ;;  %v4254_v8 = vpack.c.bf16 %v7443_v59, %v7442_v58  ;;  %v4444_v23 = vpack.c.bf16 %v7445_v55, %v7444_v53 }
 0x1bb   :  { %4437 = vmatpush1.bf16.msra.mxu1 %v4436_v63  ;;  %v4252_v6 = vpack.c.bf16 %v7441_v13, %v7440_v21  ;;  %v7456_v63 = vld [vmem:[#allocation55_spill] sm:$0xff] }
 0x1bc   :  { %4439 = vmatprep.subr.bf16.mxu1 %v4438_v29  ;;  %4249 = vmatpush1.bf16.msra.mxu0 %v4248_v42  ;;  %v7459_v29 = vld [vmem:[#allocation57_spill] sm:$0xff] }
 0x1bd   :  { %4251 = vmatprep.subr.bf16.mxu0 %v4250_v39 }
 0x1bf   :  { %4441 = vmatpush1.bf16.msra.mxu1 %v4440_v12 }
 0x1c0   :  { %4443 = vmatprep.subr.bf16.mxu1 %v4442_v33  ;;  %4253 = vmatpush1.bf16.msra.mxu0 %v4252_v6 }
 0x1c1   :  { %4255 = vmatprep.subr.bf16.mxu0 %v4254_v8 }
 0x1c3   :  { %4445 = vmatpush1.bf16.msra.mxu1 %v4444_v23 }
 0x1c4   :  { %4447 = vmatprep.subr.bf16.mxu1 %v7446_v22  ;;  %4257 = vmatpush1.bf16.msra.mxu0 %v7447_v17 }
 0x1c5   :  { %4259 = vmatprep.subr.bf16.mxu0 %v7448_v57 }
 0x1c7   :  { %4449 = vmatpush1.bf16.msra.mxu1 %v7449_v36 }
 0x1c8   :  { %4451 = vmatprep.subr.bf16.mxu1 %v7450_v48  ;;  %4261 = vmatpush1.bf16.msra.mxu0 %v7451_v27 }
 0x1c9   :  { %4263 = vmatprep.subr.bf16.mxu0 %v7452_v43 }
 0x1cb   :  { %4453 = vmatpush1.bf16.msra.mxu1 %v7453_v11 }
 0x1cc   :  { %4455 = vmatprep.subr.bf16.mxu1 %v7454_v46  ;;  %4265 = vmatpush1.bf16.msra.mxu0 %v7455_v44 }
 0x1cd   :  { %4267 = vmatprep.subr.bf16.mxu0 %v7456_v63 }
 0x1cf   :  { %4457 = vmatpush1.bf16.msra.mxu1 %v7457_v10 }
 0x1d0   :  { %4459 = vmatprep.subr.bf16.mxu1 %v7458_v15  ;;  %4269 = vmatpush1.bf16.msra.mxu0 %v7459_v29 }
 0x1d1   :  { %4271 = vmatprep.subr.bf16.mxu0 %v7371_v38  ;;  %v7463_v38 = vld [vmem:[#allocation92_spill] sm:$0xff] }
 0x1d3   :  { %4461 = vmatpush1.bf16.msra.mxu1 %v7460_v40  ;;  %2678 = vmatmul.mubr.f32.vlgmr.msra.gmra.mrb[2].mxu0 %v7461_v50 }
 0x1d4   :  { %4463 = vmatprep.subr.bf16.mxu1 %v7373_v1  ;;  %4273 = vmatpush1.bf16.msra.mxu0 %v7374_v24  ;;  %v7464_v1 = vld [vmem:[#allocation95_spill] sm:$0xff]  ;;  %v7465_v24 = vld [vmem:[#allocation56_spill] sm:$0xff] }
 0x1d5   :  { %4275 = vmatprep.subr.bf16.mxu0 %v7375_v62  ;;  %2780 = vmatprep.mubr.f32.mxu0 %v6917_v7  ;;  %v7466_v62 = vld [vmem:[#allocation63_spill] sm:$0xff] }
 0x1d6   :  { %3533 = vmatmul.mubr.f32.vlgmr.msra.gmra.mrb[2].mxu1 %v7461_v50 }
 0x1d7   :  { %4465 = vmatpush1.bf16.msra.mxu1 %v7376_v47  ;;  %3635 = vmatprep.mubr.f32.mxu1 %v6917_v7  ;;  %v7462_v7 = vld [vmem:[#allocation86_spill] sm:$0xff] }
 0x1d8   :  { %4467 = vmatprep.subr.bf16.mxu1 %v7377_v54  ;;  %4277 = vmatpush1.bf16.msra.mxu0 %v7378_v41  ;;  %v7467_v47 = vld [vmem:[#allocation66_spill] sm:$0xff]  ;;  %v183_v54 = vlaneseq }
 0x1d9   :  { %4279 = vmatprep.subr.bf16.mxu0 %v7379_v37 }
 0x1da   :  { %v184_v41 = vshrl.u32 %v183_v54, 7 }
 0x1db   :  { %4469 = vmatpush1.bf16.msra.mxu1 %v7380_v32  ;;  %v181_v32 = vld [vmem:[#allocation7] sm:$0xff] }
 0x1dc   :  { %4471 = vmatprep.subr.bf16.mxu1 %v7381_v28  ;;  %4281 = vmatpush1.bf16.msra.mxu0 %v7382_v3  ;;  %v185_v37 = vsub.s32 0, %v184_v41  ;;  %v189_v28 = vsub.s32 1, %v184_v41  ;;  %v193_v3 = vsub.s32 2, %v184_v41  ;;  %v201_v33 = vsub.s32 4, %v184_v41 }
 0x1dd   :  { %4283 = vmatprep.subr.bf16.mxu0 %v7383_v60  ;;  %v205_v21 = vsub.s32 5, %v184_v41  ;;  %v209_v13 = vsub.s32 6, %v184_v41  ;;  %v213_v58 = vsub.s32 7, %v184_v41 }
 0x1de   :  { %v186_v60 = vrot.slane %v181_v32, %v185_v37  ;;  %v202_v6 = vrot.slane %v181_v32, %v201_v33 }
 0x1df   :  { %4473 = vmatpush1.bf16.msra.mxu1 %v7384_v4  ;;  %v4650_v4 = vmov 1966171168   ;;  %v206_v59 = vrot.slane %v181_v32, %v205_v21  ;;  %v210_v53 = vrot.slane %v181_v32, %v209_v13  ;;  %v214_v22 = vrot.slane %v181_v32, %v213_v58 }
 0x1e0   :  { %4475 = vmatprep.subr.bf16.mxu1 %v7385_v35  ;;  %4285 = vmatpush1.bf16.msra.mxu0 %v7386_v18  ;;  %v3664_v35 = vunpack.c.l.s4 %v4650_v4  ;;  %v197_v18 = vsub.s32 3, %v184_v41 }
 0x1e1   :  { %4287 = vmatprep.subr.bf16.mxu0 %v7387_v19  ;;  %v190_v19 = vrot.slane %v181_v32, %v189_v28 }
 0x1e3   :  { %4477 = vmatpush1.bf16.msra.mxu1 %v7388_v61 }
 0x1e4   :  { %4479 = vmatprep.subr.bf16.mxu1 %v7389_v14  ;;  %4289 = vmatpush1.bf16.msra.mxu0 %v7390_v25  ;;  %v194_v14 = vrot.slane %v181_v32, %v193_v3 }
 0x1e5   :  { %4291 = vmatprep.subr.bf16.mxu0 %v7391_v45 }
 0x1e7   :  { %4481 = vmatpush1.bf16.msra.mxu1 %v7392_v31  ;;  %v3665_v31 = vunpack.c.0.s8 %v3664_v35 }
 0x1e8   :  { %4483 = vmatprep.subr.bf16.mxu1 %v7393_v9  ;;  %4293 = vmatpush1.bf16.msra.mxu0 %v7394_v30  ;;  %v198_v9 = vrot.slane %v181_v32, %v197_v18 }
 0x1e9   :  { %4295 = vmatprep.subr.bf16.mxu0 %v7395_v52  ;;  %v3668_v26 = vsub.s32 %v3665_v31, %v184_v41 }
 0x1eb   :  { %4485 = vmatpush1.bf16.msra.mxu1 %v7462_v7 }
 0x1ec   :  { %4487 = vmatprep.subr.bf16.mxu1 %v7463_v38  ;;  %4297 = vmatpush1.bf16.msra.mxu0 %v7464_v1 }
 0x1ed   :  { %4299 = vmatprep.subr.bf16.mxu0 %v7465_v24 }
 0x1ef   :  { %4489 = vmatpush1.bf16.msra.mxu1 %v7402_v56 }
 0x1f0   :  { %4491 = vmatprep.subr.bf16.mxu1 %v7466_v62  ;;  %4301 = vmatpush1.bf16.msra.mxu0 %v7404_v16 }
 0x1f3   :  { %4493 = vmatpush1.bf16.msra.mxu1 %v7467_v47  ;;  %2782 = vmatmul.mubr.f32.vlgmr.msra.gmra.mrb[2].mxu0 %v7461_v50 }
 0x1f6   :  { %3637 = vmatmul.mubr.f32.vlgmr.msra.gmra.mrb[2].mxu1 %v7461_v50 }
 0x1fd   :  { %v1073_v61 = vpop.f32.mrb[0].mxu0 }
 0x1fe   :  { %v4494_v25 = vadd.f32 %v1073_v61, %v186_v60  ;;  %v1075_v45 = vpop.f32.mrb[1].mxu0 }
 0x1ff   :  { %v4495_v30 = vadd.f32 %v1075_v45, %v190_v19  ;;  %v1928_v56 = vpop.f32.mrb[0].mxu1 }
 0x200   :  { %v3643_v52 = vmax.f32 %v4494_v25, 0.0  ;;  %v4496_v16 = vadd.f32 %v1928_v56, %v194_v14  ;;  %v1930_v42 = vpop.f32.mrb[1].mxu1 }
 0x201   :  { %v3644_v2 = vmax.f32 %v4495_v30, 0.0  ;;  %v4497_v34 = vadd.f32 %v1930_v42, %v198_v9 }
 0x202   :  { %v3645_v5 = vmax.f32 %v4496_v16, 0.0 }
 0x203   :  { %v3659_v39 = vcombine.low %v3643_v52, %v3644_v2  ;;  %v3646_v51 = vmax.f32 %v4497_v34, 0.0 }
 0x205   :  { %v3669_v0 = vrot.slane %v3659_v39, %v3668_v26  ;;  %v3660_v12 = vcombine.low %v3645_v5, %v3646_v51 }
 0x207   :  { %v3676_v49 = vrot.slane %v3660_v12, %v3668_v26 }
 0x209   :  { %v3691_v20 = vcombine.low %v3669_v0, %v3676_v49 }
 0x20b   :  { %v3699_v50 = vrot.slane %v3691_v20, %v3668_v26 }
 0x2c6   :  { %v2783_v8 = vpop.f32.mrb[2].mxu0 }
 0x2c7   :  { %v4498_v55 = vadd.f32 %v2783_v8, %v202_v6  ;;  %v2785_v23 = vpop.f32.mrb[3].mxu0 }
 0x2c8   :  { %v4499_v17 = vadd.f32 %v2785_v23, %v206_v59 }
 0x2c9   :  { %v3647_v57 = vmax.f32 %v4498_v55, 0.0  ;;  %v3638_v36 = vpop.f32.mrb[2].mxu1 }
 0x2ca   :  { %v4500_v48 = vadd.f32 %v3638_v36, %v210_v53  ;;  %v3648_v27 = vmax.f32 %v4499_v17, 0.0  ;;  %v3640_v43 = vpop.f32.mrb[3].mxu1 }
 0x2cb   :  { %v4501_v11 = vadd.f32 %v3640_v43, %v214_v22 }
 0x2cc   :  { %v3649_v46 = vmax.f32 %v4500_v48, 0.0  ;;  %v3661_v44 = vcombine.low %v3647_v57, %v3648_v27 }
 0x2cd   :  { %v3650_v63 = vmax.f32 %v4501_v11, 0.0 }
 0x2ce   :  { %v3683_v10 = vrot.slane %v3661_v44, %v3668_v26 }
 0x2cf   :  { %v3662_v15 = vcombine.low %v3649_v46, %v3650_v63 }
 0x2d1   :  { %v3690_v29 = vrot.slane %v3662_v15, %v3668_v26 }
 0x2d3   :  { %v3692_v40 = vcombine.low %v3683_v10, %v3690_v29 }
 0x2d5   :  { %v3706_v7 = vrot.slane %v3692_v40, %v3668_v26 }
 0x2d7   :  { %v3707_v38 = vcombine.low %v3699_v50, %v3706_v7 }
 0x2d9   :  { %3709 = vst [vmem:[#allocation8] sm:$0xff] %v3707_v38 }
 0x2da   :  { %4627 = shalt.err (!%p4624_p0)
}
 0x2db   :  { %s4628_s26 = scalar_lea.hbm %s6488_s3, 128 }
 0x2dc   :  { %p4629_p1 = scmp.ne.s32.totalorder %s6488_s3, %s4628_s26  ;;  %p4632_p2 = scmp.lt.u32.totalorder %s4628_s26, %s6488_s3 }
 0x2de   :  { %p4634_p3 = pnand %p4632_p2, %p4629_p1 }
 0x2e0   :  { %4637 = shalt.err (!%p4634_p3)
}
 0x2e1   :  { %3719 = dma.vmem_to_hbm [thread:$0]  %s3717_s22, 128, %s6488_s3, [#allocation4]  }
 0x2e2   :  { %4642 = dma.done.wait [#allocation4], 128  }
 0x2e3   :  { %4643 = vsyncadd [#allocation4], 4294967168 }
 0x2e4   :  { %3723 = vsyncpa [#allocation3], 1 }
 0x2e5   :  { %3724 = vsyncpa [#allocation6], 1 }
 0x2e6   :  { %3725 = vsyncpa [#allocation4], 1 }

</bundles_post_ra>
